<compile_context>
chip_gen: v7x
topology: tpu7x:2x2x1
jax: 0.10.0
libtpu: 0.0.40
codegen_flags: <defaults>
</compile_context>

<pallas_src>
import functools

import jax
import jax.numpy as jnp
from jax.experimental import pallas as pl
from jax.experimental.pallas import tpu as pltpu


# ---------------------------------------------------------------------------
# Recurrence kernel: grid = (time-chunk,).  Both directions advance together;
# only h_{t-1} @ W_hh^T is computed inside the sequential loop (x-projection is
# hoisted).  Gate layout inside the kernel is [i, f, o, g] (permuted in wrapper).
# ---------------------------------------------------------------------------
def _bilstm_recurrence_kernel(gxf_ref, gxb_ref, whhf_ref, whhb_ref,
                              outf_ref, outb_ref,
                              hf_sc, cf_sc, hb_sc, cb_sc, *, H, TT):
    tc = pl.program_id(0)   # sequential time-chunk index ("arbitrary")

    # Zero the recurrent state of both chains at the start of the time sweep.
    @pl.when(tc == 0)
    def _():
        hf_sc[...] = jnp.zeros_like(hf_sc)
        cf_sc[...] = jnp.zeros_like(cf_sc)
        hb_sc[...] = jnp.zeros_like(hb_sc)
        cb_sc[...] = jnp.zeros_like(cb_sc)

    def cell(gx_bf16, h_prev, c_prev, whh_ref):
        # Weight read stays inside the dot (streamed from VMEM, not held in vregs).
        gates = gx_bf16.astype(jnp.float32) + jnp.dot(
            h_prev.astype(jnp.bfloat16), whh_ref[...],
            preferred_element_type=jnp.float32)
        sig = jax.nn.sigmoid(gates[:, :3 * H])     # one launch: i, f, o together
        g_g = jnp.tanh(gates[:, 3 * H:])
        i_g = sig[:, 0 * H:1 * H]
        f_g = sig[:, 1 * H:2 * H]
        o_g = sig[:, 2 * H:3 * H]
        c_new = f_g * c_prev + i_g * g_g
        h_new = o_g * jnp.tanh(c_new)
        return h_new, c_new

    # Static unroll over the chunk; forward step s and reverse step s are issued
    # back-to-back so the two independent chains interleave in the schedule.
    for s in range(TT):
        rs = TT - 1 - s
        h_f, c_f = cell(gxf_ref[s], hf_sc[...], cf_sc[...], whhf_ref)
        h_b, c_b = cell(gxb_ref[rs], hb_sc[...], cb_sc[...], whhb_ref)
        hf_sc[...] = h_f
        cf_sc[...] = c_f
        hb_sc[...] = h_b
        cb_sc[...] = c_b
        outf_ref[s] = h_f.astype(outf_ref.dtype)    # static, lane-dense (Bp, H)
        outb_ref[rs] = h_b.astype(outb_ref.dtype)


def _pick_tt(T, tt):
    """Largest chunk size <= tt that divides T (to avoid padding gx); fall back
    to tt (+ padding) if the best divisor would make chunks too small."""
    cap = max(1, min(tt, T))
    best = max(d for d in range(1, cap + 1) if T % d == 0)
    if best == T or best >= max(8, cap // 2):
        return best
    return cap


# ---------------------------------------------------------------------------
# One bidirectional LSTM layer, time-major in / time-major out.
# ---------------------------------------------------------------------------
def _bilstm_layer_tm(x_tm, w_ih, w_hh, bias, *, tt=32):
    """x_tm: [T, Bp, D] f32 (Bp % 8 == 0).  w_ih: [2,4H,D], w_hh: [2,4H,H],
    bias: [2,4H] (= b_ih + b_hh per direction), all in PyTorch gate order [i,f,g,o].
    Returns [T, Bp, 2H] f32 with [..., :H] = forward, [..., H:] = reverse."""
    T, Bp, D = x_tm.shape
    H4 = w_ih.shape[1]
    H = H4 // 4

    # ---- Permute gate order [i,f,g,o] -> [i,f,o,g] once (weights + bias). -----
    gate_perm = [0, 1, 3, 2]
    w_ih_p = w_ih.reshape(2, 4, H, D)[:, gate_perm].reshape(2, H4, D)
    w_hh_p = w_hh.reshape(2, 4, H, H)[:, gate_perm].reshape(2, H4, H)
    bias_p = bias.reshape(2, 4, H)[:, gate_perm].reshape(2, H4)

    TT = _pick_tt(T, tt)
    nT = pl.cdiv(T, TT)
    T_pad = nT * TT

    # ---- Hoisted input projection: one big bf16 MXU matmul, f32 accumulation, --
    # ---- carried to/from HBM in bf16 (largest streamed operand).            ----
    wih_t = jnp.transpose(w_ih_p, (0, 2, 1)).astype(jnp.bfloat16)      # [2, D, 4H]
    gx = jnp.einsum('tbd,ndg->ntbg', x_tm.astype(jnp.bfloat16), wih_t,
                    preferred_element_type=jnp.float32)
    gx = (gx + bias_p[:, None, None, :].astype(jnp.float32)).astype(jnp.bfloat16)

    if T_pad != T:
        # Zero gate pre-activations keep (h, c) == 0 through padded steps, so the
        # reverse direction (which hits the padded tail first) is unaffected.
        gx = jnp.pad(gx, ((0, 0), (0, T_pad - T), (0, 0), (0, 0)))

    gx_f = gx[0]                                                       # [T_pad, Bp, 4H] bf16
    gx_b = gx[1]
    whh_f = jnp.transpose(w_hh_p[0]).astype(jnp.bfloat16)              # [H, 4H]
    whh_b = jnp.transpose(w_hh_p[1]).astype(jnp.bfloat16)

    kernel = functools.partial(_bilstm_recurrence_kernel, H=H, TT=TT)

    out_f, out_b = pl.pallas_call(
        kernel,
        out_shape=(jax.ShapeDtypeStruct((T_pad, Bp, H), jnp.float32),
                   jax.ShapeDtypeStruct((T_pad, Bp, H), jnp.float32)),
        grid_spec=pltpu.PrefetchScalarGridSpec(
            num_scalar_prefetch=0,
            grid=(nT,),
            in_specs=[
                # Hoisted gates: forward chain walks chunks 0..nT-1, reverse chain
                # walks nT-1..0 (so both outputs land in natural time order).
                pl.BlockSpec((TT, Bp, H4), lambda t: (t, 0, 0)),
                pl.BlockSpec((TT, Bp, H4), lambda t: (nT - 1 - t, 0, 0)),
                # Recurrent weights (resident: same block every grid step).
                pl.BlockSpec((H, H4), lambda t: (0, 0)),
                pl.BlockSpec((H, H4), lambda t: (0, 0)),
            ],
            out_specs=[
                pl.BlockSpec((TT, Bp, H), lambda t: (t, 0, 0)),
                pl.BlockSpec((TT, Bp, H), lambda t: (nT - 1 - t, 0, 0)),
            ],
            scratch_shapes=[
                pltpu.VMEM((Bp, H), jnp.float32),   # h forward
                pltpu.VMEM((Bp, H), jnp.float32),   # c forward
                pltpu.VMEM((Bp, H), jnp.float32),   # h reverse
                pltpu.VMEM((Bp, H), jnp.float32),   # c reverse
            ],
        ),
        compiler_params=pltpu.CompilerParams(
            dimension_semantics=("arbitrary",),      # time carries the recurrence
            vmem_limit_bytes=32 * 1024 * 1024,       # actual footprint ~2-3 MiB
        ),
    )(gx_f, gx_b, whh_f, whh_b)

    return jnp.concatenate([out_f[:T], out_b[:T]], axis=-1)


# ---------------------------------------------------------------------------
# Full module forward (eval mode): residual input feeding across stacked layers.
# ---------------------------------------------------------------------------
def bidirectional_res_lstm_forward(x, layers_params, *, tt=32):
    """x: [B, T, D].  layers_params: list of (w_ih[2,4H,D], w_hh[2,4H,H], bias[2,4H]).
    Returns [B*T, 2H], matching BidirectionalResLSTM.forward (dropout in eval mode).
    Note: as in the PyTorch module, num_layers > 1 requires D == 2H."""
    B, T, _ = x.shape
    H = layers_params[0][1].shape[2]

    Bp = ((B + 7) // 8) * 8                        # sublane-align the batch
    x_tm = jnp.transpose(x, (1, 0, 2))             # single module-entry transpose
    if Bp != B:
        x_tm = jnp.pad(x_tm, ((0, 0), (0, Bp - B), (0, 0)))

    pre = jnp.zeros_like(x_tm)
    feed = x_tm
    out = None
    for (w_ih, w_hh, bias) in layers_params:
        out = _bilstm_layer_tm(feed + pre, w_ih, w_hh, bias, tt=tt)   # [T, Bp, 2H]
        pre = feed
        feed = out
        # TODO(synk): nn.Dropout between layers is identity here (inference/eval
        # mode); training-mode stochastic dropout is not implemented.

    out_bt = jnp.transpose(out[:, :B, :], (1, 0, 2))           # single exit transpose
    return out_bt.reshape(B * T, 2 * H)


# ---------------------------------------------------------------------------
# Pure-JAX reference (mirrors the bf16-into-MXU / bf16-gx numerics).
# ---------------------------------------------------------------------------
def _lstm_dir_ref(x_tm, w_ih, w_hh, bias, reverse):
    T, B, _ = x_tm.shape
    H = w_hh.shape[1]
    gx = jnp.einsum('tbd,gd->tbg', x_tm.astype(jnp.bfloat16),
                    w_ih.astype(jnp.bfloat16),
                    preferred_element_type=jnp.float32) + bias
    gx = gx.astype(jnp.bfloat16).astype(jnp.float32)     # mirror bf16 gx storage
    whh_t = w_hh.T.astype(jnp.bfloat16)

    def step(carry, gx_t):
        h, c = carry
        gates = gx_t + jnp.dot(h.astype(jnp.bfloat16), whh_t,
                               preferred_element_type=jnp.float32)
        i = jax.nn.sigmoid(gates[:, 0 * H:1 * H])
        f = jax.nn.sigmoid(gates[:, 1 * H:2 * H])
        g = jnp.tanh(gates[:, 2 * H:3 * H])
        o = jax.nn.sigmoid(gates[:, 3 * H:4 * H])
        c = f * c + i * g
        h = o * jnp.tanh(c)
        return (h, c), h

    xs = gx[::-1] if reverse else gx
    init = (jnp.zeros((B, H), jnp.float32), jnp.zeros((B, H), jnp.float32))
    _, hs = jax.lax.scan(step, init, xs)
    return hs[::-1] if reverse else hs


def _module_reference(x, layers_params):
    B, T, _ = x.shape
    H = layers_params[0][1].shape[2]
    x_tm = jnp.transpose(x, (1, 0, 2))
    pre = jnp.zeros_like(x_tm)
    feed = x_tm
    out = None
    for (w_ih, w_hh, bias) in layers_params:
        layer_in = feed + pre
        fwd = _lstm_dir_ref(layer_in, w_ih[0], w_hh[0], bias[0], reverse=False)
        bwd = _lstm_dir_ref(layer_in, w_ih[1], w_hh[1], bias[1], reverse=True)
        out = jnp.concatenate([fwd, bwd], axis=-1)
        pre = feed
        feed = out
    return jnp.transpose(out, (1, 0, 2)).reshape(B * T, 2 * H)


if __name__ == "__main__":
    num_layers = 2
    B, T = 2, 16
    rnn_size = 128                    # hidden per direction (lane-aligned)
    input_size = 2 * rnn_size         # module's residual add requires D == 2H

    key = jax.random.PRNGKey(0)
    keys = jax.random.split(key, 1 + num_layers)
    x = jax.random.normal(keys[0], (B, T, input_size), jnp.float32)

    # PyTorch-style U(-1/sqrt(H), 1/sqrt(H)) init, stacked over the two directions.
    bound = 1.0 / jnp.sqrt(jnp.float32(rnn_size))
    layers_params = []
    for i in range(num_layers):
        k = jax.random.split(keys[1 + i], 4)
        w_ih = jax.random.uniform(k[0], (2, 4 * rnn_size, input_size),
                                  jnp.float32, -bound, bound)
        w_hh = jax.random.uniform(k[1], (2, 4 * rnn_size, rnn_size),
                                  jnp.float32, -bound, bound)
        b_ih = jax.random.uniform(k[2], (2, 4 * rnn_size), jnp.float32, -bound, bound)
        b_hh = jax.random.uniform(k[3], (2, 4 * rnn_size), jnp.float32, -bound, bound)
        layers_params.append((w_ih, w_hh, b_ih + b_hh))

    # tt=8 here so the small demo (T=16) still exercises multi-chunk sequencing
    # and resident weights across grid steps; default tt=32 for realistic T.
    fwd = jax.jit(bidirectional_res_lstm_forward, static_argnames=("tt",))
    out = jax.block_until_ready(fwd(x, layers_params, tt=8))

    ref = _module_reference(x, layers_params)
    assert out.shape == (B * T, 2 * rnn_size), out.shape
    max_err = float(jnp.max(jnp.abs(out - ref)))
    assert jnp.allclose(out, ref, atol=5e-3, rtol=5e-3), f"mismatch vs ref: {max_err}"

    print("KERNEL_OK")
</pallas_src>

<mosaic_0001>
module attributes {stable_mosaic.version = 11 : i64} {
  func.func @_bilstm_recurrence_kernel(%arg0: i32, %arg1: memref<8x8x512xbf16, #tpu.memory_space<vmem>>, %arg2: memref<8x8x512xbf16, #tpu.memory_space<vmem>>, %arg3: memref<128x512xbf16, #tpu.memory_space<vmem>>, %arg4: memref<128x512xbf16, #tpu.memory_space<vmem>>, %arg5: memref<8x8x128xf32, #tpu.memory_space<vmem>>, %arg6: memref<8x8x128xf32, #tpu.memory_space<vmem>>, %arg7: memref<8x128xf32, #tpu.memory_space<vmem>>, %arg8: memref<8x128xf32, #tpu.memory_space<vmem>>, %arg9: memref<8x128xf32, #tpu.memory_space<vmem>>, %arg10: memref<8x128xf32, #tpu.memory_space<vmem>>) attributes {dimension_semantics = [#tpu.dimension_semantics<arbitrary>], iteration_bounds = array<i64: 2>, scalar_prefetch = 0 : i64, scratch_operands = 4 : i64, tpu.core_type = #tpu.core_type<tc>, window_params = [{transform_indices = @transform_0, window_bounds = array<i64: 8, 8, 512>}, {transform_indices = @transform_1, window_bounds = array<i64: 8, 8, 512>}, {pipeline_mode = #tpu.pipeline_mode<synchronous>, transform_indices = @transform_2, window_bounds = array<i64: 128, 512>}, {pipeline_mode = #tpu.pipeline_mode<synchronous>, transform_indices = @transform_3, window_bounds = array<i64: 128, 512>}, {transform_indices = @transform_4, window_bounds = array<i64: 8, 8, 128>}, {transform_indices = @transform_5, window_bounds = array<i64: 8, 8, 128>}]} {
    %c0_i32 = arith.constant 0 : i32
    %0 = arith.cmpi eq, %arg0, %c0_i32 : i32
    %1 = arith.extui %0 : i1 to i32
    %c0_i32_0 = arith.constant 0 : i32
    %2 = arith.cmpi ne, %1, %c0_i32_0 : i32
    scf.if %2 {
      %cst_280 = arith.constant 0.000000e+00 : f32
      %483 = vector.broadcast %cst_280 : f32 to vector<8x128xf32>
      %c0_281 = arith.constant 0 : index
      %c0_282 = arith.constant 0 : index
      %484 = vector.load %arg7[%c0_281, %c0_282] : memref<8x128xf32, #tpu.memory_space<vmem>>, vector<8x128xf32>
      tpu.vector_store %arg7[%c0_281, %c0_282], %483 {strides = array<i32>} : memref<8x128xf32, #tpu.memory_space<vmem>>, vector<8x128xf32>,
      %cst_283 = arith.constant 0.000000e+00 : f32
      %485 = vector.broadcast %cst_283 : f32 to vector<8x128xf32>
      %c0_284 = arith.constant 0 : index
      %c0_285 = arith.constant 0 : index
      %486 = vector.load %arg8[%c0_284, %c0_285] : memref<8x128xf32, #tpu.memory_space<vmem>>, vector<8x128xf32>
      tpu.vector_store %arg8[%c0_284, %c0_285], %485 {strides = array<i32>} : memref<8x128xf32, #tpu.memory_space<vmem>>, vector<8x128xf32>,
      %cst_286 = arith.constant 0.000000e+00 : f32
      %487 = vector.broadcast %cst_286 : f32 to vector<8x128xf32>
      %c0_287 = arith.constant 0 : index
      %c0_288 = arith.constant 0 : index
      %488 = vector.load %arg9[%c0_287, %c0_288] : memref<8x128xf32, #tpu.memory_space<vmem>>, vector<8x128xf32>
      tpu.vector_store %arg9[%c0_287, %c0_288], %487 {strides = array<i32>} : memref<8x128xf32, #tpu.memory_space<vmem>>, vector<8x128xf32>,
      %cst_289 = arith.constant 0.000000e+00 : f32
      %489 = vector.broadcast %cst_289 : f32 to vector<8x128xf32>
      %c0_290 = arith.constant 0 : index
      %c0_291 = arith.constant 0 : index
      %490 = vector.load %arg10[%c0_290, %c0_291] : memref<8x128xf32, #tpu.memory_space<vmem>>, vector<8x128xf32>
      tpu.vector_store %arg10[%c0_290, %c0_291], %489 {strides = array<i32>} : memref<8x128xf32, #tpu.memory_space<vmem>>, vector<8x128xf32>,
    } else {
    }
    %c0 = arith.constant 0 : index
    %c0_1 = arith.constant 0 : index
    %c0_2 = arith.constant 0 : index
    %3 = vector.load %arg1[%c0, %c0_1, %c0_2] : memref<8x8x512xbf16, #tpu.memory_space<vmem>>, vector<1x8x512xbf16>
    %4 = vector.shape_cast %3 : vector<1x8x512xbf16> to vector<8x512xbf16>
    %c0_3 = arith.constant 0 : index
    %c0_4 = arith.constant 0 : index
    %5 = vector.load %arg7[%c0_3, %c0_4] : memref<8x128xf32, #tpu.memory_space<vmem>>, vector<8x128xf32>
    %c0_5 = arith.constant 0 : index
    %c0_6 = arith.constant 0 : index
    %6 = vector.load %arg8[%c0_5, %c0_6] : memref<8x128xf32, #tpu.memory_space<vmem>>, vector<8x128xf32>
    %7 = arith.extf %4 : vector<8x512xbf16> to vector<8x512xf32>
    %8 = arith.truncf %5 : vector<8x128xf32> to vector<8x128xbf16>
    %c0_7 = arith.constant 0 : index
    %c0_8 = arith.constant 0 : index
    %9 = vector.load %arg3[%c0_7, %c0_8] : memref<128x512xbf16, #tpu.memory_space<vmem>>, vector<128x512xbf16>
    %cst = arith.constant dense<0.000000e+00> : vector<8x512xf32>
    %10 = tpu.matmul %8, %9, %cst {dimension_numbers = #tpu.dot_dimension_numbers<[1], [0], [0], [1], [0, 0, 1, 1], [], []>} : vector<8x128xbf16>, vector<128x512xbf16>, vector<8x512xf32> -> vector<8x512xf32>
    %11 = arith.addf %7, %10 : vector<8x512xf32>
    %12 = vector.extract_strided_slice %11 {offsets = [0, 0], sizes = [8, 384], strides = [1, 1]} : vector<8x512xf32> to vector<8x384xf32>
    %13 = arith.negf %12 : vector<8x384xf32>
    %14 = math.exp %13 : vector<8x384xf32>
    %cst_9 = arith.constant 1.000000e+00 : f32
    %15 = vector.broadcast %cst_9 : f32 to vector<8x384xf32>
    %16 = arith.addf %15, %14 : vector<8x384xf32>
    %17 = arith.divf %15, %16 : vector<8x384xf32>
    %18 = vector.extract_strided_slice %11 {offsets = [0, 384], sizes = [8, 128], strides = [1, 1]} : vector<8x512xf32> to vector<8x128xf32>
    %19 = math.tanh %18 : vector<8x128xf32>
    %20 = vector.extract_strided_slice %17 {offsets = [0, 0], sizes = [8, 128], strides = [1, 1]} : vector<8x384xf32> to vector<8x128xf32>
    %21 = vector.extract_strided_slice %17 {offsets = [0, 128], sizes = [8, 128], strides = [1, 1]} : vector<8x384xf32> to vector<8x128xf32>
    %22 = vector.extract_strided_slice %17 {offsets = [0, 256], sizes = [8, 128], strides = [1, 1]} : vector<8x384xf32> to vector<8x128xf32>
    %23 = arith.mulf %21, %6 : vector<8x128xf32>
    %24 = arith.mulf %20, %19 : vector<8x128xf32>
    %25 = arith.addf %23, %24 : vector<8x128xf32>
    %26 = math.tanh %25 : vector<8x128xf32>
    %27 = arith.mulf %22, %26 : vector<8x128xf32>
    %c7 = arith.constant 7 : index
    %c0_10 = arith.constant 0 : index
    %c0_11 = arith.constant 0 : index
    %28 = vector.load %arg2[%c7, %c0_10, %c0_11] : memref<8x8x512xbf16, #tpu.memory_space<vmem>>, vector<1x8x512xbf16>
    %29 = vector.shape_cast %28 : vector<1x8x512xbf16> to vector<8x512xbf16>
    %c0_12 = arith.constant 0 : index
    %c0_13 = arith.constant 0 : index
    %30 = vector.load %arg9[%c0_12, %c0_13] : memref<8x128xf32, #tpu.memory_space<vmem>>, vector<8x128xf32>
    %c0_14 = arith.constant 0 : index
    %c0_15 = arith.constant 0 : index
    %31 = vector.load %arg10[%c0_14, %c0_15] : memref<8x128xf32, #tpu.memory_space<vmem>>, vector<8x128xf32>
    %32 = arith.extf %29 : vector<8x512xbf16> to vector<8x512xf32>
    %33 = arith.truncf %30 : vector<8x128xf32> to vector<8x128xbf16>
    %c0_16 = arith.constant 0 : index
    %c0_17 = arith.constant 0 : index
    %34 = vector.load %arg4[%c0_16, %c0_17] : memref<128x512xbf16, #tpu.memory_space<vmem>>, vector<128x512xbf16>
    %cst_18 = arith.constant dense<0.000000e+00> : vector<8x512xf32>
    %35 = tpu.matmul %33, %34, %cst_18 {dimension_numbers = #tpu.dot_dimension_numbers<[1], [0], [0], [1], [0, 0, 1, 1], [], []>} : vector<8x128xbf16>, vector<128x512xbf16>, vector<8x512xf32> -> vector<8x512xf32>
    %36 = arith.addf %32, %35 : vector<8x512xf32>
    %37 = vector.extract_strided_slice %36 {offsets = [0, 0], sizes = [8, 384], strides = [1, 1]} : vector<8x512xf32> to vector<8x384xf32>
    %38 = arith.negf %37 : vector<8x384xf32>
    %39 = math.exp %38 : vector<8x384xf32>
    %cst_19 = arith.constant 1.000000e+00 : f32
    %40 = vector.broadcast %cst_19 : f32 to vector<8x384xf32>
    %41 = arith.addf %40, %39 : vector<8x384xf32>
    %42 = arith.divf %40, %41 : vector<8x384xf32>
    %43 = vector.extract_strided_slice %36 {offsets = [0, 384], sizes = [8, 128], strides = [1, 1]} : vector<8x512xf32> to vector<8x128xf32>
    %44 = math.tanh %43 : vector<8x128xf32>
    %45 = vector.extract_strided_slice %42 {offsets = [0, 0], sizes = [8, 128], strides = [1, 1]} : vector<8x384xf32> to vector<8x128xf32>
    %46 = vector.extract_strided_slice %42 {offsets = [0, 128], sizes = [8, 128], strides = [1, 1]} : vector<8x384xf32> to vector<8x128xf32>
    %47 = vector.extract_strided_slice %42 {offsets = [0, 256], sizes = [8, 128], strides = [1, 1]} : vector<8x384xf32> to vector<8x128xf32>
    %48 = arith.mulf %46, %31 : vector<8x128xf32>
    %49 = arith.mulf %45, %44 : vector<8x128xf32>
    %50 = arith.addf %48, %49 : vector<8x128xf32>
    %51 = math.tanh %50 : vector<8x128xf32>
    %52 = arith.mulf %47, %51 : vector<8x128xf32>
    %c0_20 = arith.constant 0 : index
    %c0_21 = arith.constant 0 : index
    %53 = vector.load %arg7[%c0_20, %c0_21] : memref<8x128xf32, #tpu.memory_space<vmem>>, vector<8x128xf32>
    tpu.vector_store %arg7[%c0_20, %c0_21], %27 {strides = array<i32>} : memref<8x128xf32, #tpu.memory_space<vmem>>, vector<8x128xf32>,
    %c0_22 = arith.constant 0 : index
    %c0_23 = arith.constant 0 : index
    %54 = vector.load %arg8[%c0_22, %c0_23] : memref<8x128xf32, #tpu.memory_space<vmem>>, vector<8x128xf32>
    tpu.vector_store %arg8[%c0_22, %c0_23], %25 {strides = array<i32>} : memref<8x128xf32, #tpu.memory_space<vmem>>, vector<8x128xf32>,
    %c0_24 = arith.constant 0 : index
    %c0_25 = arith.constant 0 : index
    %55 = vector.load %arg9[%c0_24, %c0_25] : memref<8x128xf32, #tpu.memory_space<vmem>>, vector<8x128xf32>
    tpu.vector_store %arg9[%c0_24, %c0_25], %52 {strides = array<i32>} : memref<8x128xf32, #tpu.memory_space<vmem>>, vector<8x128xf32>,
    %c0_26 = arith.constant 0 : index
    %c0_27 = arith.constant 0 : index
    %56 = vector.load %arg10[%c0_26, %c0_27] : memref<8x128xf32, #tpu.memory_space<vmem>>, vector<8x128xf32>
    tpu.vector_store %arg10[%c0_26, %c0_27], %50 {strides = array<i32>} : memref<8x128xf32, #tpu.memory_space<vmem>>, vector<8x128xf32>,
    %c0_28 = arith.constant 0 : index
    %c0_29 = arith.constant 0 : index
    %c0_30 = arith.constant 0 : index
    %57 = vector.load %arg5[%c0_28, %c0_29, %c0_30] : memref<8x8x128xf32, #tpu.memory_space<vmem>>, vector<1x8x128xf32>
    %58 = vector.shape_cast %57 : vector<1x8x128xf32> to vector<8x128xf32>
    %59 = vector.shape_cast %27 : vector<8x128xf32> to vector<1x8x128xf32>
    tpu.vector_store %arg5[%c0_28, %c0_29, %c0_30], %59 {strides = array<i32>} : memref<8x8x128xf32, #tpu.memory_space<vmem>>, vector<1x8x128xf32>,
    %c7_31 = arith.constant 7 : index
    %c0_32 = arith.constant 0 : index
    %c0_33 = arith.constant 0 : index
    %60 = vector.load %arg6[%c7_31, %c0_32, %c0_33] : memref<8x8x128xf32, #tpu.memory_space<vmem>>, vector<1x8x128xf32>
    %61 = vector.shape_cast %60 : vector<1x8x128xf32> to vector<8x128xf32>
    %62 = vector.shape_cast %52 : vector<8x128xf32> to vector<1x8x128xf32>
    tpu.vector_store %arg6[%c7_31, %c0_32, %c0_33], %62 {strides = array<i32>} : memref<8x8x128xf32, #tpu.memory_space<vmem>>, vector<1x8x128xf32>,
    %c1 = arith.constant 1 : index
    %c0_34 = arith.constant 0 : index
    %c0_35 = arith.constant 0 : index
    %63 = vector.load %arg1[%c1, %c0_34, %c0_35] : memref<8x8x512xbf16, #tpu.memory_space<vmem>>, vector<1x8x512xbf16>
    %64 = vector.shape_cast %63 : vector<1x8x512xbf16> to vector<8x512xbf16>
    %c0_36 = arith.constant 0 : index
    %c0_37 = arith.constant 0 : index
    %65 = vector.load %arg7[%c0_36, %c0_37] : memref<8x128xf32, #tpu.memory_space<vmem>>, vector<8x128xf32>
    %c0_38 = arith.constant 0 : index
    %c0_39 = arith.constant 0 : index
    %66 = vector.load %arg8[%c0_38, %c0_39] : memref<8x128xf32, #tpu.memory_space<vmem>>, vector<8x128xf32>
    %67 = arith.extf %64 : vector<8x512xbf16> to vector<8x512xf32>
    %68 = arith.truncf %65 : vector<8x128xf32> to vector<8x128xbf16>
    %c0_40 = arith.constant 0 : index
    %c0_41 = arith.constant 0 : index
    %69 = vector.load %arg3[%c0_40, %c0_41] : memref<128x512xbf16, #tpu.memory_space<vmem>>, vector<128x512xbf16>
    %cst_42 = arith.constant dense<0.000000e+00> : vector<8x512xf32>
    %70 = tpu.matmul %68, %69, %cst_42 {dimension_numbers = #tpu.dot_dimension_numbers<[1], [0], [0], [1], [0, 0, 1, 1], [], []>} : vector<8x128xbf16>, vector<128x512xbf16>, vector<8x512xf32> -> vector<8x512xf32>
    %71 = arith.addf %67, %70 : vector<8x512xf32>
    %72 = vector.extract_strided_slice %71 {offsets = [0, 0], sizes = [8, 384], strides = [1, 1]} : vector<8x512xf32> to vector<8x384xf32>
    %73 = arith.negf %72 : vector<8x384xf32>
    %74 = math.exp %73 : vector<8x384xf32>
    %cst_43 = arith.constant 1.000000e+00 : f32
    %75 = vector.broadcast %cst_43 : f32 to vector<8x384xf32>
    %76 = arith.addf %75, %74 : vector<8x384xf32>
    %77 = arith.divf %75, %76 : vector<8x384xf32>
    %78 = vector.extract_strided_slice %71 {offsets = [0, 384], sizes = [8, 128], strides = [1, 1]} : vector<8x512xf32> to vector<8x128xf32>
    %79 = math.tanh %78 : vector<8x128xf32>
    %80 = vector.extract_strided_slice %77 {offsets = [0, 0], sizes = [8, 128], strides = [1, 1]} : vector<8x384xf32> to vector<8x128xf32>
    %81 = vector.extract_strided_slice %77 {offsets = [0, 128], sizes = [8, 128], strides = [1, 1]} : vector<8x384xf32> to vector<8x128xf32>
    %82 = vector.extract_strided_slice %77 {offsets = [0, 256], sizes = [8, 128], strides = [1, 1]} : vector<8x384xf32> to vector<8x128xf32>
    %83 = arith.mulf %81, %66 : vector<8x128xf32>
    %84 = arith.mulf %80, %79 : vector<8x128xf32>
    %85 = arith.addf %83, %84 : vector<8x128xf32>
    %86 = math.tanh %85 : vector<8x128xf32>
    %87 = arith.mulf %82, %86 : vector<8x128xf32>
    %c6 = arith.constant 6 : index
    %c0_44 = arith.constant 0 : index
    %c0_45 = arith.constant 0 : index
    %88 = vector.load %arg2[%c6, %c0_44, %c0_45] : memref<8x8x512xbf16, #tpu.memory_space<vmem>>, vector<1x8x512xbf16>
    %89 = vector.shape_cast %88 : vector<1x8x512xbf16> to vector<8x512xbf16>
    %c0_46 = arith.constant 0 : index
    %c0_47 = arith.constant 0 : index
    %90 = vector.load %arg9[%c0_46, %c0_47] : memref<8x128xf32, #tpu.memory_space<vmem>>, vector<8x128xf32>
    %c0_48 = arith.constant 0 : index
    %c0_49 = arith.constant 0 : index
    %91 = vector.load %arg10[%c0_48, %c0_49] : memref<8x128xf32, #tpu.memory_space<vmem>>, vector<8x128xf32>
    %92 = arith.extf %89 : vector<8x512xbf16> to vector<8x512xf32>
    %93 = arith.truncf %90 : vector<8x128xf32> to vector<8x128xbf16>
    %c0_50 = arith.constant 0 : index
    %c0_51 = arith.constant 0 : index
    %94 = vector.load %arg4[%c0_50, %c0_51] : memref<128x512xbf16, #tpu.memory_space<vmem>>, vector<128x512xbf16>
    %cst_52 = arith.constant dense<0.000000e+00> : vector<8x512xf32>
    %95 = tpu.matmul %93, %94, %cst_52 {dimension_numbers = #tpu.dot_dimension_numbers<[1], [0], [0], [1], [0, 0, 1, 1], [], []>} : vector<8x128xbf16>, vector<128x512xbf16>, vector<8x512xf32> -> vector<8x512xf32>
    %96 = arith.addf %92, %95 : vector<8x512xf32>
    %97 = vector.extract_strided_slice %96 {offsets = [0, 0], sizes = [8, 384], strides = [1, 1]} : vector<8x512xf32> to vector<8x384xf32>
    %98 = arith.negf %97 : vector<8x384xf32>
    %99 = math.exp %98 : vector<8x384xf32>
    %cst_53 = arith.constant 1.000000e+00 : f32
    %100 = vector.broadcast %cst_53 : f32 to vector<8x384xf32>
    %101 = arith.addf %100, %99 : vector<8x384xf32>
    %102 = arith.divf %100, %101 : vector<8x384xf32>
    %103 = vector.extract_strided_slice %96 {offsets = [0, 384], sizes = [8, 128], strides = [1, 1]} : vector<8x512xf32> to vector<8x128xf32>
    %104 = math.tanh %103 : vector<8x128xf32>
    %105 = vector.extract_strided_slice %102 {offsets = [0, 0], sizes = [8, 128], strides = [1, 1]} : vector<8x384xf32> to vector<8x128xf32>
    %106 = vector.extract_strided_slice %102 {offsets = [0, 128], sizes = [8, 128], strides = [1, 1]} : vector<8x384xf32> to vector<8x128xf32>
    %107 = vector.extract_strided_slice %102 {offsets = [0, 256], sizes = [8, 128], strides = [1, 1]} : vector<8x384xf32> to vector<8x128xf32>
    %108 = arith.mulf %106, %91 : vector<8x128xf32>
    %109 = arith.mulf %105, %104 : vector<8x128xf32>
    %110 = arith.addf %108, %109 : vector<8x128xf32>
    %111 = math.tanh %110 : vector<8x128xf32>
    %112 = arith.mulf %107, %111 : vector<8x128xf32>
    %c0_54 = arith.constant 0 : index
    %c0_55 = arith.constant 0 : index
    %113 = vector.load %arg7[%c0_54, %c0_55] : memref<8x128xf32, #tpu.memory_space<vmem>>, vector<8x128xf32>
    tpu.vector_store %arg7[%c0_54, %c0_55], %87 {strides = array<i32>} : memref<8x128xf32, #tpu.memory_space<vmem>>, vector<8x128xf32>,
    %c0_56 = arith.constant 0 : index
    %c0_57 = arith.constant 0 : index
    %114 = vector.load %arg8[%c0_56, %c0_57] : memref<8x128xf32, #tpu.memory_space<vmem>>, vector<8x128xf32>
    tpu.vector_store %arg8[%c0_56, %c0_57], %85 {strides = array<i32>} : memref<8x128xf32, #tpu.memory_space<vmem>>, vector<8x128xf32>,
    %c0_58 = arith.constant 0 : index
    %c0_59 = arith.constant 0 : index
    %115 = vector.load %arg9[%c0_58, %c0_59] : memref<8x128xf32, #tpu.memory_space<vmem>>, vector<8x128xf32>
    tpu.vector_store %arg9[%c0_58, %c0_59], %112 {strides = array<i32>} : memref<8x128xf32, #tpu.memory_space<vmem>>, vector<8x128xf32>,
    %c0_60 = arith.constant 0 : index
    %c0_61 = arith.constant 0 : index
    %116 = vector.load %arg10[%c0_60, %c0_61] : memref<8x128xf32, #tpu.memory_space<vmem>>, vector<8x128xf32>
    tpu.vector_store %arg10[%c0_60, %c0_61], %110 {strides = array<i32>} : memref<8x128xf32, #tpu.memory_space<vmem>>, vector<8x128xf32>,
    %c1_62 = arith.constant 1 : index
    %c0_63 = arith.constant 0 : index
    %c0_64 = arith.constant 0 : index
    %117 = vector.load %arg5[%c1_62, %c0_63, %c0_64] : memref<8x8x128xf32, #tpu.memory_space<vmem>>, vector<1x8x128xf32>
    %118 = vector.shape_cast %117 : vector<1x8x128xf32> to vector<8x128xf32>
    %119 = vector.shape_cast %87 : vector<8x128xf32> to vector<1x8x128xf32>
    tpu.vector_store %arg5[%c1_62, %c0_63, %c0_64], %119 {strides = array<i32>} : memref<8x8x128xf32, #tpu.memory_space<vmem>>, vector<1x8x128xf32>,
    %c6_65 = arith.constant 6 : index
    %c0_66 = arith.constant 0 : index
    %c0_67 = arith.constant 0 : index
    %120 = vector.load %arg6[%c6_65, %c0_66, %c0_67] : memref<8x8x128xf32, #tpu.memory_space<vmem>>, vector<1x8x128xf32>
    %121 = vector.shape_cast %120 : vector<1x8x128xf32> to vector<8x128xf32>
    %122 = vector.shape_cast %112 : vector<8x128xf32> to vector<1x8x128xf32>
    tpu.vector_store %arg6[%c6_65, %c0_66, %c0_67], %122 {strides = array<i32>} : memref<8x8x128xf32, #tpu.memory_space<vmem>>, vector<1x8x128xf32>,
    %c2 = arith.constant 2 : index
    %c0_68 = arith.constant 0 : index
    %c0_69 = arith.constant 0 : index
    %123 = vector.load %arg1[%c2, %c0_68, %c0_69] : memref<8x8x512xbf16, #tpu.memory_space<vmem>>, vector<1x8x512xbf16>
    %124 = vector.shape_cast %123 : vector<1x8x512xbf16> to vector<8x512xbf16>
    %c0_70 = arith.constant 0 : index
    %c0_71 = arith.constant 0 : index
    %125 = vector.load %arg7[%c0_70, %c0_71] : memref<8x128xf32, #tpu.memory_space<vmem>>, vector<8x128xf32>
    %c0_72 = arith.constant 0 : index
    %c0_73 = arith.constant 0 : index
    %126 = vector.load %arg8[%c0_72, %c0_73] : memref<8x128xf32, #tpu.memory_space<vmem>>, vector<8x128xf32>
    %127 = arith.extf %124 : vector<8x512xbf16> to vector<8x512xf32>
    %128 = arith.truncf %125 : vector<8x128xf32> to vector<8x128xbf16>
    %c0_74 = arith.constant 0 : index
    %c0_75 = arith.constant 0 : index
    %129 = vector.load %arg3[%c0_74, %c0_75] : memref<128x512xbf16, #tpu.memory_space<vmem>>, vector<128x512xbf16>
    %cst_76 = arith.constant dense<0.000000e+00> : vector<8x512xf32>
    %130 = tpu.matmul %128, %129, %cst_76 {dimension_numbers = #tpu.dot_dimension_numbers<[1], [0], [0], [1], [0, 0, 1, 1], [], []>} : vector<8x128xbf16>, vector<128x512xbf16>, vector<8x512xf32> -> vector<8x512xf32>
    %131 = arith.addf %127, %130 : vector<8x512xf32>
    %132 = vector.extract_strided_slice %131 {offsets = [0, 0], sizes = [8, 384], strides = [1, 1]} : vector<8x512xf32> to vector<8x384xf32>
    %133 = arith.negf %132 : vector<8x384xf32>
    %134 = math.exp %133 : vector<8x384xf32>
    %cst_77 = arith.constant 1.000000e+00 : f32
    %135 = vector.broadcast %cst_77 : f32 to vector<8x384xf32>
    %136 = arith.addf %135, %134 : vector<8x384xf32>
    %137 = arith.divf %135, %136 : vector<8x384xf32>
    %138 = vector.extract_strided_slice %131 {offsets = [0, 384], sizes = [8, 128], strides = [1, 1]} : vector<8x512xf32> to vector<8x128xf32>
    %139 = math.tanh %138 : vector<8x128xf32>
    %140 = vector.extract_strided_slice %137 {offsets = [0, 0], sizes = [8, 128], strides = [1, 1]} : vector<8x384xf32> to vector<8x128xf32>
    %141 = vector.extract_strided_slice %137 {offsets = [0, 128], sizes = [8, 128], strides = [1, 1]} : vector<8x384xf32> to vector<8x128xf32>
    %142 = vector.extract_strided_slice %137 {offsets = [0, 256], sizes = [8, 128], strides = [1, 1]} : vector<8x384xf32> to vector<8x128xf32>
    %143 = arith.mulf %141, %126 : vector<8x128xf32>
    %144 = arith.mulf %140, %139 : vector<8x128xf32>
    %145 = arith.addf %143, %144 : vector<8x128xf32>
    %146 = math.tanh %145 : vector<8x128xf32>
    %147 = arith.mulf %142, %146 : vector<8x128xf32>
    %c5 = arith.constant 5 : index
    %c0_78 = arith.constant 0 : index
    %c0_79 = arith.constant 0 : index
    %148 = vector.load %arg2[%c5, %c0_78, %c0_79] : memref<8x8x512xbf16, #tpu.memory_space<vmem>>, vector<1x8x512xbf16>
    %149 = vector.shape_cast %148 : vector<1x8x512xbf16> to vector<8x512xbf16>
    %c0_80 = arith.constant 0 : index
    %c0_81 = arith.constant 0 : index
    %150 = vector.load %arg9[%c0_80, %c0_81] : memref<8x128xf32, #tpu.memory_space<vmem>>, vector<8x128xf32>
    %c0_82 = arith.constant 0 : index
    %c0_83 = arith.constant 0 : index
    %151 = vector.load %arg10[%c0_82, %c0_83] : memref<8x128xf32, #tpu.memory_space<vmem>>, vector<8x128xf32>
    %152 = arith.extf %149 : vector<8x512xbf16> to vector<8x512xf32>
    %153 = arith.truncf %150 : vector<8x128xf32> to vector<8x128xbf16>
    %c0_84 = arith.constant 0 : index
    %c0_85 = arith.constant 0 : index
    %154 = vector.load %arg4[%c0_84, %c0_85] : memref<128x512xbf16, #tpu.memory_space<vmem>>, vector<128x512xbf16>
    %cst_86 = arith.constant dense<0.000000e+00> : vector<8x512xf32>
    %155 = tpu.matmul %153, %154, %cst_86 {dimension_numbers = #tpu.dot_dimension_numbers<[1], [0], [0], [1], [0, 0, 1, 1], [], []>} : vector<8x128xbf16>, vector<128x512xbf16>, vector<8x512xf32> -> vector<8x512xf32>
    %156 = arith.addf %152, %155 : vector<8x512xf32>
    %157 = vector.extract_strided_slice %156 {offsets = [0, 0], sizes = [8, 384], strides = [1, 1]} : vector<8x512xf32> to vector<8x384xf32>
    %158 = arith.negf %157 : vector<8x384xf32>
    %159 = math.exp %158 : vector<8x384xf32>
    %cst_87 = arith.constant 1.000000e+00 : f32
    %160 = vector.broadcast %cst_87 : f32 to vector<8x384xf32>
    %161 = arith.addf %160, %159 : vector<8x384xf32>
    %162 = arith.divf %160, %161 : vector<8x384xf32>
    %163 = vector.extract_strided_slice %156 {offsets = [0, 384], sizes = [8, 128], strides = [1, 1]} : vector<8x512xf32> to vector<8x128xf32>
    %164 = math.tanh %163 : vector<8x128xf32>
    %165 = vector.extract_strided_slice %162 {offsets = [0, 0], sizes = [8, 128], strides = [1, 1]} : vector<8x384xf32> to vector<8x128xf32>
    %166 = vector.extract_strided_slice %162 {offsets = [0, 128], sizes = [8, 128], strides = [1, 1]} : vector<8x384xf32> to vector<8x128xf32>
    %167 = vector.extract_strided_slice %162 {offsets = [0, 256], sizes = [8, 128], strides = [1, 1]} : vector<8x384xf32> to vector<8x128xf32>
    %168 = arith.mulf %166, %151 : vector<8x128xf32>
    %169 = arith.mulf %165, %164 : vector<8x128xf32>
    %170 = arith.addf %168, %169 : vector<8x128xf32>
    %171 = math.tanh %170 : vector<8x128xf32>
    %172 = arith.mulf %167, %171 : vector<8x128xf32>
    %c0_88 = arith.constant 0 : index
    %c0_89 = arith.constant 0 : index
    %173 = vector.load %arg7[%c0_88, %c0_89] : memref<8x128xf32, #tpu.memory_space<vmem>>, vector<8x128xf32>
    tpu.vector_store %arg7[%c0_88, %c0_89], %147 {strides = array<i32>} : memref<8x128xf32, #tpu.memory_space<vmem>>, vector<8x128xf32>,
    %c0_90 = arith.constant 0 : index
    %c0_91 = arith.constant 0 : index
    %174 = vector.load %arg8[%c0_90, %c0_91] : memref<8x128xf32, #tpu.memory_space<vmem>>, vector<8x128xf32>
    tpu.vector_store %arg8[%c0_90, %c0_91], %145 {strides = array<i32>} : memref<8x128xf32, #tpu.memory_space<vmem>>, vector<8x128xf32>,
    %c0_92 = arith.constant 0 : index
    %c0_93 = arith.constant 0 : index
    %175 = vector.load %arg9[%c0_92, %c0_93] : memref<8x128xf32, #tpu.memory_space<vmem>>, vector<8x128xf32>
    tpu.vector_store %arg9[%c0_92, %c0_93], %172 {strides = array<i32>} : memref<8x128xf32, #tpu.memory_space<vmem>>, vector<8x128xf32>,
    %c0_94 = arith.constant 0 : index
    %c0_95 = arith.constant 0 : index
    %176 = vector.load %arg10[%c0_94, %c0_95] : memref<8x128xf32, #tpu.memory_space<vmem>>, vector<8x128xf32>
    tpu.vector_store %arg10[%c0_94, %c0_95], %170 {strides = array<i32>} : memref<8x128xf32, #tpu.memory_space<vmem>>, vector<8x128xf32>,
    %c2_96 = arith.constant 2 : index
    %c0_97 = arith.constant 0 : index
    %c0_98 = arith.constant 0 : index
    %177 = vector.load %arg5[%c2_96, %c0_97, %c0_98] : memref<8x8x128xf32, #tpu.memory_space<vmem>>, vector<1x8x128xf32>
    %178 = vector.shape_cast %177 : vector<1x8x128xf32> to vector<8x128xf32>
    %179 = vector.shape_cast %147 : vector<8x128xf32> to vector<1x8x128xf32>
    tpu.vector_store %arg5[%c2_96, %c0_97, %c0_98], %179 {strides = array<i32>} : memref<8x8x128xf32, #tpu.memory_space<vmem>>, vector<1x8x128xf32>,
    %c5_99 = arith.constant 5 : index
    %c0_100 = arith.constant 0 : index
    %c0_101 = arith.constant 0 : index
    %180 = vector.load %arg6[%c5_99, %c0_100, %c0_101] : memref<8x8x128xf32, #tpu.memory_space<vmem>>, vector<1x8x128xf32>
    %181 = vector.shape_cast %180 : vector<1x8x128xf32> to vector<8x128xf32>
    %182 = vector.shape_cast %172 : vector<8x128xf32> to vector<1x8x128xf32>
    tpu.vector_store %arg6[%c5_99, %c0_100, %c0_101], %182 {strides = array<i32>} : memref<8x8x128xf32, #tpu.memory_space<vmem>>, vector<1x8x128xf32>,
    %c3 = arith.constant 3 : index
    %c0_102 = arith.constant 0 : index
    %c0_103 = arith.constant 0 : index
    %183 = vector.load %arg1[%c3, %c0_102, %c0_103] : memref<8x8x512xbf16, #tpu.memory_space<vmem>>, vector<1x8x512xbf16>
    %184 = vector.shape_cast %183 : vector<1x8x512xbf16> to vector<8x512xbf16>
    %c0_104 = arith.constant 0 : index
    %c0_105 = arith.constant 0 : index
    %185 = vector.load %arg7[%c0_104, %c0_105] : memref<8x128xf32, #tpu.memory_space<vmem>>, vector<8x128xf32>
    %c0_106 = arith.constant 0 : index
    %c0_107 = arith.constant 0 : index
    %186 = vector.load %arg8[%c0_106, %c0_107] : memref<8x128xf32, #tpu.memory_space<vmem>>, vector<8x128xf32>
    %187 = arith.extf %184 : vector<8x512xbf16> to vector<8x512xf32>
    %188 = arith.truncf %185 : vector<8x128xf32> to vector<8x128xbf16>
    %c0_108 = arith.constant 0 : index
    %c0_109 = arith.constant 0 : index
    %189 = vector.load %arg3[%c0_108, %c0_109] : memref<128x512xbf16, #tpu.memory_space<vmem>>, vector<128x512xbf16>
    %cst_110 = arith.constant dense<0.000000e+00> : vector<8x512xf32>
    %190 = tpu.matmul %188, %189, %cst_110 {dimension_numbers = #tpu.dot_dimension_numbers<[1], [0], [0], [1], [0, 0, 1, 1], [], []>} : vector<8x128xbf16>, vector<128x512xbf16>, vector<8x512xf32> -> vector<8x512xf32>
    %191 = arith.addf %187, %190 : vector<8x512xf32>
    %192 = vector.extract_strided_slice %191 {offsets = [0, 0], sizes = [8, 384], strides = [1, 1]} : vector<8x512xf32> to vector<8x384xf32>
    %193 = arith.negf %192 : vector<8x384xf32>
    %194 = math.exp %193 : vector<8x384xf32>
    %cst_111 = arith.constant 1.000000e+00 : f32
    %195 = vector.broadcast %cst_111 : f32 to vector<8x384xf32>
    %196 = arith.addf %195, %194 : vector<8x384xf32>
    %197 = arith.divf %195, %196 : vector<8x384xf32>
    %198 = vector.extract_strided_slice %191 {offsets = [0, 384], sizes = [8, 128], strides = [1, 1]} : vector<8x512xf32> to vector<8x128xf32>
    %199 = math.tanh %198 : vector<8x128xf32>
    %200 = vector.extract_strided_slice %197 {offsets = [0, 0], sizes = [8, 128], strides = [1, 1]} : vector<8x384xf32> to vector<8x128xf32>
    %201 = vector.extract_strided_slice %197 {offsets = [0, 128], sizes = [8, 128], strides = [1, 1]} : vector<8x384xf32> to vector<8x128xf32>
    %202 = vector.extract_strided_slice %197 {offsets = [0, 256], sizes = [8, 128], strides = [1, 1]} : vector<8x384xf32> to vector<8x128xf32>
    %203 = arith.mulf %201, %186 : vector<8x128xf32>
    %204 = arith.mulf %200, %199 : vector<8x128xf32>
    %205 = arith.addf %203, %204 : vector<8x128xf32>
    %206 = math.tanh %205 : vector<8x128xf32>
    %207 = arith.mulf %202, %206 : vector<8x128xf32>
    %c4 = arith.constant 4 : index
    %c0_112 = arith.constant 0 : index
    %c0_113 = arith.constant 0 : index
    %208 = vector.load %arg2[%c4, %c0_112, %c0_113] : memref<8x8x512xbf16, #tpu.memory_space<vmem>>, vector<1x8x512xbf16>
    %209 = vector.shape_cast %208 : vector<1x8x512xbf16> to vector<8x512xbf16>
    %c0_114 = arith.constant 0 : index
    %c0_115 = arith.constant 0 : index
    %210 = vector.load %arg9[%c0_114, %c0_115] : memref<8x128xf32, #tpu.memory_space<vmem>>, vector<8x128xf32>
    %c0_116 = arith.constant 0 : index
    %c0_117 = arith.constant 0 : index
    %211 = vector.load %arg10[%c0_116, %c0_117] : memref<8x128xf32, #tpu.memory_space<vmem>>, vector<8x128xf32>
    %212 = arith.extf %209 : vector<8x512xbf16> to vector<8x512xf32>
    %213 = arith.truncf %210 : vector<8x128xf32> to vector<8x128xbf16>
    %c0_118 = arith.constant 0 : index
    %c0_119 = arith.constant 0 : index
    %214 = vector.load %arg4[%c0_118, %c0_119] : memref<128x512xbf16, #tpu.memory_space<vmem>>, vector<128x512xbf16>
    %cst_120 = arith.constant dense<0.000000e+00> : vector<8x512xf32>
    %215 = tpu.matmul %213, %214, %cst_120 {dimension_numbers = #tpu.dot_dimension_numbers<[1], [0], [0], [1], [0, 0, 1, 1], [], []>} : vector<8x128xbf16>, vector<128x512xbf16>, vector<8x512xf32> -> vector<8x512xf32>
    %216 = arith.addf %212, %215 : vector<8x512xf32>
    %217 = vector.extract_strided_slice %216 {offsets = [0, 0], sizes = [8, 384], strides = [1, 1]} : vector<8x512xf32> to vector<8x384xf32>
    %218 = arith.negf %217 : vector<8x384xf32>
    %219 = math.exp %218 : vector<8x384xf32>
    %cst_121 = arith.constant 1.000000e+00 : f32
    %220 = vector.broadcast %cst_121 : f32 to vector<8x384xf32>
    %221 = arith.addf %220, %219 : vector<8x384xf32>
    %222 = arith.divf %220, %221 : vector<8x384xf32>
    %223 = vector.extract_strided_slice %216 {offsets = [0, 384], sizes = [8, 128], strides = [1, 1]} : vector<8x512xf32> to vector<8x128xf32>
    %224 = math.tanh %223 : vector<8x128xf32>
    %225 = vector.extract_strided_slice %222 {offsets = [0, 0], sizes = [8, 128], strides = [1, 1]} : vector<8x384xf32> to vector<8x128xf32>
    %226 = vector.extract_strided_slice %222 {offsets = [0, 128], sizes = [8, 128], strides = [1, 1]} : vector<8x384xf32> to vector<8x128xf32>
    %227 = vector.extract_strided_slice %222 {offsets = [0, 256], sizes = [8, 128], strides = [1, 1]} : vector<8x384xf32> to vector<8x128xf32>
    %228 = arith.mulf %226, %211 : vector<8x128xf32>
    %229 = arith.mulf %225, %224 : vector<8x128xf32>
    %230 = arith.addf %228, %229 : vector<8x128xf32>
    %231 = math.tanh %230 : vector<8x128xf32>
    %232 = arith.mulf %227, %231 : vector<8x128xf32>
    %c0_122 = arith.constant 0 : index
    %c0_123 = arith.constant 0 : index
    %233 = vector.load %arg7[%c0_122, %c0_123] : memref<8x128xf32, #tpu.memory_space<vmem>>, vector<8x128xf32>
    tpu.vector_store %arg7[%c0_122, %c0_123], %207 {strides = array<i32>} : memref<8x128xf32, #tpu.memory_space<vmem>>, vector<8x128xf32>,
    %c0_124 = arith.constant 0 : index
    %c0_125 = arith.constant 0 : index
    %234 = vector.load %arg8[%c0_124, %c0_125] : memref<8x128xf32, #tpu.memory_space<vmem>>, vector<8x128xf32>
    tpu.vector_store %arg8[%c0_124, %c0_125], %205 {strides = array<i32>} : memref<8x128xf32, #tpu.memory_space<vmem>>, vector<8x128xf32>,
    %c0_126 = arith.constant 0 : index
    %c0_127 = arith.constant 0 : index
    %235 = vector.load %arg9[%c0_126, %c0_127] : memref<8x128xf32, #tpu.memory_space<vmem>>, vector<8x128xf32>
    tpu.vector_store %arg9[%c0_126, %c0_127], %232 {strides = array<i32>} : memref<8x128xf32, #tpu.memory_space<vmem>>, vector<8x128xf32>,
    %c0_128 = arith.constant 0 : index
    %c0_129 = arith.constant 0 : index
    %236 = vector.load %arg10[%c0_128, %c0_129] : memref<8x128xf32, #tpu.memory_space<vmem>>, vector<8x128xf32>
    tpu.vector_store %arg10[%c0_128, %c0_129], %230 {strides = array<i32>} : memref<8x128xf32, #tpu.memory_space<vmem>>, vector<8x128xf32>,
    %c3_130 = arith.constant 3 : index
    %c0_131 = arith.constant 0 : index
    %c0_132 = arith.constant 0 : index
    %237 = vector.load %arg5[%c3_130, %c0_131, %c0_132] : memref<8x8x128xf32, #tpu.memory_space<vmem>>, vector<1x8x128xf32>
    %238 = vector.shape_cast %237 : vector<1x8x128xf32> to vector<8x128xf32>
    %239 = vector.shape_cast %207 : vector<8x128xf32> to vector<1x8x128xf32>
    tpu.vector_store %arg5[%c3_130, %c0_131, %c0_132], %239 {strides = array<i32>} : memref<8x8x128xf32, #tpu.memory_space<vmem>>, vector<1x8x128xf32>,
    %c4_133 = arith.constant 4 : index
    %c0_134 = arith.constant 0 : index
    %c0_135 = arith.constant 0 : index
    %240 = vector.load %arg6[%c4_133, %c0_134, %c0_135] : memref<8x8x128xf32, #tpu.memory_space<vmem>>, vector<1x8x128xf32>
    %241 = vector.shape_cast %240 : vector<1x8x128xf32> to vector<8x128xf32>
    %242 = vector.shape_cast %232 : vector<8x128xf32> to vector<1x8x128xf32>
    tpu.vector_store %arg6[%c4_133, %c0_134, %c0_135], %242 {strides = array<i32>} : memref<8x8x128xf32, #tpu.memory_space<vmem>>, vector<1x8x128xf32>,
    %c4_136 = arith.constant 4 : index
    %c0_137 = arith.constant 0 : index
    %c0_138 = arith.constant 0 : index
    %243 = vector.load %arg1[%c4_136, %c0_137, %c0_138] : memref<8x8x512xbf16, #tpu.memory_space<vmem>>, vector<1x8x512xbf16>
    %244 = vector.shape_cast %243 : vector<1x8x512xbf16> to vector<8x512xbf16>
    %c0_139 = arith.constant 0 : index
    %c0_140 = arith.constant 0 : index
    %245 = vector.load %arg7[%c0_139, %c0_140] : memref<8x128xf32, #tpu.memory_space<vmem>>, vector<8x128xf32>
    %c0_141 = arith.constant 0 : index
    %c0_142 = arith.constant 0 : index
    %246 = vector.load %arg8[%c0_141, %c0_142] : memref<8x128xf32, #tpu.memory_space<vmem>>, vector<8x128xf32>
    %247 = arith.extf %244 : vector<8x512xbf16> to vector<8x512xf32>
    %248 = arith.truncf %245 : vector<8x128xf32> to vector<8x128xbf16>
    %c0_143 = arith.constant 0 : index
    %c0_144 = arith.constant 0 : index
    %249 = vector.load %arg3[%c0_143, %c0_144] : memref<128x512xbf16, #tpu.memory_space<vmem>>, vector<128x512xbf16>
    %cst_145 = arith.constant dense<0.000000e+00> : vector<8x512xf32>
    %250 = tpu.matmul %248, %249, %cst_145 {dimension_numbers = #tpu.dot_dimension_numbers<[1], [0], [0], [1], [0, 0, 1, 1], [], []>} : vector<8x128xbf16>, vector<128x512xbf16>, vector<8x512xf32> -> vector<8x512xf32>
    %251 = arith.addf %247, %250 : vector<8x512xf32>
    %252 = vector.extract_strided_slice %251 {offsets = [0, 0], sizes = [8, 384], strides = [1, 1]} : vector<8x512xf32> to vector<8x384xf32>
    %253 = arith.negf %252 : vector<8x384xf32>
    %254 = math.exp %253 : vector<8x384xf32>
    %cst_146 = arith.constant 1.000000e+00 : f32
    %255 = vector.broadcast %cst_146 : f32 to vector<8x384xf32>
    %256 = arith.addf %255, %254 : vector<8x384xf32>
    %257 = arith.divf %255, %256 : vector<8x384xf32>
    %258 = vector.extract_strided_slice %251 {offsets = [0, 384], sizes = [8, 128], strides = [1, 1]} : vector<8x512xf32> to vector<8x128xf32>
    %259 = math.tanh %258 : vector<8x128xf32>
    %260 = vector.extract_strided_slice %257 {offsets = [0, 0], sizes = [8, 128], strides = [1, 1]} : vector<8x384xf32> to vector<8x128xf32>
    %261 = vector.extract_strided_slice %257 {offsets = [0, 128], sizes = [8, 128], strides = [1, 1]} : vector<8x384xf32> to vector<8x128xf32>
    %262 = vector.extract_strided_slice %257 {offsets = [0, 256], sizes = [8, 128], strides = [1, 1]} : vector<8x384xf32> to vector<8x128xf32>
    %263 = arith.mulf %261, %246 : vector<8x128xf32>
    %264 = arith.mulf %260, %259 : vector<8x128xf32>
    %265 = arith.addf %263, %264 : vector<8x128xf32>
    %266 = math.tanh %265 : vector<8x128xf32>
    %267 = arith.mulf %262, %266 : vector<8x128xf32>
    %c3_147 = arith.constant 3 : index
    %c0_148 = arith.constant 0 : index
    %c0_149 = arith.constant 0 : index
    %268 = vector.load %arg2[%c3_147, %c0_148, %c0_149] : memref<8x8x512xbf16, #tpu.memory_space<vmem>>, vector<1x8x512xbf16>
    %269 = vector.shape_cast %268 : vector<1x8x512xbf16> to vector<8x512xbf16>
    %c0_150 = arith.constant 0 : index
    %c0_151 = arith.constant 0 : index
    %270 = vector.load %arg9[%c0_150, %c0_151] : memref<8x128xf32, #tpu.memory_space<vmem>>, vector<8x128xf32>
    %c0_152 = arith.constant 0 : index
    %c0_153 = arith.constant 0 : index
    %271 = vector.load %arg10[%c0_152, %c0_153] : memref<8x128xf32, #tpu.memory_space<vmem>>, vector<8x128xf32>
    %272 = arith.extf %269 : vector<8x512xbf16> to vector<8x512xf32>
    %273 = arith.truncf %270 : vector<8x128xf32> to vector<8x128xbf16>
    %c0_154 = arith.constant 0 : index
    %c0_155 = arith.constant 0 : index
    %274 = vector.load %arg4[%c0_154, %c0_155] : memref<128x512xbf16, #tpu.memory_space<vmem>>, vector<128x512xbf16>
    %cst_156 = arith.constant dense<0.000000e+00> : vector<8x512xf32>
    %275 = tpu.matmul %273, %274, %cst_156 {dimension_numbers = #tpu.dot_dimension_numbers<[1], [0], [0], [1], [0, 0, 1, 1], [], []>} : vector<8x128xbf16>, vector<128x512xbf16>, vector<8x512xf32> -> vector<8x512xf32>
    %276 = arith.addf %272, %275 : vector<8x512xf32>
    %277 = vector.extract_strided_slice %276 {offsets = [0, 0], sizes = [8, 384], strides = [1, 1]} : vector<8x512xf32> to vector<8x384xf32>
    %278 = arith.negf %277 : vector<8x384xf32>
    %279 = math.exp %278 : vector<8x384xf32>
    %cst_157 = arith.constant 1.000000e+00 : f32
    %280 = vector.broadcast %cst_157 : f32 to vector<8x384xf32>
    %281 = arith.addf %280, %279 : vector<8x384xf32>
    %282 = arith.divf %280, %281 : vector<8x384xf32>
    %283 = vector.extract_strided_slice %276 {offsets = [0, 384], sizes = [8, 128], strides = [1, 1]} : vector<8x512xf32> to vector<8x128xf32>
    %284 = math.tanh %283 : vector<8x128xf32>
    %285 = vector.extract_strided_slice %282 {offsets = [0, 0], sizes = [8, 128], strides = [1, 1]} : vector<8x384xf32> to vector<8x128xf32>
    %286 = vector.extract_strided_slice %282 {offsets = [0, 128], sizes = [8, 128], strides = [1, 1]} : vector<8x384xf32> to vector<8x128xf32>
    %287 = vector.extract_strided_slice %282 {offsets = [0, 256], sizes = [8, 128], strides = [1, 1]} : vector<8x384xf32> to vector<8x128xf32>
    %288 = arith.mulf %286, %271 : vector<8x128xf32>
    %289 = arith.mulf %285, %284 : vector<8x128xf32>
    %290 = arith.addf %288, %289 : vector<8x128xf32>
    %291 = math.tanh %290 : vector<8x128xf32>
    %292 = arith.mulf %287, %291 : vector<8x128xf32>
    %c0_158 = arith.constant 0 : index
    %c0_159 = arith.constant 0 : index
    %293 = vector.load %arg7[%c0_158, %c0_159] : memref<8x128xf32, #tpu.memory_space<vmem>>, vector<8x128xf32>
    tpu.vector_store %arg7[%c0_158, %c0_159], %267 {strides = array<i32>} : memref<8x128xf32, #tpu.memory_space<vmem>>, vector<8x128xf32>,
    %c0_160 = arith.constant 0 : index
    %c0_161 = arith.constant 0 : index
    %294 = vector.load %arg8[%c0_160, %c0_161] : memref<8x128xf32, #tpu.memory_space<vmem>>, vector<8x128xf32>
    tpu.vector_store %arg8[%c0_160, %c0_161], %265 {strides = array<i32>} : memref<8x128xf32, #tpu.memory_space<vmem>>, vector<8x128xf32>,
    %c0_162 = arith.constant 0 : index
    %c0_163 = arith.constant 0 : index
    %295 = vector.load %arg9[%c0_162, %c0_163] : memref<8x128xf32, #tpu.memory_space<vmem>>, vector<8x128xf32>
    tpu.vector_store %arg9[%c0_162, %c0_163], %292 {strides = array<i32>} : memref<8x128xf32, #tpu.memory_space<vmem>>, vector<8x128xf32>,
    %c0_164 = arith.constant 0 : index
    %c0_165 = arith.constant 0 : index
    %296 = vector.load %arg10[%c0_164, %c0_165] : memref<8x128xf32, #tpu.memory_space<vmem>>, vector<8x128xf32>
    tpu.vector_store %arg10[%c0_164, %c0_165], %290 {strides = array<i32>} : memref<8x128xf32, #tpu.memory_space<vmem>>, vector<8x128xf32>,
    %c4_166 = arith.constant 4 : index
    %c0_167 = arith.constant 0 : index
    %c0_168 = arith.constant 0 : index
    %297 = vector.load %arg5[%c4_166, %c0_167, %c0_168] : memref<8x8x128xf32, #tpu.memory_space<vmem>>, vector<1x8x128xf32>
    %298 = vector.shape_cast %297 : vector<1x8x128xf32> to vector<8x128xf32>
    %299 = vector.shape_cast %267 : vector<8x128xf32> to vector<1x8x128xf32>
    tpu.vector_store %arg5[%c4_166, %c0_167, %c0_168], %299 {strides = array<i32>} : memref<8x8x128xf32, #tpu.memory_space<vmem>>, vector<1x8x128xf32>,
    %c3_169 = arith.constant 3 : index
    %c0_170 = arith.constant 0 : index
    %c0_171 = arith.constant 0 : index
    %300 = vector.load %arg6[%c3_169, %c0_170, %c0_171] : memref<8x8x128xf32, #tpu.memory_space<vmem>>, vector<1x8x128xf32>
    %301 = vector.shape_cast %300 : vector<1x8x128xf32> to vector<8x128xf32>
    %302 = vector.shape_cast %292 : vector<8x128xf32> to vector<1x8x128xf32>
    tpu.vector_store %arg6[%c3_169, %c0_170, %c0_171], %302 {strides = array<i32>} : memref<8x8x128xf32, #tpu.memory_space<vmem>>, vector<1x8x128xf32>,
    %c5_172 = arith.constant 5 : index
    %c0_173 = arith.constant 0 : index
    %c0_174 = arith.constant 0 : index
    %303 = vector.load %arg1[%c5_172, %c0_173, %c0_174] : memref<8x8x512xbf16, #tpu.memory_space<vmem>>, vector<1x8x512xbf16>
    %304 = vector.shape_cast %303 : vector<1x8x512xbf16> to vector<8x512xbf16>
    %c0_175 = arith.constant 0 : index
    %c0_176 = arith.constant 0 : index
    %305 = vector.load %arg7[%c0_175, %c0_176] : memref<8x128xf32, #tpu.memory_space<vmem>>, vector<8x128xf32>
    %c0_177 = arith.constant 0 : index
    %c0_178 = arith.constant 0 : index
    %306 = vector.load %arg8[%c0_177, %c0_178] : memref<8x128xf32, #tpu.memory_space<vmem>>, vector<8x128xf32>
    %307 = arith.extf %304 : vector<8x512xbf16> to vector<8x512xf32>
    %308 = arith.truncf %305 : vector<8x128xf32> to vector<8x128xbf16>
    %c0_179 = arith.constant 0 : index
    %c0_180 = arith.constant 0 : index
    %309 = vector.load %arg3[%c0_179, %c0_180] : memref<128x512xbf16, #tpu.memory_space<vmem>>, vector<128x512xbf16>
    %cst_181 = arith.constant dense<0.000000e+00> : vector<8x512xf32>
    %310 = tpu.matmul %308, %309, %cst_181 {dimension_numbers = #tpu.dot_dimension_numbers<[1], [0], [0], [1], [0, 0, 1, 1], [], []>} : vector<8x128xbf16>, vector<128x512xbf16>, vector<8x512xf32> -> vector<8x512xf32>
    %311 = arith.addf %307, %310 : vector<8x512xf32>
    %312 = vector.extract_strided_slice %311 {offsets = [0, 0], sizes = [8, 384], strides = [1, 1]} : vector<8x512xf32> to vector<8x384xf32>
    %313 = arith.negf %312 : vector<8x384xf32>
    %314 = math.exp %313 : vector<8x384xf32>
    %cst_182 = arith.constant 1.000000e+00 : f32
    %315 = vector.broadcast %cst_182 : f32 to vector<8x384xf32>
    %316 = arith.addf %315, %314 : vector<8x384xf32>
    %317 = arith.divf %315, %316 : vector<8x384xf32>
    %318 = vector.extract_strided_slice %311 {offsets = [0, 384], sizes = [8, 128], strides = [1, 1]} : vector<8x512xf32> to vector<8x128xf32>
    %319 = math.tanh %318 : vector<8x128xf32>
    %320 = vector.extract_strided_slice %317 {offsets = [0, 0], sizes = [8, 128], strides = [1, 1]} : vector<8x384xf32> to vector<8x128xf32>
    %321 = vector.extract_strided_slice %317 {offsets = [0, 128], sizes = [8, 128], strides = [1, 1]} : vector<8x384xf32> to vector<8x128xf32>
    %322 = vector.extract_strided_slice %317 {offsets = [0, 256], sizes = [8, 128], strides = [1, 1]} : vector<8x384xf32> to vector<8x128xf32>
    %323 = arith.mulf %321, %306 : vector<8x128xf32>
    %324 = arith.mulf %320, %319 : vector<8x128xf32>
    %325 = arith.addf %323, %324 : vector<8x128xf32>
    %326 = math.tanh %325 : vector<8x128xf32>
    %327 = arith.mulf %322, %326 : vector<8x128xf32>
    %c2_183 = arith.constant 2 : index
    %c0_184 = arith.constant 0 : index
    %c0_185 = arith.constant 0 : index
    %328 = vector.load %arg2[%c2_183, %c0_184, %c0_185] : memref<8x8x512xbf16, #tpu.memory_space<vmem>>, vector<1x8x512xbf16>
    %329 = vector.shape_cast %328 : vector<1x8x512xbf16> to vector<8x512xbf16>
    %c0_186 = arith.constant 0 : index
    %c0_187 = arith.constant 0 : index
    %330 = vector.load %arg9[%c0_186, %c0_187] : memref<8x128xf32, #tpu.memory_space<vmem>>, vector<8x128xf32>
    %c0_188 = arith.constant 0 : index
    %c0_189 = arith.constant 0 : index
    %331 = vector.load %arg10[%c0_188, %c0_189] : memref<8x128xf32, #tpu.memory_space<vmem>>, vector<8x128xf32>
    %332 = arith.extf %329 : vector<8x512xbf16> to vector<8x512xf32>
    %333 = arith.truncf %330 : vector<8x128xf32> to vector<8x128xbf16>
    %c0_190 = arith.constant 0 : index
    %c0_191 = arith.constant 0 : index
    %334 = vector.load %arg4[%c0_190, %c0_191] : memref<128x512xbf16, #tpu.memory_space<vmem>>, vector<128x512xbf16>
    %cst_192 = arith.constant dense<0.000000e+00> : vector<8x512xf32>
    %335 = tpu.matmul %333, %334, %cst_192 {dimension_numbers = #tpu.dot_dimension_numbers<[1], [0], [0], [1], [0, 0, 1, 1], [], []>} : vector<8x128xbf16>, vector<128x512xbf16>, vector<8x512xf32> -> vector<8x512xf32>
    %336 = arith.addf %332, %335 : vector<8x512xf32>
    %337 = vector.extract_strided_slice %336 {offsets = [0, 0], sizes = [8, 384], strides = [1, 1]} : vector<8x512xf32> to vector<8x384xf32>
    %338 = arith.negf %337 : vector<8x384xf32>
    %339 = math.exp %338 : vector<8x384xf32>
    %cst_193 = arith.constant 1.000000e+00 : f32
    %340 = vector.broadcast %cst_193 : f32 to vector<8x384xf32>
    %341 = arith.addf %340, %339 : vector<8x384xf32>
    %342 = arith.divf %340, %341 : vector<8x384xf32>
    %343 = vector.extract_strided_slice %336 {offsets = [0, 384], sizes = [8, 128], strides = [1, 1]} : vector<8x512xf32> to vector<8x128xf32>
    %344 = math.tanh %343 : vector<8x128xf32>
    %345 = vector.extract_strided_slice %342 {offsets = [0, 0], sizes = [8, 128], strides = [1, 1]} : vector<8x384xf32> to vector<8x128xf32>
    %346 = vector.extract_strided_slice %342 {offsets = [0, 128], sizes = [8, 128], strides = [1, 1]} : vector<8x384xf32> to vector<8x128xf32>
    %347 = vector.extract_strided_slice %342 {offsets = [0, 256], sizes = [8, 128], strides = [1, 1]} : vector<8x384xf32> to vector<8x128xf32>
    %348 = arith.mulf %346, %331 : vector<8x128xf32>
    %349 = arith.mulf %345, %344 : vector<8x128xf32>
    %350 = arith.addf %348, %349 : vector<8x128xf32>
    %351 = math.tanh %350 : vector<8x128xf32>
    %352 = arith.mulf %347, %351 : vector<8x128xf32>
    %c0_194 = arith.constant 0 : index
    %c0_195 = arith.constant 0 : index
    %353 = vector.load %arg7[%c0_194, %c0_195] : memref<8x128xf32, #tpu.memory_space<vmem>>, vector<8x128xf32>
    tpu.vector_store %arg7[%c0_194, %c0_195], %327 {strides = array<i32>} : memref<8x128xf32, #tpu.memory_space<vmem>>, vector<8x128xf32>,
    %c0_196 = arith.constant 0 : index
    %c0_197 = arith.constant 0 : index
    %354 = vector.load %arg8[%c0_196, %c0_197] : memref<8x128xf32, #tpu.memory_space<vmem>>, vector<8x128xf32>
    tpu.vector_store %arg8[%c0_196, %c0_197], %325 {strides = array<i32>} : memref<8x128xf32, #tpu.memory_space<vmem>>, vector<8x128xf32>,
    %c0_198 = arith.constant 0 : index
    %c0_199 = arith.constant 0 : index
    %355 = vector.load %arg9[%c0_198, %c0_199] : memref<8x128xf32, #tpu.memory_space<vmem>>, vector<8x128xf32>
    tpu.vector_store %arg9[%c0_198, %c0_199], %352 {strides = array<i32>} : memref<8x128xf32, #tpu.memory_space<vmem>>, vector<8x128xf32>,
    %c0_200 = arith.constant 0 : index
    %c0_201 = arith.constant 0 : index
    %356 = vector.load %arg10[%c0_200, %c0_201] : memref<8x128xf32, #tpu.memory_space<vmem>>, vector<8x128xf32>
    tpu.vector_store %arg10[%c0_200, %c0_201], %350 {strides = array<i32>} : memref<8x128xf32, #tpu.memory_space<vmem>>, vector<8x128xf32>,
    %c5_202 = arith.constant 5 : index
    %c0_203 = arith.constant 0 : index
    %c0_204 = arith.constant 0 : index
    %357 = vector.load %arg5[%c5_202, %c0_203, %c0_204] : memref<8x8x128xf32, #tpu.memory_space<vmem>>, vector<1x8x128xf32>
    %358 = vector.shape_cast %357 : vector<1x8x128xf32> to vector<8x128xf32>
    %359 = vector.shape_cast %327 : vector<8x128xf32> to vector<1x8x128xf32>
    tpu.vector_store %arg5[%c5_202, %c0_203, %c0_204], %359 {strides = array<i32>} : memref<8x8x128xf32, #tpu.memory_space<vmem>>, vector<1x8x128xf32>,
    %c2_205 = arith.constant 2 : index
    %c0_206 = arith.constant 0 : index
    %c0_207 = arith.constant 0 : index
    %360 = vector.load %arg6[%c2_205, %c0_206, %c0_207] : memref<8x8x128xf32, #tpu.memory_space<vmem>>, vector<1x8x128xf32>
    %361 = vector.shape_cast %360 : vector<1x8x128xf32> to vector<8x128xf32>
    %362 = vector.shape_cast %352 : vector<8x128xf32> to vector<1x8x128xf32>
    tpu.vector_store %arg6[%c2_205, %c0_206, %c0_207], %362 {strides = array<i32>} : memref<8x8x128xf32, #tpu.memory_space<vmem>>, vector<1x8x128xf32>,
    %c6_208 = arith.constant 6 : index
    %c0_209 = arith.constant 0 : index
    %c0_210 = arith.constant 0 : index
    %363 = vector.load %arg1[%c6_208, %c0_209, %c0_210] : memref<8x8x512xbf16, #tpu.memory_space<vmem>>, vector<1x8x512xbf16>
    %364 = vector.shape_cast %363 : vector<1x8x512xbf16> to vector<8x512xbf16>
    %c0_211 = arith.constant 0 : index
    %c0_212 = arith.constant 0 : index
    %365 = vector.load %arg7[%c0_211, %c0_212] : memref<8x128xf32, #tpu.memory_space<vmem>>, vector<8x128xf32>
    %c0_213 = arith.constant 0 : index
    %c0_214 = arith.constant 0 : index
    %366 = vector.load %arg8[%c0_213, %c0_214] : memref<8x128xf32, #tpu.memory_space<vmem>>, vector<8x128xf32>
    %367 = arith.extf %364 : vector<8x512xbf16> to vector<8x512xf32>
    %368 = arith.truncf %365 : vector<8x128xf32> to vector<8x128xbf16>
    %c0_215 = arith.constant 0 : index
    %c0_216 = arith.constant 0 : index
    %369 = vector.load %arg3[%c0_215, %c0_216] : memref<128x512xbf16, #tpu.memory_space<vmem>>, vector<128x512xbf16>
    %cst_217 = arith.constant dense<0.000000e+00> : vector<8x512xf32>
    %370 = tpu.matmul %368, %369, %cst_217 {dimension_numbers = #tpu.dot_dimension_numbers<[1], [0], [0], [1], [0, 0, 1, 1], [], []>} : vector<8x128xbf16>, vector<128x512xbf16>, vector<8x512xf32> -> vector<8x512xf32>
    %371 = arith.addf %367, %370 : vector<8x512xf32>
    %372 = vector.extract_strided_slice %371 {offsets = [0, 0], sizes = [8, 384], strides = [1, 1]} : vector<8x512xf32> to vector<8x384xf32>
    %373 = arith.negf %372 : vector<8x384xf32>
    %374 = math.exp %373 : vector<8x384xf32>
    %cst_218 = arith.constant 1.000000e+00 : f32
    %375 = vector.broadcast %cst_218 : f32 to vector<8x384xf32>
    %376 = arith.addf %375, %374 : vector<8x384xf32>
    %377 = arith.divf %375, %376 : vector<8x384xf32>
    %378 = vector.extract_strided_slice %371 {offsets = [0, 384], sizes = [8, 128], strides = [1, 1]} : vector<8x512xf32> to vector<8x128xf32>
    %379 = math.tanh %378 : vector<8x128xf32>
    %380 = vector.extract_strided_slice %377 {offsets = [0, 0], sizes = [8, 128], strides = [1, 1]} : vector<8x384xf32> to vector<8x128xf32>
    %381 = vector.extract_strided_slice %377 {offsets = [0, 128], sizes = [8, 128], strides = [1, 1]} : vector<8x384xf32> to vector<8x128xf32>
    %382 = vector.extract_strided_slice %377 {offsets = [0, 256], sizes = [8, 128], strides = [1, 1]} : vector<8x384xf32> to vector<8x128xf32>
    %383 = arith.mulf %381, %366 : vector<8x128xf32>
    %384 = arith.mulf %380, %379 : vector<8x128xf32>
    %385 = arith.addf %383, %384 : vector<8x128xf32>
    %386 = math.tanh %385 : vector<8x128xf32>
    %387 = arith.mulf %382, %386 : vector<8x128xf32>
    %c1_219 = arith.constant 1 : index
    %c0_220 = arith.constant 0 : index
    %c0_221 = arith.constant 0 : index
    %388 = vector.load %arg2[%c1_219, %c0_220, %c0_221] : memref<8x8x512xbf16, #tpu.memory_space<vmem>>, vector<1x8x512xbf16>
    %389 = vector.shape_cast %388 : vector<1x8x512xbf16> to vector<8x512xbf16>
    %c0_222 = arith.constant 0 : index
    %c0_223 = arith.constant 0 : index
    %390 = vector.load %arg9[%c0_222, %c0_223] : memref<8x128xf32, #tpu.memory_space<vmem>>, vector<8x128xf32>
    %c0_224 = arith.constant 0 : index
    %c0_225 = arith.constant 0 : index
    %391 = vector.load %arg10[%c0_224, %c0_225] : memref<8x128xf32, #tpu.memory_space<vmem>>, vector<8x128xf32>
    %392 = arith.extf %389 : vector<8x512xbf16> to vector<8x512xf32>
    %393 = arith.truncf %390 : vector<8x128xf32> to vector<8x128xbf16>
    %c0_226 = arith.constant 0 : index
    %c0_227 = arith.constant 0 : index
    %394 = vector.load %arg4[%c0_226, %c0_227] : memref<128x512xbf16, #tpu.memory_space<vmem>>, vector<128x512xbf16>
    %cst_228 = arith.constant dense<0.000000e+00> : vector<8x512xf32>
    %395 = tpu.matmul %393, %394, %cst_228 {dimension_numbers = #tpu.dot_dimension_numbers<[1], [0], [0], [1], [0, 0, 1, 1], [], []>} : vector<8x128xbf16>, vector<128x512xbf16>, vector<8x512xf32> -> vector<8x512xf32>
    %396 = arith.addf %392, %395 : vector<8x512xf32>
    %397 = vector.extract_strided_slice %396 {offsets = [0, 0], sizes = [8, 384], strides = [1, 1]} : vector<8x512xf32> to vector<8x384xf32>
    %398 = arith.negf %397 : vector<8x384xf32>
    %399 = math.exp %398 : vector<8x384xf32>
    %cst_229 = arith.constant 1.000000e+00 : f32
    %400 = vector.broadcast %cst_229 : f32 to vector<8x384xf32>
    %401 = arith.addf %400, %399 : vector<8x384xf32>
    %402 = arith.divf %400, %401 : vector<8x384xf32>
    %403 = vector.extract_strided_slice %396 {offsets = [0, 384], sizes = [8, 128], strides = [1, 1]} : vector<8x512xf32> to vector<8x128xf32>
    %404 = math.tanh %403 : vector<8x128xf32>
    %405 = vector.extract_strided_slice %402 {offsets = [0, 0], sizes = [8, 128], strides = [1, 1]} : vector<8x384xf32> to vector<8x128xf32>
    %406 = vector.extract_strided_slice %402 {offsets = [0, 128], sizes = [8, 128], strides = [1, 1]} : vector<8x384xf32> to vector<8x128xf32>
    %407 = vector.extract_strided_slice %402 {offsets = [0, 256], sizes = [8, 128], strides = [1, 1]} : vector<8x384xf32> to vector<8x128xf32>
    %408 = arith.mulf %406, %391 : vector<8x128xf32>
    %409 = arith.mulf %405, %404 : vector<8x128xf32>
    %410 = arith.addf %408, %409 : vector<8x128xf32>
    %411 = math.tanh %410 : vector<8x128xf32>
    %412 = arith.mulf %407, %411 : vector<8x128xf32>
    %c0_230 = arith.constant 0 : index
    %c0_231 = arith.constant 0 : index
    %413 = vector.load %arg7[%c0_230, %c0_231] : memref<8x128xf32, #tpu.memory_space<vmem>>, vector<8x128xf32>
    tpu.vector_store %arg7[%c0_230, %c0_231], %387 {strides = array<i32>} : memref<8x128xf32, #tpu.memory_space<vmem>>, vector<8x128xf32>,
    %c0_232 = arith.constant 0 : index
    %c0_233 = arith.constant 0 : index
    %414 = vector.load %arg8[%c0_232, %c0_233] : memref<8x128xf32, #tpu.memory_space<vmem>>, vector<8x128xf32>
    tpu.vector_store %arg8[%c0_232, %c0_233], %385 {strides = array<i32>} : memref<8x128xf32, #tpu.memory_space<vmem>>, vector<8x128xf32>,
    %c0_234 = arith.constant 0 : index
    %c0_235 = arith.constant 0 : index
    %415 = vector.load %arg9[%c0_234, %c0_235] : memref<8x128xf32, #tpu.memory_space<vmem>>, vector<8x128xf32>
    tpu.vector_store %arg9[%c0_234, %c0_235], %412 {strides = array<i32>} : memref<8x128xf32, #tpu.memory_space<vmem>>, vector<8x128xf32>,
    %c0_236 = arith.constant 0 : index
    %c0_237 = arith.constant 0 : index
    %416 = vector.load %arg10[%c0_236, %c0_237] : memref<8x128xf32, #tpu.memory_space<vmem>>, vector<8x128xf32>
    tpu.vector_store %arg10[%c0_236, %c0_237], %410 {strides = array<i32>} : memref<8x128xf32, #tpu.memory_space<vmem>>, vector<8x128xf32>,
    %c6_238 = arith.constant 6 : index
    %c0_239 = arith.constant 0 : index
    %c0_240 = arith.constant 0 : index
    %417 = vector.load %arg5[%c6_238, %c0_239, %c0_240] : memref<8x8x128xf32, #tpu.memory_space<vmem>>, vector<1x8x128xf32>
    %418 = vector.shape_cast %417 : vector<1x8x128xf32> to vector<8x128xf32>
    %419 = vector.shape_cast %387 : vector<8x128xf32> to vector<1x8x128xf32>
    tpu.vector_store %arg5[%c6_238, %c0_239, %c0_240], %419 {strides = array<i32>} : memref<8x8x128xf32, #tpu.memory_space<vmem>>, vector<1x8x128xf32>,
    %c1_241 = arith.constant 1 : index
    %c0_242 = arith.constant 0 : index
    %c0_243 = arith.constant 0 : index
    %420 = vector.load %arg6[%c1_241, %c0_242, %c0_243] : memref<8x8x128xf32, #tpu.memory_space<vmem>>, vector<1x8x128xf32>
    %421 = vector.shape_cast %420 : vector<1x8x128xf32> to vector<8x128xf32>
    %422 = vector.shape_cast %412 : vector<8x128xf32> to vector<1x8x128xf32>
    tpu.vector_store %arg6[%c1_241, %c0_242, %c0_243], %422 {strides = array<i32>} : memref<8x8x128xf32, #tpu.memory_space<vmem>>, vector<1x8x128xf32>,
    %c7_244 = arith.constant 7 : index
    %c0_245 = arith.constant 0 : index
    %c0_246 = arith.constant 0 : index
    %423 = vector.load %arg1[%c7_244, %c0_245, %c0_246] : memref<8x8x512xbf16, #tpu.memory_space<vmem>>, vector<1x8x512xbf16>
    %424 = vector.shape_cast %423 : vector<1x8x512xbf16> to vector<8x512xbf16>
    %c0_247 = arith.constant 0 : index
    %c0_248 = arith.constant 0 : index
    %425 = vector.load %arg7[%c0_247, %c0_248] : memref<8x128xf32, #tpu.memory_space<vmem>>, vector<8x128xf32>
    %c0_249 = arith.constant 0 : index
    %c0_250 = arith.constant 0 : index
    %426 = vector.load %arg8[%c0_249, %c0_250] : memref<8x128xf32, #tpu.memory_space<vmem>>, vector<8x128xf32>
    %427 = arith.extf %424 : vector<8x512xbf16> to vector<8x512xf32>
    %428 = arith.truncf %425 : vector<8x128xf32> to vector<8x128xbf16>
    %c0_251 = arith.constant 0 : index
    %c0_252 = arith.constant 0 : index
    %429 = vector.load %arg3[%c0_251, %c0_252] : memref<128x512xbf16, #tpu.memory_space<vmem>>, vector<128x512xbf16>
    %cst_253 = arith.constant dense<0.000000e+00> : vector<8x512xf32>
    %430 = tpu.matmul %428, %429, %cst_253 {dimension_numbers = #tpu.dot_dimension_numbers<[1], [0], [0], [1], [0, 0, 1, 1], [], []>} : vector<8x128xbf16>, vector<128x512xbf16>, vector<8x512xf32> -> vector<8x512xf32>
    %431 = arith.addf %427, %430 : vector<8x512xf32>
    %432 = vector.extract_strided_slice %431 {offsets = [0, 0], sizes = [8, 384], strides = [1, 1]} : vector<8x512xf32> to vector<8x384xf32>
    %433 = arith.negf %432 : vector<8x384xf32>
    %434 = math.exp %433 : vector<8x384xf32>
    %cst_254 = arith.constant 1.000000e+00 : f32
    %435 = vector.broadcast %cst_254 : f32 to vector<8x384xf32>
    %436 = arith.addf %435, %434 : vector<8x384xf32>
    %437 = arith.divf %435, %436 : vector<8x384xf32>
    %438 = vector.extract_strided_slice %431 {offsets = [0, 384], sizes = [8, 128], strides = [1, 1]} : vector<8x512xf32> to vector<8x128xf32>
    %439 = math.tanh %438 : vector<8x128xf32>
    %440 = vector.extract_strided_slice %437 {offsets = [0, 0], sizes = [8, 128], strides = [1, 1]} : vector<8x384xf32> to vector<8x128xf32>
    %441 = vector.extract_strided_slice %437 {offsets = [0, 128], sizes = [8, 128], strides = [1, 1]} : vector<8x384xf32> to vector<8x128xf32>
    %442 = vector.extract_strided_slice %437 {offsets = [0, 256], sizes = [8, 128], strides = [1, 1]} : vector<8x384xf32> to vector<8x128xf32>
    %443 = arith.mulf %441, %426 : vector<8x128xf32>
    %444 = arith.mulf %440, %439 : vector<8x128xf32>
    %445 = arith.addf %443, %444 : vector<8x128xf32>
    %446 = math.tanh %445 : vector<8x128xf32>
    %447 = arith.mulf %442, %446 : vector<8x128xf32>
    %c0_255 = arith.constant 0 : index
    %c0_256 = arith.constant 0 : index
    %c0_257 = arith.constant 0 : index
    %448 = vector.load %arg2[%c0_255, %c0_256, %c0_257] : memref<8x8x512xbf16, #tpu.memory_space<vmem>>, vector<1x8x512xbf16>
    %449 = vector.shape_cast %448 : vector<1x8x512xbf16> to vector<8x512xbf16>
    %c0_258 = arith.constant 0 : index
    %c0_259 = arith.constant 0 : index
    %450 = vector.load %arg9[%c0_258, %c0_259] : memref<8x128xf32, #tpu.memory_space<vmem>>, vector<8x128xf32>
    %c0_260 = arith.constant 0 : index
    %c0_261 = arith.constant 0 : index
    %451 = vector.load %arg10[%c0_260, %c0_261] : memref<8x128xf32, #tpu.memory_space<vmem>>, vector<8x128xf32>
    %452 = arith.extf %449 : vector<8x512xbf16> to vector<8x512xf32>
    %453 = arith.truncf %450 : vector<8x128xf32> to vector<8x128xbf16>
    %c0_262 = arith.constant 0 : index
    %c0_263 = arith.constant 0 : index
    %454 = vector.load %arg4[%c0_262, %c0_263] : memref<128x512xbf16, #tpu.memory_space<vmem>>, vector<128x512xbf16>
    %cst_264 = arith.constant dense<0.000000e+00> : vector<8x512xf32>
    %455 = tpu.matmul %453, %454, %cst_264 {dimension_numbers = #tpu.dot_dimension_numbers<[1], [0], [0], [1], [0, 0, 1, 1], [], []>} : vector<8x128xbf16>, vector<128x512xbf16>, vector<8x512xf32> -> vector<8x512xf32>
    %456 = arith.addf %452, %455 : vector<8x512xf32>
    %457 = vector.extract_strided_slice %456 {offsets = [0, 0], sizes = [8, 384], strides = [1, 1]} : vector<8x512xf32> to vector<8x384xf32>
    %458 = arith.negf %457 : vector<8x384xf32>
    %459 = math.exp %458 : vector<8x384xf32>
    %cst_265 = arith.constant 1.000000e+00 : f32
    %460 = vector.broadcast %cst_265 : f32 to vector<8x384xf32>
    %461 = arith.addf %460, %459 : vector<8x384xf32>
    %462 = arith.divf %460, %461 : vector<8x384xf32>
    %463 = vector.extract_strided_slice %456 {offsets = [0, 384], sizes = [8, 128], strides = [1, 1]} : vector<8x512xf32> to vector<8x128xf32>
    %464 = math.tanh %463 : vector<8x128xf32>
    %465 = vector.extract_strided_slice %462 {offsets = [0, 0], sizes = [8, 128], strides = [1, 1]} : vector<8x384xf32> to vector<8x128xf32>
    %466 = vector.extract_strided_slice %462 {offsets = [0, 128], sizes = [8, 128], strides = [1, 1]} : vector<8x384xf32> to vector<8x128xf32>
    %467 = vector.extract_strided_slice %462 {offsets = [0, 256], sizes = [8, 128], strides = [1, 1]} : vector<8x384xf32> to vector<8x128xf32>
    %468 = arith.mulf %466, %451 : vector<8x128xf32>
    %469 = arith.mulf %465, %464 : vector<8x128xf32>
    %470 = arith.addf %468, %469 : vector<8x128xf32>
    %471 = math.tanh %470 : vector<8x128xf32>
    %472 = arith.mulf %467, %471 : vector<8x128xf32>
    %c0_266 = arith.constant 0 : index
    %c0_267 = arith.constant 0 : index
    %473 = vector.load %arg7[%c0_266, %c0_267] : memref<8x128xf32, #tpu.memory_space<vmem>>, vector<8x128xf32>
    tpu.vector_store %arg7[%c0_266, %c0_267], %447 {strides = array<i32>} : memref<8x128xf32, #tpu.memory_space<vmem>>, vector<8x128xf32>,
    %c0_268 = arith.constant 0 : index
    %c0_269 = arith.constant 0 : index
    %474 = vector.load %arg8[%c0_268, %c0_269] : memref<8x128xf32, #tpu.memory_space<vmem>>, vector<8x128xf32>
    tpu.vector_store %arg8[%c0_268, %c0_269], %445 {strides = array<i32>} : memref<8x128xf32, #tpu.memory_space<vmem>>, vector<8x128xf32>,
    %c0_270 = arith.constant 0 : index
    %c0_271 = arith.constant 0 : index
    %475 = vector.load %arg9[%c0_270, %c0_271] : memref<8x128xf32, #tpu.memory_space<vmem>>, vector<8x128xf32>
    tpu.vector_store %arg9[%c0_270, %c0_271], %472 {strides = array<i32>} : memref<8x128xf32, #tpu.memory_space<vmem>>, vector<8x128xf32>,
    %c0_272 = arith.constant 0 : index
    %c0_273 = arith.constant 0 : index
    %476 = vector.load %arg10[%c0_272, %c0_273] : memref<8x128xf32, #tpu.memory_space<vmem>>, vector<8x128xf32>
    tpu.vector_store %arg10[%c0_272, %c0_273], %470 {strides = array<i32>} : memref<8x128xf32, #tpu.memory_space<vmem>>, vector<8x128xf32>,
    %c7_274 = arith.constant 7 : index
    %c0_275 = arith.constant 0 : index
    %c0_276 = arith.constant 0 : index
    %477 = vector.load %arg5[%c7_274, %c0_275, %c0_276] : memref<8x8x128xf32, #tpu.memory_space<vmem>>, vector<1x8x128xf32>
    %478 = vector.shape_cast %477 : vector<1x8x128xf32> to vector<8x128xf32>
    %479 = vector.shape_cast %447 : vector<8x128xf32> to vector<1x8x128xf32>
    tpu.vector_store %arg5[%c7_274, %c0_275, %c0_276], %479 {strides = array<i32>} : memref<8x8x128xf32, #tpu.memory_space<vmem>>, vector<1x8x128xf32>,
    %c0_277 = arith.constant 0 : index
    %c0_278 = arith.constant 0 : index
    %c0_279 = arith.constant 0 : index
    %480 = vector.load %arg6[%c0_277, %c0_278, %c0_279] : memref<8x8x128xf32, #tpu.memory_space<vmem>>, vector<1x8x128xf32>
    %481 = vector.shape_cast %480 : vector<1x8x128xf32> to vector<8x128xf32>
    %482 = vector.shape_cast %472 : vector<8x128xf32> to vector<1x8x128xf32>
    tpu.vector_store %arg6[%c0_277, %c0_278, %c0_279], %482 {strides = array<i32>} : memref<8x8x128xf32, #tpu.memory_space<vmem>>, vector<1x8x128xf32>,
    return
  }
  func.func @transform_0(%arg0: i32) -> (i32, i32, i32) {
    %c0_i32 = arith.constant 0 : i32
    %c0_i32_0 = arith.constant 0 : i32
    %c0_i32_1 = arith.constant 0 : i32
    return %arg0, %c0_i32, %c0_i32_0 : i32, i32, i32
  }
  func.func @transform_1(%arg0: i32) -> (i32, i32, i32) {
    %c1_i32 = arith.constant 1 : i32
    %0 = arith.subi %c1_i32, %arg0 : i32
    %c0_i32 = arith.constant 0 : i32
    %c0_i32_0 = arith.constant 0 : i32
    %c0_i32_1 = arith.constant 0 : i32
    return %0, %c0_i32, %c0_i32_0 : i32, i32, i32
  }
  func.func @transform_2(%arg0: i32) -> (i32, i32) {
    %c0_i32 = arith.constant 0 : i32
    %c0_i32_0 = arith.constant 0 : i32
    %c0_i32_1 = arith.constant 0 : i32
    return %c0_i32, %c0_i32_0 : i32, i32
  }
  func.func @transform_3(%arg0: i32) -> (i32, i32) {
    %c0_i32 = arith.constant 0 : i32
    %c0_i32_0 = arith.constant 0 : i32
    %c0_i32_1 = arith.constant 0 : i32
    return %c0_i32, %c0_i32_0 : i32, i32
  }
  func.func @transform_4(%arg0: i32) -> (i32, i32, i32) {
    %c0_i32 = arith.constant 0 : i32
    %c0_i32_0 = arith.constant 0 : i32
    %c0_i32_1 = arith.constant 0 : i32
    return %arg0, %c0_i32, %c0_i32_0 : i32, i32, i32
  }
  func.func @transform_5(%arg0: i32) -> (i32, i32, i32) {
    %c1_i32 = arith.constant 1 : i32
    %0 = arith.subi %c1_i32, %arg0 : i32
    %c0_i32 = arith.constant 0 : i32
    %c0_i32_0 = arith.constant 0 : i32
    %c0_i32_1 = arith.constant 0 : i32
    return %0, %c0_i32, %c0_i32_0 : i32, i32, i32
  }
}

</mosaic_0001>

<bundles_post_ra>
// kernel: bidirectional_res_lstm_forward.2
= control target key start
LH: loop header
LB: loop body
LE: loop exit
PB: predicated region body
PF: predicated region fallthrough
CT: control target
= control target key end

     0   :  { %s6764_s18 = smov 0   ;;  %s8721_s0 = inlined_call_operand.vmem [shape: bf16[16,8,512], index: 0, kind: input, shape index: {}]   ;;  %s8722_s1 = inlined_call_operand.vmem [shape: bf16[16,8,512], index: 1, kind: input, shape index: {}]   ;;  %s8723_s2 = inlined_call_operand.vmem [shape: bf16[128,512], index: 2, kind: input, shape index: {}]   ;;  %s8724_s3 = inlined_call_operand.vmem [shape: bf16[128,512], index: 3, kind: input, shape index: {}]   ;;  %s8725_s4 = inlined_call_operand.vmem [shape: f32[16,8,128], index: 4, kind: output, shape index: {0}]   ;;  %s8726_s5 = inlined_call_operand.vmem [shape: f32[16,8,128], index: 5, kind: output, shape index: {1}]  }
   0x1 LB: > { %s5448_s19 = sadd.s32 4294967295, %s6730_s18   ;;  %p5452_p0 = scmp.ge.s32.totalorder %s6730_s18, 1  ;;  %s6730_s18 = sphi %s6764_s18, %s16_s18  }
   0x2   : > { %p210_p1 = scmp.lt.s32.totalorder %s6730_s18, 3 }
   0x4   : > { %p211_p2 = pnand %p5452_p0, %p210_p1 }
   0x6   : > { %214 = sbr.rel (%p211_p2) target bundleno = 2173 (0x87d), region = 36 }
   0xd   : > { %s5453_s20 = sshll.u32 %s5448_s19, 3  ;;  %s259_s21 = ssub.s32 1, %s5448_s19 }
   0xe   : > { %p253_p3 = scmp.lt.s32.totalorder %s5453_s20, 15  ;;  %s5456_s22 = sshll.u32 %s259_s21, 3 }
   0xf   : > { %p261_p4 = scmp.lt.s32.totalorder %s5456_s22, 15  ;;  %p5463_p5 = scmp.ne.s32.totalorder %s5448_s19, 0 }
  0x10   : > { %s8767_s20 = smov (!%p253_p3, %s5453_s20), 15  ;;  %v6732_v0 = vmov (!%p5463_p5), 0.0  }
  0x11   : > { %s8769_s22 = smov (!%p261_p4, %s5456_s22), 15  ;;  %s6068_s23 = sshll.u32 %s8767_s20, 4  ;;  %287 = vst [vmem:[#allocation2] sm:$0xff] (!%p5463_p5), %v6732_v0  ;;  %288 = vst [vmem:[#allocation3] sm:$0xff] (!%p5463_p5), %v6732_v0 }
  0x12   : > { %s5460_s24 = sshll.u32 %s8767_s20, 3  ;;  %s6775_s27 = scalar_lea.vmem %s8721_s0, %s6068_s23  ;;  %289 = vst [vmem:[#allocation4] sm:$0xff] (!%p5463_p5), %v6732_v0  ;;  %290 = vst [vmem:[#allocation5] sm:$0xff] (!%p5463_p5), %v6732_v0 }
  0x13   : > { %s6069_s28 = sshll.u32 %s8769_s22, 4  ;;  %s6785_s9 = scalar_lea.vmem %s8725_s4, %s5460_s24 }
  0x14   : > { %s6780_s6 = scalar_lea.vmem %s8722_s1, %s6069_s28  ;;  %s5462_s10 = sshll.u32 %s8769_s22, 3 }
  0x15   : > { %s6790_s13 = scalar_lea.vmem %s8726_s5, %s5462_s10  ;;  %286 = sbr.rel (%p5463_p5) target bundleno = 28 (0x1c), region = 40 }
  0x1c PF: > { %v6795_v1 = vld [vmem:[%s8723_s2 + $0x4] ss:$16 sps:$4 sm:$0xff]   ;;  %v6800_v2 = vld [vmem:[%s8723_s2] ss:$16 sps:$4 sm:$0xff]   ;;  %v8727_v3 = vmov 0   ;;  %v301_v7 = vld [vmem:[%s8723_s2 + $0x8] sm:$0xff] }
  0x1d   : > { %524 = vmatprep.mubr.bf16.mxu0 %v8727_v3  ;;  %565 = vmatprep.mubr.bf16.mxu1 %v8727_v3  ;;  %v6808_v4 = vld [vmem:[%s8723_s2 + $0x24] ss:$16 sps:$4 sm:$0xff]   ;;  %v6814_v5 = vld [vmem:[%s8723_s2 + $0x20] ss:$16 sps:$4 sm:$0xff]   ;;  %v303_v8 = vld [vmem:[%s8723_s2 + $0x18] sm:$0xff] }
  0x1e   : > { %492 = vmatprep.subr.bf16.mxu0 %v6795_v1  ;;  %v6820_v6 = vld [vmem:[%s8723_s2 + $0x44] ss:$16 sps:$4 sm:$0xff]   ;;  %v6828_v9 = vcombine.high %v301_v7, %v303_v8  ;;  %v6830_v10 = vcombine.low %v301_v7, %v303_v8  ;;  %v6836_v11 = vld [vmem:[%s8723_s2 + $0x40] ss:$16 sps:$4 sm:$0xff]   ;;  %v305_v12 = vld [vmem:[%s8723_s2 + $0x28] sm:$0xff] }
  0x1f   : > { %493 = vmatpush1.bf16.msra.mxu0 %v6800_v2  ;;  %v307_v13 = vld [vmem:[%s8723_s2 + $0x38] sm:$0xff]  ;;  %v6848_v14 = vld [vmem:[%s8723_s2 + $0x64] ss:$16 sps:$4 sm:$0xff]   ;;  %v6866_v18 = vld [vmem:[%s8723_s2 + $0x60] ss:$16 sps:$4 sm:$0xff]  }
  0x20   : > { %494 = vmatprep.subr.bf16.mxu0 %v6808_v4  ;;  %533 = vmatprep.subr.bf16.mxu1 %v6828_v9  ;;  %v6851_v15 = vcombine.high %v305_v12, %v307_v13  ;;  %v6854_v16 = vcombine.low %v305_v12, %v307_v13  ;;  %v6860_v17 = vld [vmem:[%s8723_s2 + $0x4c] ss:$16 sps:$4 sm:$0xff]   ;;  %v6872_v19 = vld [vmem:[%s8723_s2 + $0x84] ss:$16 sps:$4 sm:$0xff]   ;;  %v6878_v20 = vld [vmem:[%s8723_s2 + $0x48] ss:$16 sps:$4 sm:$0xff]  }
  0x21   : > { %534 = vmatpush1.bf16.msra.mxu1 %v6830_v10  ;;  %v6884_v21 = vld [vmem:[%s8723_s2 + $0x6c] ss:$16 sps:$4 sm:$0xff]   ;;  %v6890_v22 = vld [vmem:[%s8723_s2 + $0x80] ss:$16 sps:$4 sm:$0xff]   ;;  %v6896_v23 = vld [vmem:[%s8723_s2 + $0xa4] ss:$16 sps:$4 sm:$0xff]  }
  0x22   : > { %535 = vmatprep.subr.bf16.mxu1 %v6851_v15  ;;  %v6902_v24 = vld [vmem:[%s8723_s2 + $0x68] ss:$16 sps:$4 sm:$0xff]   ;;  %v6908_v25 = vld [vmem:[%s8723_s2 + $0x8c] ss:$16 sps:$4 sm:$0xff]   ;;  %v6914_v26 = vld [vmem:[%s8723_s2 + $0xa0] ss:$16 sps:$4 sm:$0xff]  }
  0x23   : > { %495 = vmatpush1.bf16.msra.mxu0 %v6814_v5  ;;  %v6920_v27 = vld [vmem:[%s8723_s2 + $0xc4] ss:$16 sps:$4 sm:$0xff]   ;;  %v6926_v28 = vld [vmem:[%s8723_s2 + $0x88] ss:$16 sps:$4 sm:$0xff]   ;;  %v6932_v29 = vld [vmem:[%s8723_s2 + $0xac] ss:$16 sps:$4 sm:$0xff]  }
  0x24   : > { %496 = vmatprep.subr.bf16.mxu0 %v6820_v6  ;;  %v6938_v30 = vld [vmem:[%s8723_s2 + $0xc0] ss:$16 sps:$4 sm:$0xff]   ;;  %v6944_v31 = vld [vmem:[%s8723_s2 + $0xe4] ss:$16 sps:$4 sm:$0xff]   ;;  %v6950_v32 = vld [vmem:[%s8723_s2 + $0xa8] ss:$16 sps:$4 sm:$0xff]  }
  0x25   : > { %536 = vmatpush1.bf16.msra.mxu1 %v6854_v16  ;;  %v6955_v33 = vld [vmem:[%s8723_s2 + $0xe0] ss:$16 sps:$4 sm:$0xff]   ;;  %v6961_v34 = vld [vmem:[%s8723_s2 + $0xcc] ss:$16 sps:$4 sm:$0xff]   ;;  %v6968_v36 = vld [vmem:[%s8724_s3 + $0x4] ss:$16 sps:$4 sm:$0xff]  }
  0x26   : > { %537 = vmatprep.subr.bf16.mxu1 %v6860_v17  ;;  %v293_v35 = vld [vmem:[#allocation2] sm:$0xff]  ;;  %v6974_v37 = vld [vmem:[%s8723_s2 + $0xc8] ss:$16 sps:$4 sm:$0xff]   ;;  %v6980_v39 = vld [vmem:[%s8723_s2 + $0xec] ss:$16 sps:$4 sm:$0xff]  }
  0x27   : > { %497 = vmatpush1.bf16.msra.mxu0 %v6836_v11  ;;  %v299_v38 = vpack.c.bf16 %v293_v35, %v293_v35  ;;  %v6986_v40 = vld [vmem:[%s8724_s3] ss:$16 sps:$4 sm:$0xff]   ;;  %v6992_v41 = vld [vmem:[%s8724_s3 + $0x24] ss:$16 sps:$4 sm:$0xff]   ;;  %v6998_v42 = vld [vmem:[%s8723_s2 + $0xe8] ss:$16 sps:$4 sm:$0xff]  }
  0x28   : > { %498 = vmatprep.subr.bf16.mxu0 %v6848_v14  ;;  %v7004_v43 = vld [vmem:[%s8724_s3 + $0xc] ss:$16 sps:$4 sm:$0xff]   ;;  %v7010_v44 = vld [vmem:[%s8724_s3 + $0x20] ss:$16 sps:$4 sm:$0xff]   ;;  %v7017_v45 = vld [vmem:[%s8724_s3 + $0x44] ss:$16 sps:$4 sm:$0xff]  }
  0x29   : > { %538 = vmatpush1.bf16.msra.mxu1 %v6878_v20  ;;  %v7023_v46 = vld [vmem:[%s8724_s3 + $0x8] ss:$16 sps:$4 sm:$0xff]   ;;  %v7029_v47 = vld [vmem:[%s8724_s3 + $0x2c] ss:$16 sps:$4 sm:$0xff]   ;;  %v7035_v48 = vld [vmem:[%s8724_s3 + $0x40] ss:$16 sps:$4 sm:$0xff]  }
  0x2a   : > { %539 = vmatprep.subr.bf16.mxu1 %v6884_v21  ;;  %v7041_v49 = vld [vmem:[%s8724_s3 + $0x64] ss:$16 sps:$4 sm:$0xff]   ;;  %v7046_v50 = vld [vmem:[%s8724_s3 + $0x60] ss:$16 sps:$4 sm:$0xff]   ;;  %v7052_v51 = vld [vmem:[%s8724_s3 + $0x28] ss:$16 sps:$4 sm:$0xff]  }
  0x2b   : > { %499 = vmatpush1.bf16.msra.mxu0 %v6866_v18  ;;  %v7058_v52 = vld [vmem:[%s8724_s3 + $0x84] ss:$16 sps:$4 sm:$0xff]   ;;  %v7064_v53 = vld [vmem:[%s8724_s3 + $0x4c] ss:$16 sps:$4 sm:$0xff]   ;;  %v7070_v54 = vld [vmem:[%s8724_s3 + $0x48] ss:$16 sps:$4 sm:$0xff]  }
  0x2c   : > { %500 = vmatprep.subr.bf16.mxu0 %v6872_v19  ;;  %v7076_v55 = vld [vmem:[%s8724_s3 + $0x6c] ss:$16 sps:$4 sm:$0xff]   ;;  %v7081_v56 = vld [vmem:[%s8724_s3 + $0x80] ss:$16 sps:$4 sm:$0xff]   ;;  %v7087_v57 = vld [vmem:[%s8724_s3 + $0xa4] ss:$16 sps:$4 sm:$0xff]  }
  0x2d   : > { %540 = vmatpush1.bf16.msra.mxu1 %v6902_v24  ;;  %v7094_v58 = vld [vmem:[%s8724_s3 + $0x68] ss:$16 sps:$4 sm:$0xff]   ;;  %v7100_v59 = vld [vmem:[%s8724_s3 + $0x8c] ss:$16 sps:$4 sm:$0xff]   ;;  %v7105_v60 = vld [vmem:[%s8724_s3 + $0xa0] ss:$16 sps:$4 sm:$0xff]  }
  0x2e   : > { %541 = vmatprep.subr.bf16.mxu1 %v6908_v25  ;;  %v7111_v61 = vld [vmem:[%s8724_s3 + $0xc4] ss:$16 sps:$4 sm:$0xff]   ;;  %v7118_v62 = vld [vmem:[%s8724_s3 + $0x88] ss:$16 sps:$4 sm:$0xff]   ;;  %v7124_v63 = vld [vmem:[%s8724_s3 + $0xac] ss:$16 sps:$4 sm:$0xff]  }
  0x2f   : > { %501 = vmatpush1.bf16.msra.mxu0 %v6890_v22  ;;  %8741 = vst [vmem:[#allocation6_spill] sm:$0xff] %v7111_v61  ;;  %v7129_v0 = vld [vmem:[%s8724_s3 + $0xc0] ss:$16 sps:$4 sm:$0xff]   ;;  %v7135_v7 = vld [vmem:[%s8724_s3 + $0xe4] ss:$16 sps:$4 sm:$0xff]  }
  0x30   : > { %502 = vmatprep.subr.bf16.mxu0 %v6896_v23  ;;  %8742 = vst [vmem:[#allocation7_spill] sm:$0xff] %v7129_v0  ;;  %8743 = vst [vmem:[#allocation8_spill] sm:$0xff] %v7135_v7  ;;  %v7142_v8 = vld [vmem:[%s8724_s3 + $0xa8] ss:$16 sps:$4 sm:$0xff]   ;;  %v7148_v12 = vld [vmem:[%s8724_s3 + $0xcc] ss:$16 sps:$4 sm:$0xff]  }
  0x31   : > { %542 = vmatpush1.bf16.msra.mxu1 %v6926_v28  ;;  %v7153_v13 = vld [vmem:[%s8724_s3 + $0xe0] ss:$16 sps:$4 sm:$0xff]  }
  0x32   : > { %543 = vmatprep.subr.bf16.mxu1 %v6932_v29  ;;  %v605_v35 = vld [vmem:[#allocation4] sm:$0xff] }
  0x33   : > { %503 = vmatpush1.bf16.msra.mxu0 %v6914_v26 }
  0x34   : > { %504 = vmatprep.subr.bf16.mxu0 %v6920_v27 }
  0x35   : > { %544 = vmatpush1.bf16.msra.mxu1 %v6950_v32 }
  0x36   : > { %545 = vmatprep.subr.bf16.mxu1 %v6961_v34 }
  0x37   : > { %505 = vmatpush1.bf16.msra.mxu0 %v6938_v30 }
  0x38   : > { %506 = vmatprep.subr.bf16.mxu0 %v6944_v31 }
  0x39   : > { %546 = vmatpush1.bf16.msra.mxu1 %v6974_v37 }
  0x3a   : > { %547 = vmatprep.subr.bf16.mxu1 %v6980_v39 }
  0x3b   : > { %507 = vmatpush1.bf16.msra.mxu0 %v6955_v33 }
  0x3c   : > { %804 = vmatprep.subr.bf16.mxu0 %v6968_v36 }
  0x3d   : > { %548 = vmatpush1.bf16.msra.mxu1 %v6998_v42 }
  0x3e   : > { %525 = vmatmul.mubr.bf16.vlgmr.msra.gmra.mrb[0].mxu0 %v299_v38  ;;  %845 = vmatprep.subr.bf16.mxu1 %v7004_v43 }
  0x3f   : > { %805 = vmatpush1.bf16.msra.mxu0 %v6986_v40  ;;  %836 = vmatprep.mubr.bf16.mxu0 %v8727_v3 }
  0x40   : > { %806 = vmatprep.subr.bf16.mxu0 %v6992_v41  ;;  %566 = vmatmul.mubr.bf16.vlgmr.msra.gmra.mrb[0].mxu1 %v299_v38  ;;  %v7161_v38 = vld [vmem:[%s8724_s3 + $0xc8] ss:$16 sps:$4 sm:$0xff]  }
  0x41   : > { %846 = vmatpush1.bf16.msra.mxu1 %v7023_v46  ;;  %877 = vmatprep.mubr.bf16.mxu1 %v8727_v3  ;;  %v7167_v3 = vld [vmem:[%s8724_s3 + $0xec] ss:$16 sps:$4 sm:$0xff]  }
  0x42   : > { %847 = vmatprep.subr.bf16.mxu1 %v7029_v47 }
  0x43   : > { %807 = vmatpush1.bf16.msra.mxu0 %v7010_v44 }
  0x44   : > { %808 = vmatprep.subr.bf16.mxu0 %v7017_v45 }
  0x45   : > { %848 = vmatpush1.bf16.msra.mxu1 %v7052_v51 }
  0x46   : > { %849 = vmatprep.subr.bf16.mxu1 %v7064_v53 }
  0x47   : > { %809 = vmatpush1.bf16.msra.mxu0 %v7035_v48 }
  0x48   : > { %810 = vmatprep.subr.bf16.mxu0 %v7041_v49 }
  0x49   : > { %850 = vmatpush1.bf16.msra.mxu1 %v7070_v54 }
  0x4a   : > { %851 = vmatprep.subr.bf16.mxu1 %v7076_v55 }
  0x4b   : > { %811 = vmatpush1.bf16.msra.mxu0 %v7046_v50 }
  0x4c   : > { %812 = vmatprep.subr.bf16.mxu0 %v7058_v52 }
  0x4d   : > { %852 = vmatpush1.bf16.msra.mxu1 %v7094_v58 }
  0x4e   : > { %853 = vmatprep.subr.bf16.mxu1 %v7100_v59 }
  0x4f   : > { %813 = vmatpush1.bf16.msra.mxu0 %v7081_v56 }
  0x50   : > { %814 = vmatprep.subr.bf16.mxu0 %v7087_v57 }
  0x51   : > { %854 = vmatpush1.bf16.msra.mxu1 %v7118_v62 }
  0x52   : > { %855 = vmatprep.subr.bf16.mxu1 %v7124_v63 }
  0x53   : > { %815 = vmatpush1.bf16.msra.mxu0 %v7105_v60 }
  0x54   : > { %816 = vmatprep.subr.bf16.mxu0 %v7111_v61  ;;  %v611_v61 = vpack.c.bf16 %v605_v35, %v605_v35 }
  0x55   : > { %856 = vmatpush1.bf16.msra.mxu1 %v7142_v8 }
  0x56   : > { %857 = vmatprep.subr.bf16.mxu1 %v7148_v12 }
  0x57   : > { %817 = vmatpush1.bf16.msra.mxu0 %v7129_v0  ;;  %v7175_v0 = vld [vmem:[%s8724_s3 + $0xe8] ss:$16 sps:$4 sm:$0xff]  }
  0x58   : > { %818 = vmatprep.subr.bf16.mxu0 %v7135_v7  ;;  %v8744_v7 = vmov 0  }
  0x59   : > { %858 = vmatpush1.bf16.msra.mxu1 %v7161_v38 }
  0x5a   : > { %859 = vmatprep.subr.bf16.mxu1 %v7167_v3 }
  0x5b   : > { %819 = vmatpush1.bf16.msra.mxu0 %v7153_v13 }
  0x5c   : > { %1123 = vmatprep.subr.bf16.mxu0 %v6795_v1  ;;  %v291_v1 = vld [vmem:[%s6775_s27] sm:$0xff] }
  0x5d   : > { %860 = vmatpush1.bf16.msra.mxu1 %v7175_v0 }
  0x5e   : > { %837 = vmatmul.mubr.bf16.vlgmr.msra.gmra.mrb[4].mxu0 %v611_v61  ;;  %1164 = vmatprep.subr.bf16.mxu1 %v6828_v9 }
  0x5f   : > { %1124 = vmatpush1.bf16.msra.mxu0 %v6800_v2  ;;  %1155 = vmatprep.mubr.bf16.mxu0 %v8744_v7  ;;  %v295_v2 = vunpack.c.l.bf16 %v291_v1 }
  0x60   : > { %1125 = vmatprep.subr.bf16.mxu0 %v6808_v4  ;;  %878 = vmatmul.mubr.bf16.vlgmr.msra.gmra.mrb[4].mxu1 %v611_v61  ;;  %v296_v4 = vunpack.c.h.bf16 %v291_v1 }
  0x61   : > { %1165 = vmatpush1.bf16.msra.mxu1 %v6830_v10  ;;  %1196 = vmatprep.mubr.bf16.mxu1 %v8744_v7 }
  0x62   : > { %1166 = vmatprep.subr.bf16.mxu1 %v6851_v15 }
  0x63   : > { %1126 = vmatpush1.bf16.msra.mxu0 %v6814_v5 }
  0x64   : > { %1127 = vmatprep.subr.bf16.mxu0 %v6820_v6  ;;  %v292_v6 = vld [vmem:[%s6775_s27 + $0x8] sm:$0xff] }
  0x65   : > { %1167 = vmatpush1.bf16.msra.mxu1 %v6854_v16 }
  0x66   : > { %1168 = vmatprep.subr.bf16.mxu1 %v6860_v17 }
  0x67   : > { %1128 = vmatpush1.bf16.msra.mxu0 %v6836_v11 }
  0x68   : > { %1129 = vmatprep.subr.bf16.mxu0 %v6848_v14 }
  0x69   : > { %1169 = vmatpush1.bf16.msra.mxu1 %v6878_v20 }
  0x6a   : > { %1170 = vmatprep.subr.bf16.mxu1 %v6884_v21 }
  0x6b   : > { %1130 = vmatpush1.bf16.msra.mxu0 %v6866_v18 }
  0x6c   : > { %1131 = vmatprep.subr.bf16.mxu0 %v6872_v19  ;;  %v297_v19 = vunpack.c.l.bf16 %v292_v6 }
  0x6d   : > { %1171 = vmatpush1.bf16.msra.mxu1 %v6902_v24  ;;  %v298_v24 = vunpack.c.h.bf16 %v292_v6  ;;  %v5500_v6 = vld [vmem:[%s6780_s6 + $0x78] sm:$0xff] }
  0x6e   : > { %1172 = vmatprep.subr.bf16.mxu1 %v6908_v25 }
  0x6f   : > { %1132 = vmatpush1.bf16.msra.mxu0 %v6890_v22 }
  0x70   : > { %1133 = vmatprep.subr.bf16.mxu0 %v6896_v23 }
  0x71   : > { %1173 = vmatpush1.bf16.msra.mxu1 %v6926_v28 }
  0x72   : > { %1174 = vmatprep.subr.bf16.mxu1 %v6932_v29 }
  0x73   : > { %1134 = vmatpush1.bf16.msra.mxu0 %v6914_v26 }
  0x74   : > { %1135 = vmatprep.subr.bf16.mxu0 %v6920_v27 }
  0x75   : > { %1175 = vmatpush1.bf16.msra.mxu1 %v6950_v32 }
  0x76   : > { %1176 = vmatprep.subr.bf16.mxu1 %v6961_v34 }
  0x77   : > { %1136 = vmatpush1.bf16.msra.mxu0 %v6938_v30 }
  0x78   : > { %1137 = vmatprep.subr.bf16.mxu0 %v6944_v31 }
  0x79   : > { %1177 = vmatpush1.bf16.msra.mxu1 %v6974_v37  ;;  %v294_v37 = vld [vmem:[#allocation3] sm:$0xff] }
  0x7a   : > { %1178 = vmatprep.subr.bf16.mxu1 %v6980_v39 }
  0x7b   : > { %1138 = vmatpush1.bf16.msra.mxu0 %v6955_v33 }
  0x7c   : > { %1435 = vmatprep.subr.bf16.mxu0 %v6968_v36  ;;  %v5499_v36 = vld [vmem:[%s6780_s6 + $0x70] sm:$0xff] }
  0x7d   : > { %1179 = vmatpush1.bf16.msra.mxu1 %v6998_v42  ;;  %v607_v35 = vunpack.c.l.bf16 %v5499_v36 }
  0x7e   : > { %1476 = vmatprep.subr.bf16.mxu1 %v7004_v43 }
 0x111   : > { %v526_v5 = vpop.f32.mrb[0].mxu0 }
 0x112   : > { %v574_v9 = vadd.f32 %v526_v5, %v295_v2  ;;  %v528_v11 = vpop.f32.mrb[1].mxu0  ;;  %v608_v2 = vunpack.c.h.bf16 %v5499_v36 }
 0x113   : > { %v575_v14 = vadd.f32 %v528_v11, %v296_v4  ;;  %v530_v15 = vpop.f32.mrb[2].mxu0  ;;  %v567_v21 = vpop.f32.mrb[0].mxu1 }
 0x114   : > { %v5496_v17 = vmul.f32 -1.442695, %v574_v9  ;;  %v531_v18 = vpop.f32.mrb[3].mxu0  ;;  %v576_v22 = vadd.f32 %v567_v21, %v297_v19  ;;  %v569_v23 = vpop.f32.mrb[1].mxu1  ;;  %v609_v19 = vunpack.c.l.bf16 %v5500_v6 }
 0x115   : > { %v5497_v20 = vmul.f32 -1.442695, %v575_v14  ;;  %v571_v25 = vpop.f32.mrb[2].mxu1  ;;  %v577_v28 = vadd.f32 %v569_v23, %v298_v24  ;;  %v610_v24 = vunpack.c.h.bf16 %v5500_v6  ;;  %v7366_v6 = vld [vmem:[%s8723_s2 + $0x88] ss:$16 sps:$4 sm:$0xff]  }
 0x116   : > { %6464 = vpow2.f32 %v5496_v17  ;;  %v572_v26 = vpop.f32.mrb[3].mxu1  ;;  %v5498_v27 = vmul.f32 -1.442695, %v576_v22 }
 0x117   : > { %6466 = vpow2.f32 %v5497_v20 }
 0x118   : > { %6468 = vpow2.f32 %v5498_v27 }
 0x119   : > { %6470 = vtanh.f32 %v577_v28 }
 0x120   : > { %v6465_v29 = vpop.eup %6464 }
 0x121   : > { %v6467_v30 = vpop.eup %6466  ;;  %v587_v31 = vadd.f32 1.0, %v6465_v29 }
 0x122   : > { %v588_v32 = vadd.f32 1.0, %v6467_v30  ;;  %v6469_v33 = vpop.eup %6468 }
 0x123   : > { %6472 = vrcp.f32 %v587_v31  ;;  %v6471_v34 = vpop.eup %6470  ;;  %v589_v42 = vadd.f32 1.0, %v6469_v33 }
 0x124   : > { %6474 = vrcp.f32 %v588_v32 }
 0x125   : > { %6476 = vrcp.f32 %v589_v42 }
 0x12d   : > { %v6473_v39 = vpop.eup %6472 }
 0x12e   : > { %v6475_v43 = vpop.eup %6474  ;;  %v598_v61 = vmul.f32 %v6473_v39, %v6471_v34 }
 0x12f   : > { %v597_v1 = vmul.f32 %v6475_v43, %v294_v37  ;;  %v6477_v27 = vpop.eup %6476  ;;  %v7332_v43 = vld [vmem:[%s8723_s2 + $0x6c] ss:$16 sps:$4 sm:$0xff]  }
 0x131   : > { %v7219_v4 = vadd.f32 %v598_v61, %v597_v1  ;;  %v838_v5 = vpop.f32.mrb[4].mxu0  ;;  %v7337_v61 = vld [vmem:[%s8723_s2 + $0x60] ss:$16 sps:$4 sm:$0xff]   ;;  %v7351_v1 = vld [vmem:[%s8723_s2 + $0x84] ss:$16 sps:$4 sm:$0xff]  }
 0x132   : > { %v886_v9 = vadd.f32 %v838_v5, %v607_v35  ;;  %v840_v11 = vpop.f32.mrb[5].mxu0  ;;  %v7342_v35 = vld [vmem:[%s8723_s2 + $0x68] ss:$16 sps:$4 sm:$0xff]   ;;  %v7361_v5 = vld [vmem:[%s8723_s2 + $0x80] ss:$16 sps:$4 sm:$0xff]  }
 0x133   : > { %6478 = vtanh.f32 %v7219_v4  ;;  %v887_v14 = vadd.f32 %v840_v11, %v608_v2  ;;  %v842_v15 = vpop.f32.mrb[6].mxu0  ;;  %v879_v21 = vpop.f32.mrb[4].mxu1  ;;  %v7356_v2 = vld [vmem:[%s8723_s2 + $0x8c] ss:$16 sps:$4 sm:$0xff]  }
 0x134   : > { %v5533_v17 = vmul.f32 -1.442695, %v886_v9  ;;  %v843_v18 = vpop.f32.mrb[7].mxu0  ;;  %v888_v22 = vadd.f32 %v879_v21, %v609_v19  ;;  %v881_v23 = vpop.f32.mrb[5].mxu1  ;;  %v7375_v9 = vld [vmem:[%s8723_s2 + $0xa4] ss:$16 sps:$4 sm:$0xff]  }
 0x135   : > { %v5534_v20 = vmul.f32 -1.442695, %v887_v14  ;;  %v883_v25 = vpop.f32.mrb[6].mxu1  ;;  %v889_v30 = vadd.f32 %v881_v23, %v610_v24  ;;  %v7380_v11 = vld [vmem:[%s8723_s2 + $0xac] ss:$16 sps:$4 sm:$0xff]  }
 0x136   : > { %6480 = vpow2.f32 %v5533_v17  ;;  %v884_v26 = vpop.f32.mrb[7].mxu1  ;;  %v5535_v28 = vmul.f32 -1.442695, %v888_v22  ;;  %v7385_v14 = vld [vmem:[%s8723_s2 + $0xa0] ss:$16 sps:$4 sm:$0xff]  }
 0x137   : > { %6482 = vpow2.f32 %v5534_v20  ;;  %v7390_v15 = vld [vmem:[%s8723_s2 + $0xa8] ss:$16 sps:$4 sm:$0xff]   ;;  %v7399_v17 = vld [vmem:[%s8723_s2 + $0xc4] ss:$16 sps:$4 sm:$0xff]   ;;  %v7404_v18 = vld [vmem:[%s8723_s2 + $0xcc] ss:$16 sps:$4 sm:$0xff]  }
 0x138   : > { %6484 = vpow2.f32 %v5535_v28  ;;  %v7409_v19 = vld [vmem:[%s8723_s2 + $0xc0] ss:$16 sps:$4 sm:$0xff]   ;;  %v7414_v20 = vld [vmem:[%s8723_s2 + $0xc8] ss:$16 sps:$4 sm:$0xff]   ;;  %v7423_v21 = vld [vmem:[%s8723_s2 + $0xe4] ss:$16 sps:$4 sm:$0xff]  }
 0x139   : > { %6486 = vtanh.f32 %v889_v30  ;;  %v7428_v22 = vld [vmem:[%s8723_s2 + $0xec] ss:$16 sps:$4 sm:$0xff]   ;;  %v7433_v23 = vld [vmem:[%s8723_s2 + $0xe0] ss:$16 sps:$4 sm:$0xff]   ;;  %v7438_v24 = vld [vmem:[%s8723_s2 + $0xe8] ss:$16 sps:$4 sm:$0xff]  }
 0x13a   : > { %v7447_v25 = vld [vmem:[%s8724_s3 + $0x4] ss:$16 sps:$4 sm:$0xff]   ;;  %v7452_v26 = vld [vmem:[%s8724_s3 + $0xc] ss:$16 sps:$4 sm:$0xff]  }
 0x13d   : > { %v6479_v29 = vpop.eup %6478 }
 0x13e   : > { %v601_v31 = vmul.f32 %v6479_v29, %v6477_v27  ;;  %v5537_v27 = vld [vmem:[%s6775_s27 + $0x10] sm:$0xff] }
 0x13f   : > { %v926_v28 = vunpack.c.l.bf16 %v5537_v27  ;;  %v927_v29 = vunpack.c.h.bf16 %v5537_v27 }
 0x140   : > { %v6481_v32 = vpop.eup %6480  ;;  %918 = vst [vmem:[%s6785_s9] sm:$0xff] %v601_v31  ;;  %v930_v33 = vpack.c.bf16 %v601_v31, %v601_v31 }
 0x141   : > { %v6483_v34 = vpop.eup %6482  ;;  %v899_v36 = vadd.f32 1.0, %v6481_v32 }
 0x142   : > { %v900_v37 = vadd.f32 1.0, %v6483_v34  ;;  %1156 = vmatmul.mubr.bf16.vlgmr.msra.gmra.mrb[8].mxu0 %v930_v33  ;;  %1197 = vmatmul.mubr.bf16.vlgmr.msra.gmra.mrb[8].mxu1 %v930_v33 }
 0x143   : > { %6488 = vrcp.f32 %v899_v36  ;;  %1436 = vmatpush1.bf16.msra.mxu0 %v6986_v40  ;;  %1477 = vmatpush1.bf16.msra.mxu1 %v7023_v46  ;;  %v6485_v40 = vpop.eup %6484  ;;  %v5538_v36 = vld [vmem:[%s6775_s27 + $0x18] sm:$0xff] }
 0x144   : > { %6490 = vrcp.f32 %v900_v37  ;;  %1437 = vmatprep.subr.bf16.mxu0 %v6992_v41  ;;  %1478 = vmatprep.subr.bf16.mxu1 %v7029_v47  ;;  %v6487_v39 = vpop.eup %6486  ;;  %v606_v41 = vld [vmem:[#allocation5] sm:$0xff]  ;;  %v901_v47 = vadd.f32 1.0, %v6485_v40 }
 0x145   : > { %1467 = vmatprep.mubr.bf16.mxu0 %v8744_v7  ;;  %1508 = vmatprep.mubr.bf16.mxu1 %v8744_v7 }
 0x146   : > { %6492 = vrcp.f32 %v901_v47 }
 0x147   : > { %1438 = vmatpush1.bf16.msra.mxu0 %v7010_v44  ;;  %1479 = vmatpush1.bf16.msra.mxu1 %v7052_v51 }
 0x148   : > { %1439 = vmatprep.subr.bf16.mxu0 %v7017_v45  ;;  %1480 = vmatprep.subr.bf16.mxu1 %v7064_v53 }
 0x14b   : > { %1440 = vmatpush1.bf16.msra.mxu0 %v7035_v48  ;;  %1481 = vmatpush1.bf16.msra.mxu1 %v7070_v54  ;;  %v8745_v48 = vld [vmem:[#allocation6_spill] sm:$0xff] }
 0x14c   : > { %1441 = vmatprep.subr.bf16.mxu0 %v7041_v49  ;;  %1482 = vmatprep.subr.bf16.mxu1 %v7076_v55 }
 0x14d   : > { %v6489_v46 = vpop.eup %6488 }
 0x14e   : > { %v6491_v44 = vpop.eup %6490  ;;  %v910_v42 = vmul.f32 %v6489_v46, %v6487_v39 }
 0x14f   : > { %v909_v51 = vmul.f32 %v6491_v44, %v606_v41  ;;  %1442 = vmatpush1.bf16.msra.mxu0 %v7046_v50  ;;  %1483 = vmatpush1.bf16.msra.mxu1 %v7094_v58  ;;  %v8746_v50 = vld [vmem:[#allocation7_spill] sm:$0xff] }
 0x150   : > { %1443 = vmatprep.subr.bf16.mxu0 %v7058_v52  ;;  %1484 = vmatprep.subr.bf16.mxu1 %v7100_v59  ;;  %v6493_v49 = vpop.eup %6492  ;;  %v8747_v52 = vld [vmem:[#allocation8_spill] sm:$0xff] }
 0x151   : > { %v7242_v45 = vadd.f32 %v910_v42, %v909_v51  ;;  %v7276_v59 = vld [vmem:[%s8723_s2] ss:$16 sps:$4 sm:$0xff]   ;;  %v928_v42 = vunpack.c.l.bf16 %v5538_v36  ;;  %v929_v51 = vunpack.c.h.bf16 %v5538_v36 }
 0x153   : > { %6494 = vtanh.f32 %v7242_v45  ;;  %1444 = vmatpush1.bf16.msra.mxu0 %v7081_v56  ;;  %1485 = vmatpush1.bf16.msra.mxu1 %v7118_v62  ;;  %v7265_v56 = vld [vmem:[%s8723_s2 + $0x4] ss:$16 sps:$4 sm:$0xff]   ;;  %v6722_v62 = vld [vmem:[%s8723_s2 + $0x28] sm:$0xff] }
 0x154   : > { %1445 = vmatprep.subr.bf16.mxu0 %v7087_v57  ;;  %1486 = vmatprep.subr.bf16.mxu1 %v7124_v63  ;;  %v6721_v57 = vld [vmem:[%s8723_s2 + $0x18] sm:$0xff] }
 0x155   : > { %v6723_v63 = vld [vmem:[%s8723_s2 + $0x38] sm:$0xff] }
 0x157   : > { %1446 = vmatpush1.bf16.msra.mxu0 %v7105_v60  ;;  %1487 = vmatpush1.bf16.msra.mxu1 %v7142_v8  ;;  %v7284_v60 = vld [vmem:[%s8723_s2 + $0x24] ss:$16 sps:$4 sm:$0xff]   ;;  %v7295_v8 = vld [vmem:[%s8723_s2 + $0x20] ss:$16 sps:$4 sm:$0xff]  }
 0x158   : > { %1447 = vmatprep.subr.bf16.mxu0 %v8745_v48  ;;  %1488 = vmatprep.subr.bf16.mxu1 %v7148_v12  ;;  %v7308_v12 = vld [vmem:[%s8723_s2 + $0x4c] ss:$16 sps:$4 sm:$0xff]  }
 0x15b   : > { %1448 = vmatpush1.bf16.msra.mxu0 %v8746_v50  ;;  %1489 = vmatpush1.bf16.msra.mxu1 %v7161_v38  ;;  %v7318_v38 = vld [vmem:[%s8723_s2 + $0x48] ss:$16 sps:$4 sm:$0xff]  }
 0x15c   : > { %1449 = vmatprep.subr.bf16.mxu0 %v8747_v52  ;;  %1490 = vmatprep.subr.bf16.mxu1 %v7167_v3  ;;  %v6720_v3 = vld [vmem:[%s8723_s2 + $0x8] sm:$0xff] }
 0x15d   : > { %v6495_v53 = vpop.eup %6494  ;;  %v5618_v58 = vcombine.high %v6720_v3, %v6721_v57  ;;  %v5574_v57 = vld [vmem:[%s6780_s6 + $0x60] sm:$0xff] }
 0x15e   : > { %v913_v54 = vmul.f32 %v6495_v53, %v6493_v49 }
 0x15f   : > { %1450 = vmatpush1.bf16.msra.mxu0 %v7153_v13  ;;  %1491 = vmatpush1.bf16.msra.mxu1 %v7175_v0  ;;  %v5622_v0 = vcombine.high %v6722_v62, %v6723_v63  ;;  %v7313_v13 = vld [vmem:[%s8723_s2 + $0x40] ss:$16 sps:$4 sm:$0xff]  }
 0x160   : > { %5536 = vst [vmem:[%s6790_s13 + $0x38] sm:$0xff] %v913_v54  ;;  %v1242_v55 = vpack.c.bf16 %v913_v54, %v913_v54  ;;  %1755 = vmatprep.subr.bf16.mxu0 %v7265_v56  ;;  %1796 = vmatprep.subr.bf16.mxu1 %v5618_v58 }
 0x162   : > { %1468 = vmatmul.mubr.bf16.vlgmr.msra.gmra.mrb[12].mxu0 %v1242_v55  ;;  %1509 = vmatmul.mubr.bf16.vlgmr.msra.gmra.mrb[12].mxu1 %v1242_v55 }
 0x163   : > { %1787 = vmatprep.mubr.bf16.mxu0 %v8744_v7  ;;  %1828 = vmatprep.mubr.bf16.mxu1 %v8744_v7 }
 0x164   : > { %1756 = vmatpush1.bf16.msra.mxu0 %v7276_v59  ;;  %1797 = vmatpush1.bf16.msra.mxu1 %v6830_v10  ;;  %v7303_v10 = vld [vmem:[%s8723_s2 + $0x44] ss:$16 sps:$4 sm:$0xff]  }
 0x165   : > { %1757 = vmatprep.subr.bf16.mxu0 %v7284_v60  ;;  %1798 = vmatprep.subr.bf16.mxu1 %v5622_v0  ;;  %v1238_v0 = vunpack.c.l.bf16 %v5574_v57 }
 0x168   : > { %1758 = vmatpush1.bf16.msra.mxu0 %v7295_v8  ;;  %1799 = vmatpush1.bf16.msra.mxu1 %v6854_v16  ;;  %v7327_v16 = vld [vmem:[%s8723_s2 + $0x64] ss:$16 sps:$4 sm:$0xff]  }
 0x169   : > { %1759 = vmatprep.subr.bf16.mxu0 %v7303_v10  ;;  %1800 = vmatprep.subr.bf16.mxu1 %v7308_v12 }
 0x16c   : > { %1760 = vmatpush1.bf16.msra.mxu0 %v7313_v13  ;;  %1801 = vmatpush1.bf16.msra.mxu1 %v7318_v38 }
 0x16d   : > { %1761 = vmatprep.subr.bf16.mxu0 %v7327_v16  ;;  %1802 = vmatprep.subr.bf16.mxu1 %v7332_v43 }
 0x170   : > { %1762 = vmatpush1.bf16.msra.mxu0 %v7337_v61  ;;  %1803 = vmatpush1.bf16.msra.mxu1 %v7342_v35 }
 0x171   : > { %1763 = vmatprep.subr.bf16.mxu0 %v7351_v1  ;;  %1804 = vmatprep.subr.bf16.mxu1 %v7356_v2 }
 0x174   : > { %1764 = vmatpush1.bf16.msra.mxu0 %v7361_v5  ;;  %1805 = vmatpush1.bf16.msra.mxu1 %v7366_v6 }
 0x175   : > { %1765 = vmatprep.subr.bf16.mxu0 %v7375_v9  ;;  %1806 = vmatprep.subr.bf16.mxu1 %v7380_v11 }
 0x178   : > { %1766 = vmatpush1.bf16.msra.mxu0 %v7385_v14  ;;  %1807 = vmatpush1.bf16.msra.mxu1 %v7390_v15 }
 0x179   : > { %1767 = vmatprep.subr.bf16.mxu0 %v7399_v17  ;;  %1808 = vmatprep.subr.bf16.mxu1 %v7404_v18 }
 0x17c   : > { %1768 = vmatpush1.bf16.msra.mxu0 %v7409_v19  ;;  %1809 = vmatpush1.bf16.msra.mxu1 %v7414_v20 }
 0x17d   : > { %1769 = vmatprep.subr.bf16.mxu0 %v7423_v21  ;;  %1810 = vmatprep.subr.bf16.mxu1 %v7428_v22 }
 0x180   : > { %1770 = vmatpush1.bf16.msra.mxu0 %v7433_v23  ;;  %1811 = vmatpush1.bf16.msra.mxu1 %v7438_v24 }
 0x181   : > { %2067 = vmatprep.subr.bf16.mxu0 %v7447_v25  ;;  %2108 = vmatprep.subr.bf16.mxu1 %v7452_v26 }
 0x215   : > { %v1157_v30 = vpop.f32.mrb[8].mxu0  ;;  %v1198_v31 = vpop.f32.mrb[8].mxu1 }
 0x216   : > { %v1205_v32 = vadd.f32 %v1157_v30, %v926_v28  ;;  %v1159_v33 = vpop.f32.mrb[9].mxu0  ;;  %v1200_v34 = vpop.f32.mrb[9].mxu1  ;;  %v1207_v48 = vadd.f32 %v1198_v31, %v928_v42 }
 0x217   : > { %v1206_v37 = vadd.f32 %v1159_v33, %v927_v29  ;;  %v1161_v40 = vpop.f32.mrb[10].mxu0  ;;  %v1202_v39 = vpop.f32.mrb[10].mxu1  ;;  %v1208_v49 = vadd.f32 %v1200_v34, %v929_v51  ;;  %v1239_v29 = vunpack.c.h.bf16 %v5574_v57  ;;  %v7467_v57 = vld [vmem:[%s8724_s3] ss:$16 sps:$4 sm:$0xff]  }
 0x218   : > { %v5571_v41 = vmul.f32 -1.442695, %v1205_v32  ;;  %v1162_v46 = vpop.f32.mrb[11].mxu0  ;;  %v1203_v47 = vpop.f32.mrb[11].mxu1  ;;  %v5573_v50 = vmul.f32 -1.442695, %v1207_v48 }
 0x219   : > { %v5572_v44 = vmul.f32 -1.442695, %v1206_v37  ;;  %v5575_v40 = vld [vmem:[%s6780_s6 + $0x68] sm:$0xff] }
 0x21a   : > { %6496 = vpow2.f32 %v5571_v41  ;;  %v1241_v48 = vunpack.c.h.bf16 %v5575_v40 }
 0x21b   : > { %6498 = vpow2.f32 %v5572_v44 }
 0x21c   : > { %6500 = vtanh.f32 %v1208_v49 }
 0x21d   : > { %6502 = vpow2.f32 %v5573_v50 }
 0x224   : > { %v6497_v52 = vpop.eup %6496 }
 0x225   : > { %v1218_v53 = vadd.f32 1.0, %v6497_v52  ;;  %v6499_v54 = vpop.eup %6498 }
 0x226   : > { %v1219_v55 = vadd.f32 1.0, %v6499_v54  ;;  %v6501_v3 = vpop.eup %6500 }
 0x227   : > { %6504 = vrcp.f32 %v1218_v53  ;;  %v6503_v58 = vpop.eup %6502 }
 0x228   : > { %6506 = vrcp.f32 %v1219_v55  ;;  %v1220_v28 = vadd.f32 1.0, %v6503_v58  ;;  %v7472_v58 = vld [vmem:[%s8724_s3 + $0x8] ss:$16 sps:$4 sm:$0xff]  }
 0x22a   : > { %6508 = vrcp.f32 %v1220_v28 }
 0x231   : > { %v6505_v62 = vpop.eup %6504 }
 0x232   : > { %v1229_v63 = vmul.f32 %v6505_v62, %v6501_v3  ;;  %v6507_v27 = vpop.eup %6506 }
 0x233   : > { %v1228_v30 = vmul.f32 %v6507_v27, %v7219_v4  ;;  %v1240_v4 = vunpack.c.l.bf16 %v5575_v40  ;;  %v7483_v27 = vld [vmem:[%s8724_s3 + $0x2c] ss:$16 sps:$4 sm:$0xff]   ;;  %v7528_v40 = vld [vmem:[%s8724_s3 + $0x64] ss:$16 sps:$4 sm:$0xff]  }
 0x234   : > { %v6509_v50 = vpop.eup %6508 }
 0x235   : > { %v1469_v31 = vpop.f32.mrb[12].mxu0  ;;  %v1510_v32 = vpop.f32.mrb[12].mxu1  ;;  %v7460_v33 = vadd.f32 %v1229_v63, %v1228_v30  ;;  %v7490_v30 = vld [vmem:[%s8724_s3 + $0x20] ss:$16 sps:$4 sm:$0xff]  }
 0x236   : > { %v1517_v34 = vadd.f32 %v1469_v31, %v1238_v0  ;;  %v1471_v36 = vpop.f32.mrb[13].mxu0  ;;  %v1512_v37 = vpop.f32.mrb[13].mxu1  ;;  %v1519_v49 = vadd.f32 %v1510_v32, %v1240_v4  ;;  %v7478_v0 = vld [vmem:[%s8724_s3 + $0x24] ss:$16 sps:$4 sm:$0xff]   ;;  %v7495_v31 = vld [vmem:[%s8724_s3 + $0x28] ss:$16 sps:$4 sm:$0xff]  }
 0x237   : > { %v1518_v39 = vadd.f32 %v1471_v36, %v1239_v29  ;;  %v1473_v41 = vpop.f32.mrb[14].mxu0  ;;  %v1514_v46 = vpop.f32.mrb[14].mxu1  ;;  %6510 = vtanh.f32 %v7460_v33  ;;  %v1520_v52 = vadd.f32 %v1512_v37, %v1241_v48  ;;  %v7502_v32 = vld [vmem:[%s8724_s3 + $0x44] ss:$16 sps:$4 sm:$0xff]   ;;  %v7516_v36 = vld [vmem:[%s8724_s3 + $0x40] ss:$16 sps:$4 sm:$0xff]  }
 0x238   : > { %v5608_v47 = vmul.f32 -1.442695, %v1517_v34  ;;  %v1474_v44 = vpop.f32.mrb[15].mxu0  ;;  %v1515_v42 = vpop.f32.mrb[15].mxu1  ;;  %v5610_v54 = vmul.f32 -1.442695, %v1519_v49 }
 0x239   : > { %v5609_v51 = vmul.f32 -1.442695, %v1518_v39  ;;  %v7507_v34 = vld [vmem:[%s8724_s3 + $0x4c] ss:$16 sps:$4 sm:$0xff]   ;;  %v7521_v37 = vld [vmem:[%s8724_s3 + $0x48] ss:$16 sps:$4 sm:$0xff]  }
 0x23a   : > { %6512 = vpow2.f32 %v5608_v47  ;;  %v7533_v39 = vld [vmem:[%s8724_s3 + $0x6c] ss:$16 sps:$4 sm:$0xff]   ;;  %v7540_v47 = vld [vmem:[%s8724_s3 + $0x60] ss:$16 sps:$4 sm:$0xff]   ;;  %v7545_v44 = vld [vmem:[%s8724_s3 + $0x68] ss:$16 sps:$4 sm:$0xff]  }
 0x23b   : > { %6514 = vpow2.f32 %v5609_v51  ;;  %v7552_v51 = vld [vmem:[%s8724_s3 + $0x84] ss:$16 sps:$4 sm:$0xff]   ;;  %v7557_v4 = vld [vmem:[%s8724_s3 + $0x8c] ss:$16 sps:$4 sm:$0xff]  }
 0x23c   : > { %6516 = vtanh.f32 %v1520_v52 }
 0x23d   : > { %6518 = vpow2.f32 %v5610_v54  ;;  %v7570_v54 = vld [vmem:[%s8724_s3 + $0x88] ss:$16 sps:$4 sm:$0xff]  }
 0x241   : > { %v6511_v53 = vpop.eup %6510 }
 0x242   : > { %v1232_v55 = vmul.f32 %v6511_v53, %v6509_v50  ;;  %v7565_v53 = vld [vmem:[%s8724_s3 + $0x80] ss:$16 sps:$4 sm:$0xff]  }
 0x244   : > { %v6513_v3 = vpop.eup %6512  ;;  %5611 = vst [vmem:[%s6785_s9 + $0x8] sm:$0xff] %v1232_v55  ;;  %v1562_v63 = vpack.c.bf16 %v1232_v55, %v1232_v55  ;;  %v7582_v55 = vld [vmem:[%s8724_s3 + $0xac] ss:$16 sps:$4 sm:$0xff]  }
 0x245   : > { %v1530_v62 = vadd.f32 1.0, %v6513_v3  ;;  %v6515_v28 = vpop.eup %6514 }
 0x246   : > { %v1531_v29 = vadd.f32 1.0, %v6515_v28  ;;  %1788 = vmatmul.mubr.bf16.vlgmr.msra.gmra.mrb[16].mxu0 %v1562_v63  ;;  %1829 = vmatmul.mubr.bf16.vlgmr.msra.gmra.mrb[16].mxu1 %v1562_v63  ;;  %v6517_v41 = vpop.eup %6516  ;;  %v7597_v63 = vld [vmem:[%s8724_s3 + $0xa8] ss:$16 sps:$4 sm:$0xff]   ;;  %v7604_v28 = vld [vmem:[%s8724_s3 + $0xc4] ss:$16 sps:$4 sm:$0xff]  }
 0x247   : > { %6520 = vrcp.f32 %v1530_v62  ;;  %2068 = vmatpush1.bf16.msra.mxu0 %v7467_v57  ;;  %2109 = vmatpush1.bf16.msra.mxu1 %v7472_v58  ;;  %v6519_v46 = vpop.eup %6518  ;;  %v7592_v62 = vld [vmem:[%s8724_s3 + $0xa0] ss:$16 sps:$4 sm:$0xff]   ;;  %8748 = vst [vmem:[#allocation6_spill] sm:$0xff] %v7604_v28 }
 0x248   : > { %6522 = vrcp.f32 %v1531_v29  ;;  %2069 = vmatprep.subr.bf16.mxu0 %v7478_v0  ;;  %2110 = vmatprep.subr.bf16.mxu1 %v7483_v27  ;;  %v1532_v50 = vadd.f32 1.0, %v6519_v46  ;;  %v7609_v29 = vld [vmem:[%s8724_s3 + $0xcc] ss:$16 sps:$4 sm:$0xff]   ;;  %v7621_v46 = vld [vmem:[%s8724_s3 + $0xc8] ss:$16 sps:$4 sm:$0xff]  }
 0x249   : > { %2099 = vmatprep.mubr.bf16.mxu0 %v8744_v7  ;;  %2140 = vmatprep.mubr.bf16.mxu1 %v8744_v7  ;;  %8749 = vst [vmem:[#allocation7_spill] sm:$0xff] %v7609_v29  ;;  %8750 = vst [vmem:[#allocation8_spill] sm:$0xff] %v7621_v46 }
 0x24a   : > { %6524 = vrcp.f32 %v1532_v50  ;;  %v7645_v50 = vld [vmem:[%s8724_s3 + $0xe8] ss:$16 sps:$4 sm:$0xff]  }
 0x24b   : > { %2070 = vmatpush1.bf16.msra.mxu0 %v7490_v30  ;;  %2111 = vmatpush1.bf16.msra.mxu1 %v7495_v31 }
 0x24c   : > { %2071 = vmatprep.subr.bf16.mxu0 %v7502_v32  ;;  %2112 = vmatprep.subr.bf16.mxu1 %v7507_v34 }
 0x24f   : > { %2072 = vmatpush1.bf16.msra.mxu0 %v7516_v36  ;;  %2113 = vmatpush1.bf16.msra.mxu1 %v7521_v37 }
 0x250   : > { %2073 = vmatprep.subr.bf16.mxu0 %v7528_v40  ;;  %2114 = vmatprep.subr.bf16.mxu1 %v7533_v39 }
 0x251   : > { %v6521_v42 = vpop.eup %6520 }
 0x252   : > { %v1541_v48 = vmul.f32 %v6521_v42, %v6517_v41  ;;  %v6523_v49 = vpop.eup %6522  ;;  %v7616_v41 = vld [vmem:[%s8724_s3 + $0xc0] ss:$16 sps:$4 sm:$0xff]   ;;  %v7628_v42 = vld [vmem:[%s8724_s3 + $0xe4] ss:$16 sps:$4 sm:$0xff]  }
 0x253   : > { %v1540_v52 = vmul.f32 %v6523_v49, %v7242_v45  ;;  %2074 = vmatpush1.bf16.msra.mxu0 %v7540_v47  ;;  %2115 = vmatpush1.bf16.msra.mxu1 %v7545_v44  ;;  %v7577_v45 = vld [vmem:[%s8724_s3 + $0xa4] ss:$16 sps:$4 sm:$0xff]   ;;  %v7640_v49 = vld [vmem:[%s8724_s3 + $0xe0] ss:$16 sps:$4 sm:$0xff]  }
 0x254   : > { %2075 = vmatprep.subr.bf16.mxu0 %v7552_v51  ;;  %2116 = vmatprep.subr.bf16.mxu1 %v7557_v4 }
 0x255   : > { %v7584_v3 = vadd.f32 %v1541_v48, %v1540_v52  ;;  %v7633_v48 = vld [vmem:[%s8724_s3 + $0xec] ss:$16 sps:$4 sm:$0xff]   ;;  %v6525_v52 = vpop.eup %6524 }
 0x257   : > { %6526 = vtanh.f32 %v7584_v3  ;;  %2076 = vmatpush1.bf16.msra.mxu0 %v7565_v53  ;;  %2117 = vmatpush1.bf16.msra.mxu1 %v7570_v54 }
 0x258   : > { %2077 = vmatprep.subr.bf16.mxu0 %v7577_v45  ;;  %2118 = vmatprep.subr.bf16.mxu1 %v7582_v55 }
 0x25b   : > { %2078 = vmatpush1.bf16.msra.mxu0 %v7592_v62  ;;  %2119 = vmatpush1.bf16.msra.mxu1 %v7597_v63 }
 0x25c   : > { %2079 = vmatprep.subr.bf16.mxu0 %v7604_v28  ;;  %2120 = vmatprep.subr.bf16.mxu1 %v7609_v29 }
 0x25f   : > { %2080 = vmatpush1.bf16.msra.mxu0 %v7616_v41  ;;  %2121 = vmatpush1.bf16.msra.mxu1 %v7621_v46 }
 0x260   : > { %2081 = vmatprep.subr.bf16.mxu0 %v7628_v42  ;;  %2122 = vmatprep.subr.bf16.mxu1 %v7633_v48 }
 0x261   : > { %v6527_v29 = vpop.eup %6526 }
 0x262   : > { %v1544_v28 = vmul.f32 %v6527_v29, %v6525_v52 }
 0x263   : > { %2082 = vmatpush1.bf16.msra.mxu0 %v7640_v49  ;;  %2123 = vmatpush1.bf16.msra.mxu1 %v7645_v50 }
 0x264   : > { %5612 = vst [vmem:[%s6790_s13 + $0x30] sm:$0xff] %v1544_v28  ;;  %v1874_v46 = vpack.c.bf16 %v1544_v28, %v1544_v28  ;;  %2387 = vmatprep.subr.bf16.mxu0 %v7265_v56  ;;  %v7674_v56 = vld [vmem:[%s8723_s2 + $0xc] ss:$16 sps:$4 sm:$0xff]   ;;  %v5650_v28 = vld [vmem:[%s6780_s6 + $0x50] sm:$0xff] }
 0x265   : > { %2428 = vmatprep.subr.bf16.mxu1 %v7674_v56 }
 0x266   : > { %2100 = vmatmul.mubr.bf16.vlgmr.msra.gmra.mrb[20].mxu0 %v1874_v46  ;;  %2141 = vmatmul.mubr.bf16.vlgmr.msra.gmra.mrb[20].mxu1 %v1874_v46 }
 0x267   : > { %2388 = vmatpush1.bf16.msra.mxu0 %v7276_v59  ;;  %2419 = vmatprep.mubr.bf16.mxu0 %v8744_v7  ;;  %v7679_v59 = vld [vmem:[%s8723_s2 + $0x8] ss:$16 sps:$4 sm:$0xff]  }
 0x268   : > { %2389 = vmatprep.subr.bf16.mxu0 %v7284_v60  ;;  %2460 = vmatprep.mubr.bf16.mxu1 %v8744_v7  ;;  %v7686_v60 = vld [vmem:[%s8723_s2 + $0x2c] ss:$16 sps:$4 sm:$0xff]  }
 0x269   : > { %2429 = vmatpush1.bf16.msra.mxu1 %v7679_v59 }
 0x26a   : > { %2430 = vmatprep.subr.bf16.mxu1 %v7686_v60 }
 0x26b   : > { %2390 = vmatpush1.bf16.msra.mxu0 %v7295_v8  ;;  %v7691_v8 = vld [vmem:[%s8723_s2 + $0x28] ss:$16 sps:$4 sm:$0xff]  }
 0x26c   : > { %2391 = vmatprep.subr.bf16.mxu0 %v7303_v10  ;;  %v5613_v10 = vld [vmem:[%s6775_s27 + $0x20] sm:$0xff] }
 0x26d   : > { %2431 = vmatpush1.bf16.msra.mxu1 %v7691_v8 }
 0x26e   : > { %2432 = vmatprep.subr.bf16.mxu1 %v7308_v12  ;;  %v1558_v12 = vunpack.c.l.bf16 %v5613_v10 }
 0x26f   : > { %2392 = vmatpush1.bf16.msra.mxu0 %v7313_v13  ;;  %v1559_v13 = vunpack.c.h.bf16 %v5613_v10  ;;  %v1870_v10 = vunpack.c.l.bf16 %v5650_v28 }
 0x270   : > { %2393 = vmatprep.subr.bf16.mxu0 %v7327_v16 }
 0x271   : > { %2433 = vmatpush1.bf16.msra.mxu1 %v7318_v38 }
 0x272   : > { %2434 = vmatprep.subr.bf16.mxu1 %v7332_v43 }
 0x273   : > { %2394 = vmatpush1.bf16.msra.mxu0 %v7337_v61 }
 0x274   : > { %2395 = vmatprep.subr.bf16.mxu0 %v7351_v1  ;;  %v5614_v1 = vld [vmem:[%s6775_s27 + $0x28] sm:$0xff] }
 0x275   : > { %2435 = vmatpush1.bf16.msra.mxu1 %v7342_v35 }
 0x276   : > { %2436 = vmatprep.subr.bf16.mxu1 %v7356_v2 }
 0x277   : > { %2396 = vmatpush1.bf16.msra.mxu0 %v7361_v5 }
 0x278   : > { %2397 = vmatprep.subr.bf16.mxu0 %v7375_v9 }
 0x279   : > { %2437 = vmatpush1.bf16.msra.mxu1 %v7366_v6 }
 0x27a   : > { %2438 = vmatprep.subr.bf16.mxu1 %v7380_v11 }
 0x27b   : > { %2398 = vmatpush1.bf16.msra.mxu0 %v7385_v14 }
 0x27c   : > { %2399 = vmatprep.subr.bf16.mxu0 %v7399_v17  ;;  %v1560_v17 = vunpack.c.l.bf16 %v5614_v1 }
 0x27d   : > { %2439 = vmatpush1.bf16.msra.mxu1 %v7390_v15 }
 0x27e   : > { %2440 = vmatprep.subr.bf16.mxu1 %v7404_v18  ;;  %v1561_v18 = vunpack.c.h.bf16 %v5614_v1 }
 0x27f   : > { %2400 = vmatpush1.bf16.msra.mxu0 %v7409_v19 }
 0x280   : > { %2401 = vmatprep.subr.bf16.mxu0 %v7423_v21 }
 0x281   : > { %2441 = vmatpush1.bf16.msra.mxu1 %v7414_v20 }
 0x282   : > { %2442 = vmatprep.subr.bf16.mxu1 %v7428_v22 }
 0x283   : > { %2402 = vmatpush1.bf16.msra.mxu0 %v7433_v23 }
 0x284   : > { %2699 = vmatprep.subr.bf16.mxu0 %v7447_v25 }
 0x285   : > { %2443 = vmatpush1.bf16.msra.mxu1 %v7438_v24 }
 0x286   : > { %2740 = vmatprep.subr.bf16.mxu1 %v7452_v26 }
 0x319   : > { %v1789_v38 = vpop.f32.mrb[16].mxu0  ;;  %v1830_v16 = vpop.f32.mrb[16].mxu1 }
 0x31a   : > { %v1837_v43 = vadd.f32 %v1789_v38, %v1558_v12  ;;  %v1791_v61 = vpop.f32.mrb[17].mxu0  ;;  %v1832_v35 = vpop.f32.mrb[17].mxu1  ;;  %v1839_v19 = vadd.f32 %v1830_v16, %v1560_v17  ;;  %v1871_v38 = vunpack.c.h.bf16 %v5650_v28 }
 0x31b   : > { %v1838_v2 = vadd.f32 %v1791_v61, %v1559_v13  ;;  %v1793_v5 = vpop.f32.mrb[18].mxu0  ;;  %v1834_v6 = vpop.f32.mrb[18].mxu1  ;;  %v1840_v20 = vadd.f32 %v1832_v35, %v1561_v18 }
 0x31c   : > { %v5647_v9 = vmul.f32 -1.442695, %v1837_v43  ;;  %v1794_v11 = vpop.f32.mrb[19].mxu0  ;;  %v1835_v14 = vpop.f32.mrb[19].mxu1  ;;  %v5649_v21 = vmul.f32 -1.442695, %v1839_v19 }
 0x31d   : > { %v5648_v15 = vmul.f32 -1.442695, %v1838_v2  ;;  %v5651_v6 = vld [vmem:[%s6780_s6 + $0x58] sm:$0xff] }
 0x31e   : > { %6528 = vpow2.f32 %v5647_v9 }
 0x31f   : > { %6530 = vpow2.f32 %v5648_v15 }
 0x320   : > { %6532 = vtanh.f32 %v1840_v20  ;;  %v1873_v20 = vunpack.c.h.bf16 %v5651_v6 }
 0x321   : > { %6534 = vpow2.f32 %v5649_v21 }
 0x328   : > { %v6529_v22 = vpop.eup %6528 }
 0x329   : > { %v1850_v23 = vadd.f32 1.0, %v6529_v22  ;;  %v6531_v24 = vpop.eup %6530 }
 0x32a   : > { %v1851_v25 = vadd.f32 1.0, %v6531_v24  ;;  %v6533_v26 = vpop.eup %6532 }
 0x32b   : > { %6536 = vrcp.f32 %v1850_v23  ;;  %v6535_v29 = vpop.eup %6534 }
 0x32c   : > { %6538 = vrcp.f32 %v1851_v25  ;;  %v1852_v13 = vadd.f32 1.0, %v6535_v29 }
 0x32e   : > { %6540 = vrcp.f32 %v1852_v13  ;;  %v7869_v13 = vld [vmem:[%s8723_s2 + $0xa0] ss:$16 sps:$4 sm:$0xff]  }
 0x335   : > { %v6537_v46 = vpop.eup %6536 }
 0x336   : > { %v1861_v52 = vmul.f32 %v6537_v46, %v6533_v26  ;;  %v6539_v12 = vpop.eup %6538 }
 0x337   : > { %v1860_v16 = vmul.f32 %v6539_v12, %v7460_v33  ;;  %v1872_v33 = vunpack.c.l.bf16 %v5651_v6  ;;  %v7917_v6 = vld [vmem:[%s8723_s2 + $0xe0] ss:$16 sps:$4 sm:$0xff]  }
 0x338   : > { %v6541_v22 = vpop.eup %6540 }
 0x339   : > { %v2101_v43 = vpop.f32.mrb[20].mxu0  ;;  %v2142_v61 = vpop.f32.mrb[20].mxu1  ;;  %v7712_v35 = vadd.f32 %v1861_v52, %v1860_v16  ;;  %v7883_v16 = vld [vmem:[%s8723_s2 + $0xc4] ss:$16 sps:$4 sm:$0xff]  }
 0x33a   : > { %v2149_v1 = vadd.f32 %v2101_v43, %v1870_v10  ;;  %v2103_v2 = vpop.f32.mrb[21].mxu0  ;;  %v2144_v5 = vpop.f32.mrb[21].mxu1  ;;  %v2151_v21 = vadd.f32 %v2142_v61, %v1872_v33  ;;  %v7888_v43 = vld [vmem:[%s8723_s2 + $0xcc] ss:$16 sps:$4 sm:$0xff]   ;;  %v7893_v61 = vld [vmem:[%s8723_s2 + $0xc0] ss:$16 sps:$4 sm:$0xff]  }
 0x33b   : > { %v2150_v9 = vadd.f32 %v2103_v2, %v1871_v38  ;;  %v2105_v11 = vpop.f32.mrb[22].mxu0  ;;  %v2146_v14 = vpop.f32.mrb[22].mxu1  ;;  %6542 = vtanh.f32 %v7712_v35  ;;  %v2152_v23 = vadd.f32 %v2144_v5, %v1873_v20  ;;  %v7874_v38 = vld [vmem:[%s8723_s2 + $0xa8] ss:$16 sps:$4 sm:$0xff]   ;;  %v7907_v2 = vld [vmem:[%s8723_s2 + $0xe4] ss:$16 sps:$4 sm:$0xff]  }
 0x33c   : > { %v5684_v15 = vmul.f32 -1.442695, %v2149_v1  ;;  %v2106_v17 = vpop.f32.mrb[23].mxu0  ;;  %v2147_v18 = vpop.f32.mrb[23].mxu1  ;;  %v5686_v25 = vmul.f32 -1.442695, %v2151_v21 }
 0x33d   : > { %v5685_v19 = vmul.f32 -1.442695, %v2150_v9  ;;  %v7898_v1 = vld [vmem:[%s8723_s2 + $0xc8] ss:$16 sps:$4 sm:$0xff]   ;;  %v7912_v5 = vld [vmem:[%s8723_s2 + $0xec] ss:$16 sps:$4 sm:$0xff]  }
 0x33e   : > { %6544 = vpow2.f32 %v5684_v15  ;;  %v7922_v9 = vld [vmem:[%s8723_s2 + $0xe8] ss:$16 sps:$4 sm:$0xff]   ;;  %v7931_v11 = vld [vmem:[%s8724_s3 + $0x4] ss:$16 sps:$4 sm:$0xff]   ;;  %v7936_v14 = vld [vmem:[%s8724_s3 + $0xc] ss:$16 sps:$4 sm:$0xff]  }
 0x33f   : > { %6546 = vpow2.f32 %v5685_v19  ;;  %v5689_v15 = vld [vmem:[%s6775_s27 + $0x30] sm:$0xff] }
 0x340   : > { %6548 = vtanh.f32 %v2152_v23  ;;  %v2190_v17 = vunpack.c.l.bf16 %v5689_v15  ;;  %v2191_v18 = vunpack.c.h.bf16 %v5689_v15  ;;  %v5690_v23 = vld [vmem:[%s6775_s27 + $0x38] sm:$0xff] }
 0x341   : > { %6550 = vpow2.f32 %v5686_v25 }
 0x345   : > { %v6543_v24 = vpop.eup %6542 }
 0x346   : > { %v1864_v26 = vmul.f32 %v6543_v24, %v6541_v22 }
 0x348   : > { %v6545_v28 = vpop.eup %6544  ;;  %5687 = vst [vmem:[%s6785_s9 + $0x10] sm:$0xff] %v1864_v26  ;;  %v2194_v46 = vpack.c.bf16 %v1864_v26, %v1864_v26 }
 0x349   : > { %v2162_v29 = vadd.f32 1.0, %v6545_v28  ;;  %v6547_v52 = vpop.eup %6546 }
 0x34a   : > { %v2163_v10 = vadd.f32 1.0, %v6547_v52  ;;  %2420 = vmatmul.mubr.bf16.vlgmr.msra.gmra.mrb[24].mxu0 %v2194_v46  ;;  %2461 = vmatmul.mubr.bf16.vlgmr.msra.gmra.mrb[24].mxu1 %v2194_v46 }
 0x34b   : > { %6552 = vrcp.f32 %v2162_v29  ;;  %2700 = vmatpush1.bf16.msra.mxu0 %v7467_v57  ;;  %2741 = vmatpush1.bf16.msra.mxu1 %v7472_v58  ;;  %v6549_v57 = vpop.eup %6548 }
 0x34c   : > { %6554 = vrcp.f32 %v2163_v10  ;;  %2701 = vmatprep.subr.bf16.mxu0 %v7478_v0  ;;  %2742 = vmatprep.subr.bf16.mxu1 %v7483_v27  ;;  %v6551_v12 = vpop.eup %6550  ;;  %v2192_v10 = vunpack.c.l.bf16 %v5690_v23 }
 0x34d   : > { %2731 = vmatprep.mubr.bf16.mxu0 %v8744_v7  ;;  %2772 = vmatprep.mubr.bf16.mxu1 %v8744_v7 }
 0x34f   : > { %2702 = vmatpush1.bf16.msra.mxu0 %v7490_v30  ;;  %2743 = vmatpush1.bf16.msra.mxu1 %v7495_v31  ;;  %v2164_v30 = vadd.f32 1.0, %v6551_v12 }
 0x350   : > { %2703 = vmatprep.subr.bf16.mxu0 %v7502_v32  ;;  %2744 = vmatprep.subr.bf16.mxu1 %v7507_v34  ;;  %v8751_v34 = vld [vmem:[#allocation6_spill] sm:$0xff] }
 0x351   : > { %6556 = vrcp.f32 %v2164_v30 }
 0x353   : > { %2704 = vmatpush1.bf16.msra.mxu0 %v7516_v36  ;;  %2745 = vmatpush1.bf16.msra.mxu1 %v7521_v37  ;;  %v8752_v36 = vld [vmem:[#allocation7_spill] sm:$0xff]  ;;  %v8753_v37 = vld [vmem:[#allocation8_spill] sm:$0xff] }
 0x354   : > { %2705 = vmatprep.subr.bf16.mxu0 %v7528_v40  ;;  %2746 = vmatprep.subr.bf16.mxu1 %v7533_v39 }
 0x355   : > { %v6553_v58 = vpop.eup %6552 }
 0x356   : > { %v2173_v0 = vmul.f32 %v6553_v58, %v6549_v57  ;;  %v6555_v27 = vpop.eup %6554  ;;  %v2193_v57 = vunpack.c.h.bf16 %v5690_v23 }
 0x357   : > { %v2172_v31 = vmul.f32 %v6555_v27, %v7584_v3  ;;  %2706 = vmatpush1.bf16.msra.mxu0 %v7540_v47  ;;  %2747 = vmatpush1.bf16.msra.mxu1 %v7545_v44  ;;  %v7797_v3 = vld [vmem:[%s8723_s2 + $0x40] ss:$16 sps:$4 sm:$0xff]  }
 0x358   : > { %2707 = vmatprep.subr.bf16.mxu0 %v7552_v51  ;;  %2748 = vmatprep.subr.bf16.mxu1 %v7557_v4  ;;  %v7763_v51 = vld [vmem:[%s8723_s2 + $0x4] ss:$16 sps:$4 sm:$0xff]   ;;  %v7768_v4 = vld [vmem:[%s8723_s2] ss:$16 sps:$4 sm:$0xff]  }
 0x359   : > { %v7736_v32 = vadd.f32 %v2173_v0, %v2172_v31 }
 0x35b   : > { %6558 = vtanh.f32 %v7736_v32  ;;  %2708 = vmatpush1.bf16.msra.mxu0 %v7565_v53  ;;  %2749 = vmatpush1.bf16.msra.mxu1 %v7570_v54  ;;  %v6557_v40 = vpop.eup %6556  ;;  %v7775_v53 = vld [vmem:[%s8723_s2 + $0x24] ss:$16 sps:$4 sm:$0xff]   ;;  %v7780_v54 = vld [vmem:[%s8723_s2 + $0x20] ss:$16 sps:$4 sm:$0xff]  }
 0x35c   : > { %2709 = vmatprep.subr.bf16.mxu0 %v7577_v45  ;;  %2750 = vmatprep.subr.bf16.mxu1 %v7582_v55  ;;  %v7787_v45 = vld [vmem:[%s8723_s2 + $0x44] ss:$16 sps:$4 sm:$0xff]   ;;  %v7792_v55 = vld [vmem:[%s8723_s2 + $0x4c] ss:$16 sps:$4 sm:$0xff]  }
 0x35f   : > { %2710 = vmatpush1.bf16.msra.mxu0 %v7592_v62  ;;  %2751 = vmatpush1.bf16.msra.mxu1 %v7597_v63  ;;  %v7802_v62 = vld [vmem:[%s8723_s2 + $0x48] ss:$16 sps:$4 sm:$0xff]   ;;  %v7811_v63 = vld [vmem:[%s8723_s2 + $0x64] ss:$16 sps:$4 sm:$0xff]  }
 0x360   : > { %2711 = vmatprep.subr.bf16.mxu0 %v8751_v34  ;;  %2752 = vmatprep.subr.bf16.mxu1 %v8752_v36 }
 0x363   : > { %2712 = vmatpush1.bf16.msra.mxu0 %v7616_v41  ;;  %2753 = vmatpush1.bf16.msra.mxu1 %v8753_v37  ;;  %v7816_v41 = vld [vmem:[%s8723_s2 + $0x6c] ss:$16 sps:$4 sm:$0xff]   ;;  %v5726_v37 = vld [vmem:[%s6780_s6 + $0x40] sm:$0xff] }
 0x364   : > { %2713 = vmatprep.subr.bf16.mxu0 %v7628_v42  ;;  %2754 = vmatprep.subr.bf16.mxu1 %v7633_v48  ;;  %v7821_v42 = vld [vmem:[%s8723_s2 + $0x60] ss:$16 sps:$4 sm:$0xff]   ;;  %v7826_v48 = vld [vmem:[%s8723_s2 + $0x68] ss:$16 sps:$4 sm:$0xff]  }
 0x365   : > { %v6559_v39 = vpop.eup %6558 }
 0x366   : > { %v2176_v47 = vmul.f32 %v6559_v39, %v6557_v40 }
 0x367   : > { %2714 = vmatpush1.bf16.msra.mxu0 %v7640_v49  ;;  %2755 = vmatpush1.bf16.msra.mxu1 %v7645_v50  ;;  %v7835_v49 = vld [vmem:[%s8723_s2 + $0x84] ss:$16 sps:$4 sm:$0xff]   ;;  %v7840_v50 = vld [vmem:[%s8723_s2 + $0x8c] ss:$16 sps:$4 sm:$0xff]  }
 0x368   : > { %5688 = vst [vmem:[%s6790_s13 + $0x28] sm:$0xff] %v2176_v47  ;;  %v2506_v44 = vpack.c.bf16 %v2176_v47, %v2176_v47  ;;  %3060 = vmatprep.subr.bf16.mxu1 %v7674_v56  ;;  %3019 = vmatprep.subr.bf16.mxu0 %v7763_v51  ;;  %v7845_v56 = vld [vmem:[%s8723_s2 + $0x80] ss:$16 sps:$4 sm:$0xff]  }
 0x36a   : > { %2732 = vmatmul.mubr.bf16.vlgmr.msra.gmra.mrb[28].mxu0 %v2506_v44  ;;  %2773 = vmatmul.mubr.bf16.vlgmr.msra.gmra.mrb[28].mxu1 %v2506_v44  ;;  %v2502_v44 = vunpack.c.l.bf16 %v5726_v37 }
 0x36b   : > { %3061 = vmatpush1.bf16.msra.mxu1 %v7679_v59  ;;  %3051 = vmatprep.mubr.bf16.mxu0 %v8744_v7  ;;  %v7850_v59 = vld [vmem:[%s8723_s2 + $0x88] ss:$16 sps:$4 sm:$0xff]  }
 0x36c   : > { %3062 = vmatprep.subr.bf16.mxu1 %v7686_v60  ;;  %3092 = vmatprep.mubr.bf16.mxu1 %v8744_v7  ;;  %v7859_v60 = vld [vmem:[%s8723_s2 + $0xa4] ss:$16 sps:$4 sm:$0xff]  }
 0x36d   : > { %3020 = vmatpush1.bf16.msra.mxu0 %v7768_v4 }
 0x36e   : > { %3021 = vmatprep.subr.bf16.mxu0 %v7775_v53 }
 0x36f   : > { %3063 = vmatpush1.bf16.msra.mxu1 %v7691_v8  ;;  %v7864_v8 = vld [vmem:[%s8723_s2 + $0xac] ss:$16 sps:$4 sm:$0xff]  }
 0x370   : > { %3064 = vmatprep.subr.bf16.mxu1 %v7792_v55 }
 0x371   : > { %3022 = vmatpush1.bf16.msra.mxu0 %v7780_v54 }
 0x372   : > { %3023 = vmatprep.subr.bf16.mxu0 %v7787_v45 }
 0x373   : > { %3065 = vmatpush1.bf16.msra.mxu1 %v7802_v62 }
 0x374   : > { %3066 = vmatprep.subr.bf16.mxu1 %v7816_v41 }
 0x375   : > { %3024 = vmatpush1.bf16.msra.mxu0 %v7797_v3 }
 0x376   : > { %3025 = vmatprep.subr.bf16.mxu0 %v7811_v63 }
 0x377   : > { %3067 = vmatpush1.bf16.msra.mxu1 %v7826_v48 }
 0x378   : > { %3068 = vmatprep.subr.bf16.mxu1 %v7840_v50 }
 0x379   : > { %3026 = vmatpush1.bf16.msra.mxu0 %v7821_v42 }
 0x37a   : > { %3027 = vmatprep.subr.bf16.mxu0 %v7835_v49 }
 0x37b   : > { %3069 = vmatpush1.bf16.msra.mxu1 %v7850_v59 }
 0x37c   : > { %3070 = vmatprep.subr.bf16.mxu1 %v7864_v8 }
 0x37d   : > { %3028 = vmatpush1.bf16.msra.mxu0 %v7845_v56 }
 0x37e   : > { %3029 = vmatprep.subr.bf16.mxu0 %v7859_v60 }
 0x37f   : > { %3071 = vmatpush1.bf16.msra.mxu1 %v7874_v38 }
 0x380   : > { %3072 = vmatprep.subr.bf16.mxu1 %v7888_v43 }
 0x381   : > { %3030 = vmatpush1.bf16.msra.mxu0 %v7869_v13 }
 0x382   : > { %3031 = vmatprep.subr.bf16.mxu0 %v7883_v16 }
 0x383   : > { %3073 = vmatpush1.bf16.msra.mxu1 %v7898_v1 }
 0x384   : > { %3074 = vmatprep.subr.bf16.mxu1 %v7912_v5 }
 0x385   : > { %3032 = vmatpush1.bf16.msra.mxu0 %v7893_v61 }
 0x386   : > { %3033 = vmatprep.subr.bf16.mxu0 %v7907_v2 }
 0x387   : > { %3075 = vmatpush1.bf16.msra.mxu1 %v7922_v9 }
 0x388   : > { %3372 = vmatprep.subr.bf16.mxu1 %v7936_v14 }
 0x389   : > { %3034 = vmatpush1.bf16.msra.mxu0 %v7917_v6 }
 0x38a   : > { %3331 = vmatprep.subr.bf16.mxu0 %v7931_v11 }
 0x41d   : > { %v2421_v19 = vpop.f32.mrb[24].mxu0  ;;  %v2462_v33 = vpop.f32.mrb[24].mxu1 }
 0x41e   : > { %v2469_v20 = vadd.f32 %v2421_v19, %v2190_v17  ;;  %v2423_v21 = vpop.f32.mrb[25].mxu0  ;;  %v2464_v22 = vpop.f32.mrb[25].mxu1  ;;  %v2471_v12 = vadd.f32 %v2462_v33, %v2192_v10 }
 0x41f   : > { %v2470_v24 = vadd.f32 %v2423_v21, %v2191_v18  ;;  %v2425_v25 = vpop.f32.mrb[26].mxu0  ;;  %v2466_v26 = vpop.f32.mrb[26].mxu1  ;;  %v2472_v58 = vadd.f32 %v2464_v22, %v2193_v57  ;;  %v2503_v18 = vunpack.c.h.bf16 %v5726_v37  ;;  %v7951_v37 = vld [vmem:[%s8724_s3] ss:$16 sps:$4 sm:$0xff]  }
 0x420   : > { %v5723_v28 = vmul.f32 -1.442695, %v2469_v20  ;;  %v2426_v29 = vpop.f32.mrb[27].mxu0  ;;  %v2467_v46 = vpop.f32.mrb[27].mxu1  ;;  %v5725_v0 = vmul.f32 -1.442695, %v2471_v12 }
 0x421   : > { %v5724_v52 = vmul.f32 -1.442695, %v2470_v24  ;;  %v5727_v25 = vld [vmem:[%s6780_s6 + $0x48] sm:$0xff] }
 0x422   : > { %6560 = vpow2.f32 %v5723_v28  ;;  %v2505_v12 = vunpack.c.h.bf16 %v5727_v25 }
 0x423   : > { %6562 = vpow2.f32 %v5724_v52 }
 0x424   : > { %6564 = vtanh.f32 %v2472_v58 }
 0x425   : > { %6566 = vpow2.f32 %v5725_v0 }
 0x42c   : > { %v6561_v27 = vpop.eup %6560 }
 0x42d   : > { %v2482_v30 = vadd.f32 1.0, %v6561_v27  ;;  %v6563_v31 = vpop.eup %6562 }
 0x42e   : > { %v2483_v34 = vadd.f32 1.0, %v6563_v31  ;;  %v6565_v36 = vpop.eup %6564 }
 0x42f   : > { %6568 = vrcp.f32 %v2482_v30  ;;  %v6567_v40 = vpop.eup %6566 }
 0x430   : > { %6570 = vrcp.f32 %v2483_v34  ;;  %v2484_v17 = vadd.f32 1.0, %v6567_v40  ;;  %v7956_v40 = vld [vmem:[%s8724_s3 + $0x8] ss:$16 sps:$4 sm:$0xff]  }
 0x432   : > { %6572 = vrcp.f32 %v2484_v17 }
 0x439   : > { %v6569_v39 = vpop.eup %6568 }
 0x43a   : > { %v2493_v47 = vmul.f32 %v6569_v39, %v6565_v36  ;;  %v6571_v15 = vpop.eup %6570 }
 0x43b   : > { %v2492_v19 = vmul.f32 %v6571_v15, %v7712_v35  ;;  %v2504_v35 = vunpack.c.l.bf16 %v5727_v25  ;;  %v7967_v15 = vld [vmem:[%s8724_s3 + $0x2c] ss:$16 sps:$4 sm:$0xff]   ;;  %v8012_v25 = vld [vmem:[%s8724_s3 + $0x64] ss:$16 sps:$4 sm:$0xff]  }
 0x43c   : > { %v6573_v0 = vpop.eup %6572 }
 0x43d   : > { %v2733_v33 = vpop.f32.mrb[28].mxu0  ;;  %v2774_v20 = vpop.f32.mrb[28].mxu1  ;;  %v7944_v21 = vadd.f32 %v2493_v47, %v2492_v19  ;;  %v7974_v19 = vld [vmem:[%s8724_s3 + $0x20] ss:$16 sps:$4 sm:$0xff]  }
 0x43e   : > { %v2781_v22 = vadd.f32 %v2733_v33, %v2502_v44  ;;  %v2735_v23 = vpop.f32.mrb[29].mxu0  ;;  %v2776_v24 = vpop.f32.mrb[29].mxu1  ;;  %v2783_v58 = vadd.f32 %v2774_v20, %v2504_v35  ;;  %v7962_v44 = vld [vmem:[%s8724_s3 + $0x24] ss:$16 sps:$4 sm:$0xff]   ;;  %v7979_v33 = vld [vmem:[%s8724_s3 + $0x28] ss:$16 sps:$4 sm:$0xff]  }
 0x43f   : > { %v2782_v26 = vadd.f32 %v2735_v23, %v2503_v18  ;;  %v2737_v28 = vpop.f32.mrb[30].mxu0  ;;  %v2778_v29 = vpop.f32.mrb[30].mxu1  ;;  %6574 = vtanh.f32 %v7944_v21  ;;  %v2784_v27 = vadd.f32 %v2776_v24, %v2505_v12  ;;  %v7986_v20 = vld [vmem:[%s8724_s3 + $0x44] ss:$16 sps:$4 sm:$0xff]   ;;  %v8000_v23 = vld [vmem:[%s8724_s3 + $0x40] ss:$16 sps:$4 sm:$0xff]  }
 0x440   : > { %v5760_v46 = vmul.f32 -1.442695, %v2781_v22  ;;  %v2738_v52 = vpop.f32.mrb[31].mxu0  ;;  %v2779_v10 = vpop.f32.mrb[31].mxu1  ;;  %v5762_v31 = vmul.f32 -1.442695, %v2783_v58 }
 0x441   : > { %v5761_v57 = vmul.f32 -1.442695, %v2782_v26  ;;  %v7991_v22 = vld [vmem:[%s8724_s3 + $0x4c] ss:$16 sps:$4 sm:$0xff]   ;;  %v8005_v24 = vld [vmem:[%s8724_s3 + $0x48] ss:$16 sps:$4 sm:$0xff]  }
 0x442   : > { %6576 = vpow2.f32 %v5760_v46  ;;  %v8017_v26 = vld [vmem:[%s8724_s3 + $0x6c] ss:$16 sps:$4 sm:$0xff]   ;;  %v8024_v46 = vld [vmem:[%s8724_s3 + $0x60] ss:$16 sps:$4 sm:$0xff]   ;;  %v8029_v52 = vld [vmem:[%s8724_s3 + $0x68] ss:$16 sps:$4 sm:$0xff]  }
 0x443   : > { %6578 = vpow2.f32 %v5761_v57  ;;  %v8036_v57 = vld [vmem:[%s8724_s3 + $0x84] ss:$16 sps:$4 sm:$0xff]   ;;  %v8041_v35 = vld [vmem:[%s8724_s3 + $0x8c] ss:$16 sps:$4 sm:$0xff]  }
 0x444   : > { %6580 = vtanh.f32 %v2784_v27 }
 0x445   : > { %6582 = vpow2.f32 %v5762_v31  ;;  %v8054_v31 = vld [vmem:[%s8724_s3 + $0x88] ss:$16 sps:$4 sm:$0xff]  }
 0x449   : > { %v6575_v30 = vpop.eup %6574 }
 0x44a   : > { %v2496_v34 = vmul.f32 %v6575_v30, %v6573_v0  ;;  %v8049_v30 = vld [vmem:[%s8724_s3 + $0x80] ss:$16 sps:$4 sm:$0xff]  }
 0x44c   : > { %v6577_v36 = vpop.eup %6576  ;;  %5763 = vst [vmem:[%s6785_s9 + $0x18] sm:$0xff] %v2496_v34  ;;  %v2826_v47 = vpack.c.bf16 %v2496_v34, %v2496_v34  ;;  %v8066_v34 = vld [vmem:[%s8724_s3 + $0xac] ss:$16 sps:$4 sm:$0xff]  }
 0x44d   : > { %v2794_v39 = vadd.f32 1.0, %v6577_v36  ;;  %v6579_v17 = vpop.eup %6578 }
 0x44e   : > { %v2795_v18 = vadd.f32 1.0, %v6579_v17  ;;  %3052 = vmatmul.mubr.bf16.vlgmr.msra.gmra.mrb[32].mxu0 %v2826_v47  ;;  %3093 = vmatmul.mubr.bf16.vlgmr.msra.gmra.mrb[32].mxu1 %v2826_v47  ;;  %v6581_v28 = vpop.eup %6580  ;;  %v8081_v47 = vld [vmem:[%s8724_s3 + $0xa8] ss:$16 sps:$4 sm:$0xff]   ;;  %v8088_v17 = vld [vmem:[%s8724_s3 + $0xc4] ss:$16 sps:$4 sm:$0xff]  }
 0x44f   : > { %6584 = vrcp.f32 %v2794_v39  ;;  %3332 = vmatpush1.bf16.msra.mxu0 %v7951_v37  ;;  %3373 = vmatpush1.bf16.msra.mxu1 %v7956_v40  ;;  %v6583_v29 = vpop.eup %6582  ;;  %v8076_v39 = vld [vmem:[%s8724_s3 + $0xa0] ss:$16 sps:$4 sm:$0xff]   ;;  %8754 = vst [vmem:[#allocation6_spill] sm:$0xff] %v8088_v17 }
 0x450   : > { %6586 = vrcp.f32 %v2795_v18  ;;  %3333 = vmatprep.subr.bf16.mxu0 %v7962_v44  ;;  %3374 = vmatprep.subr.bf16.mxu1 %v7967_v15  ;;  %v2796_v0 = vadd.f32 1.0, %v6583_v29  ;;  %v8093_v18 = vld [vmem:[%s8724_s3 + $0xcc] ss:$16 sps:$4 sm:$0xff]   ;;  %v8105_v29 = vld [vmem:[%s8724_s3 + $0xc8] ss:$16 sps:$4 sm:$0xff]  }
 0x451   : > { %3363 = vmatprep.mubr.bf16.mxu0 %v8744_v7  ;;  %3404 = vmatprep.mubr.bf16.mxu1 %v8744_v7  ;;  %8755 = vst [vmem:[#allocation7_spill] sm:$0xff] %v8093_v18  ;;  %8756 = vst [vmem:[#allocation8_spill] sm:$0xff] %v8105_v29 }
 0x452   : > { %6588 = vrcp.f32 %v2796_v0  ;;  %v8129_v0 = vld [vmem:[%s8724_s3 + $0xe8] ss:$16 sps:$4 sm:$0xff]  }
 0x453   : > { %3334 = vmatpush1.bf16.msra.mxu0 %v7974_v19  ;;  %3375 = vmatpush1.bf16.msra.mxu1 %v7979_v33 }
 0x454   : > { %3335 = vmatprep.subr.bf16.mxu0 %v7986_v20  ;;  %3376 = vmatprep.subr.bf16.mxu1 %v7991_v22 }
 0x457   : > { %3336 = vmatpush1.bf16.msra.mxu0 %v8000_v23  ;;  %3377 = vmatpush1.bf16.msra.mxu1 %v8005_v24 }
 0x458   : > { %3337 = vmatprep.subr.bf16.mxu0 %v8012_v25  ;;  %3378 = vmatprep.subr.bf16.mxu1 %v8017_v26 }
 0x459   : > { %v6585_v10 = vpop.eup %6584 }
 0x45a   : > { %v2805_v12 = vmul.f32 %v6585_v10, %v6581_v28  ;;  %v6587_v58 = vpop.eup %6586  ;;  %v8100_v28 = vld [vmem:[%s8724_s3 + $0xc0] ss:$16 sps:$4 sm:$0xff]   ;;  %v8112_v10 = vld [vmem:[%s8724_s3 + $0xe4] ss:$16 sps:$4 sm:$0xff]  }
 0x45b   : > { %v2804_v27 = vmul.f32 %v6587_v58, %v7736_v32  ;;  %3338 = vmatpush1.bf16.msra.mxu0 %v8024_v46  ;;  %3379 = vmatpush1.bf16.msra.mxu1 %v8029_v52  ;;  %v8061_v32 = vld [vmem:[%s8724_s3 + $0xa4] ss:$16 sps:$4 sm:$0xff]   ;;  %v8124_v58 = vld [vmem:[%s8724_s3 + $0xe0] ss:$16 sps:$4 sm:$0xff]  }
 0x45c   : > { %3339 = vmatprep.subr.bf16.mxu0 %v8036_v57  ;;  %3380 = vmatprep.subr.bf16.mxu1 %v8041_v35 }
 0x45d   : > { %v8068_v36 = vadd.f32 %v2805_v12, %v2804_v27  ;;  %v8117_v12 = vld [vmem:[%s8724_s3 + $0xec] ss:$16 sps:$4 sm:$0xff]   ;;  %v6589_v27 = vpop.eup %6588 }
 0x45f   : > { %6590 = vtanh.f32 %v8068_v36  ;;  %3340 = vmatpush1.bf16.msra.mxu0 %v8049_v30  ;;  %3381 = vmatpush1.bf16.msra.mxu1 %v8054_v31 }
 0x460   : > { %3341 = vmatprep.subr.bf16.mxu0 %v8061_v32  ;;  %3382 = vmatprep.subr.bf16.mxu1 %v8066_v34 }
 0x463   : > { %3342 = vmatpush1.bf16.msra.mxu0 %v8076_v39  ;;  %3383 = vmatpush1.bf16.msra.mxu1 %v8081_v47 }
 0x464   : > { %3343 = vmatprep.subr.bf16.mxu0 %v8088_v17  ;;  %3384 = vmatprep.subr.bf16.mxu1 %v8093_v18 }
 0x467   : > { %3344 = vmatpush1.bf16.msra.mxu0 %v8100_v28  ;;  %3385 = vmatpush1.bf16.msra.mxu1 %v8105_v29 }
 0x468   : > { %3345 = vmatprep.subr.bf16.mxu0 %v8112_v10  ;;  %3386 = vmatprep.subr.bf16.mxu1 %v8117_v12 }
 0x469   : > { %v6591_v18 = vpop.eup %6590 }
 0x46a   : > { %v2808_v17 = vmul.f32 %v6591_v18, %v6589_v27 }
 0x46b   : > { %3346 = vmatpush1.bf16.msra.mxu0 %v8124_v58  ;;  %3387 = vmatpush1.bf16.msra.mxu1 %v8129_v0 }
 0x46c   : > { %5764 = vst [vmem:[%s6790_s13 + $0x20] sm:$0xff] %v2808_v17  ;;  %v3138_v29 = vpack.c.bf16 %v2808_v17, %v2808_v17  ;;  %3651 = vmatprep.subr.bf16.mxu0 %v7763_v51  ;;  %v8158_v51 = vld [vmem:[%s8723_s2 + $0xc] ss:$16 sps:$4 sm:$0xff]   ;;  %v5802_v17 = vld [vmem:[%s6780_s6 + $0x30] sm:$0xff] }
 0x46d   : > { %3692 = vmatprep.subr.bf16.mxu1 %v8158_v51 }
 0x46e   : > { %3364 = vmatmul.mubr.bf16.vlgmr.msra.gmra.mrb[36].mxu0 %v3138_v29  ;;  %3405 = vmatmul.mubr.bf16.vlgmr.msra.gmra.mrb[36].mxu1 %v3138_v29 }
 0x46f   : > { %3652 = vmatpush1.bf16.msra.mxu0 %v7768_v4  ;;  %3683 = vmatprep.mubr.bf16.mxu0 %v8744_v7  ;;  %v8163_v4 = vld [vmem:[%s8723_s2 + $0x8] ss:$16 sps:$4 sm:$0xff]  }
 0x470   : > { %3653 = vmatprep.subr.bf16.mxu0 %v7775_v53  ;;  %3724 = vmatprep.mubr.bf16.mxu1 %v8744_v7  ;;  %v8170_v53 = vld [vmem:[%s8723_s2 + $0x2c] ss:$16 sps:$4 sm:$0xff]  }
 0x471   : > { %3693 = vmatpush1.bf16.msra.mxu1 %v8163_v4 }
 0x472   : > { %3694 = vmatprep.subr.bf16.mxu1 %v8170_v53 }
 0x473   : > { %3654 = vmatpush1.bf16.msra.mxu0 %v7780_v54  ;;  %v8175_v54 = vld [vmem:[%s8723_s2 + $0x28] ss:$16 sps:$4 sm:$0xff]  }
 0x474   : > { %3655 = vmatprep.subr.bf16.mxu0 %v7787_v45  ;;  %v5765_v45 = vld [vmem:[%s6775_s27 + $0x40] sm:$0xff] }
 0x475   : > { %3695 = vmatpush1.bf16.msra.mxu1 %v8175_v54 }
 0x476   : > { %3696 = vmatprep.subr.bf16.mxu1 %v7792_v55  ;;  %v2822_v55 = vunpack.c.l.bf16 %v5765_v45 }
 0x477   : > { %3656 = vmatpush1.bf16.msra.mxu0 %v7797_v3  ;;  %v2823_v3 = vunpack.c.h.bf16 %v5765_v45  ;;  %v3134_v45 = vunpack.c.l.bf16 %v5802_v17 }
 0x478   : > { %3657 = vmatprep.subr.bf16.mxu0 %v7811_v63 }
 0x479   : > { %3697 = vmatpush1.bf16.msra.mxu1 %v7802_v62 }
 0x47a   : > { %3698 = vmatprep.subr.bf16.mxu1 %v7816_v41 }
 0x47b   : > { %3658 = vmatpush1.bf16.msra.mxu0 %v7821_v42 }
 0x47c   : > { %3659 = vmatprep.subr.bf16.mxu0 %v7835_v49  ;;  %v5766_v49 = vld [vmem:[%s6775_s27 + $0x48] sm:$0xff] }
 0x47d   : > { %3699 = vmatpush1.bf16.msra.mxu1 %v7826_v48 }
 0x47e   : > { %3700 = vmatprep.subr.bf16.mxu1 %v7840_v50 }
 0x47f   : > { %3660 = vmatpush1.bf16.msra.mxu0 %v7845_v56 }
 0x480   : > { %3661 = vmatprep.subr.bf16.mxu0 %v7859_v60 }
 0x481   : > { %3701 = vmatpush1.bf16.msra.mxu1 %v7850_v59 }
 0x482   : > { %3702 = vmatprep.subr.bf16.mxu1 %v7864_v8 }
 0x483   : > { %3662 = vmatpush1.bf16.msra.mxu0 %v7869_v13 }
 0x484   : > { %3663 = vmatprep.subr.bf16.mxu0 %v7883_v16  ;;  %v2824_v16 = vunpack.c.l.bf16 %v5766_v49 }
 0x485   : > { %3703 = vmatpush1.bf16.msra.mxu1 %v7874_v38 }
 0x486   : > { %3704 = vmatprep.subr.bf16.mxu1 %v7888_v43  ;;  %v2825_v43 = vunpack.c.h.bf16 %v5766_v49 }
 0x487   : > { %3664 = vmatpush1.bf16.msra.mxu0 %v7893_v61 }
 0x488   : > { %3665 = vmatprep.subr.bf16.mxu0 %v7907_v2 }
 0x489   : > { %3705 = vmatpush1.bf16.msra.mxu1 %v7898_v1 }
 0x48a   : > { %3706 = vmatprep.subr.bf16.mxu1 %v7912_v5 }
 0x48b   : > { %3666 = vmatpush1.bf16.msra.mxu0 %v7917_v6 }
 0x48c   : > { %3963 = vmatprep.subr.bf16.mxu0 %v7931_v11 }
 0x48d   : > { %3707 = vmatpush1.bf16.msra.mxu1 %v7922_v9 }
 0x48e   : > { %4004 = vmatprep.subr.bf16.mxu1 %v7936_v14 }
 0x521   : > { %v3053_v62 = vpop.f32.mrb[32].mxu0  ;;  %v3094_v63 = vpop.f32.mrb[32].mxu1 }
 0x522   : > { %v3101_v41 = vadd.f32 %v3053_v62, %v2822_v55  ;;  %v3055_v42 = vpop.f32.mrb[33].mxu0  ;;  %v3096_v48 = vpop.f32.mrb[33].mxu1  ;;  %v3103_v61 = vadd.f32 %v3094_v63, %v2824_v16  ;;  %v3135_v62 = vunpack.c.h.bf16 %v5802_v17 }
 0x523   : > { %v3102_v50 = vadd.f32 %v3055_v42, %v2823_v3  ;;  %v3057_v56 = vpop.f32.mrb[34].mxu0  ;;  %v3098_v59 = vpop.f32.mrb[34].mxu1  ;;  %v3104_v1 = vadd.f32 %v3096_v48, %v2825_v43 }
 0x524   : > { %v5799_v60 = vmul.f32 -1.442695, %v3101_v41  ;;  %v3058_v8 = vpop.f32.mrb[35].mxu0  ;;  %v3099_v13 = vpop.f32.mrb[35].mxu1  ;;  %v5801_v2 = vmul.f32 -1.442695, %v3103_v61 }
 0x525   : > { %v5800_v38 = vmul.f32 -1.442695, %v3102_v50  ;;  %v5803_v59 = vld [vmem:[%s6780_s6 + $0x38] sm:$0xff] }
 0x526   : > { %6592 = vpow2.f32 %v5799_v60 }
 0x527   : > { %6594 = vpow2.f32 %v5800_v38 }
 0x528   : > { %6596 = vtanh.f32 %v3104_v1  ;;  %v3137_v1 = vunpack.c.h.bf16 %v5803_v59 }
 0x529   : > { %6598 = vpow2.f32 %v5801_v2 }
 0x530   : > { %v6593_v5 = vpop.eup %6592 }
 0x531   : > { %v3114_v6 = vadd.f32 1.0, %v6593_v5  ;;  %v6595_v9 = vpop.eup %6594 }
 0x532   : > { %v3115_v11 = vadd.f32 1.0, %v6595_v9  ;;  %v6597_v14 = vpop.eup %6596 }
 0x533   : > { %6600 = vrcp.f32 %v3114_v6  ;;  %v6599_v18 = vpop.eup %6598 }
 0x534   : > { %6602 = vrcp.f32 %v3115_v11  ;;  %v3116_v3 = vadd.f32 1.0, %v6599_v18 }
 0x536   : > { %6604 = vrcp.f32 %v3116_v3  ;;  %v8353_v3 = vld [vmem:[%s8723_s2 + $0xa0] ss:$16 sps:$4 sm:$0xff]  }
 0x53d   : > { %v6601_v29 = vpop.eup %6600 }
 0x53e   : > { %v3125_v27 = vmul.f32 %v6601_v29, %v6597_v14  ;;  %v6603_v55 = vpop.eup %6602 }
 0x53f   : > { %v3124_v63 = vmul.f32 %v6603_v55, %v7944_v21  ;;  %v3136_v21 = vunpack.c.l.bf16 %v5803_v59  ;;  %v8401_v59 = vld [vmem:[%s8723_s2 + $0xe0] ss:$16 sps:$4 sm:$0xff]  }
 0x540   : > { %v6605_v5 = vpop.eup %6604 }
 0x541   : > { %v3365_v41 = vpop.f32.mrb[36].mxu0  ;;  %v3406_v42 = vpop.f32.mrb[36].mxu1  ;;  %v8196_v48 = vadd.f32 %v3125_v27, %v3124_v63  ;;  %v8367_v63 = vld [vmem:[%s8723_s2 + $0xc4] ss:$16 sps:$4 sm:$0xff]  }
 0x542   : > { %v3413_v49 = vadd.f32 %v3365_v41, %v3134_v45  ;;  %v3367_v50 = vpop.f32.mrb[37].mxu0  ;;  %v3408_v56 = vpop.f32.mrb[37].mxu1  ;;  %v3415_v2 = vadd.f32 %v3406_v42, %v3136_v21  ;;  %v8372_v41 = vld [vmem:[%s8723_s2 + $0xcc] ss:$16 sps:$4 sm:$0xff]   ;;  %v8377_v42 = vld [vmem:[%s8723_s2 + $0xc0] ss:$16 sps:$4 sm:$0xff]  }
 0x543   : > { %v3414_v60 = vadd.f32 %v3367_v50, %v3135_v62  ;;  %v3369_v8 = vpop.f32.mrb[38].mxu0  ;;  %v3410_v13 = vpop.f32.mrb[38].mxu1  ;;  %6606 = vtanh.f32 %v8196_v48  ;;  %v3416_v6 = vadd.f32 %v3408_v56, %v3137_v1  ;;  %v8358_v62 = vld [vmem:[%s8723_s2 + $0xa8] ss:$16 sps:$4 sm:$0xff]   ;;  %v8391_v50 = vld [vmem:[%s8723_s2 + $0xe4] ss:$16 sps:$4 sm:$0xff]  }
 0x544   : > { %v5836_v38 = vmul.f32 -1.442695, %v3413_v49  ;;  %v3370_v16 = vpop.f32.mrb[39].mxu0  ;;  %v3411_v43 = vpop.f32.mrb[39].mxu1  ;;  %v5838_v11 = vmul.f32 -1.442695, %v3415_v2 }
 0x545   : > { %v5837_v61 = vmul.f32 -1.442695, %v3414_v60  ;;  %v8382_v49 = vld [vmem:[%s8723_s2 + $0xc8] ss:$16 sps:$4 sm:$0xff]   ;;  %v8396_v56 = vld [vmem:[%s8723_s2 + $0xec] ss:$16 sps:$4 sm:$0xff]  }
 0x546   : > { %6608 = vpow2.f32 %v5836_v38  ;;  %v8406_v60 = vld [vmem:[%s8723_s2 + $0xe8] ss:$16 sps:$4 sm:$0xff]   ;;  %v8415_v8 = vld [vmem:[%s8724_s3 + $0x4] ss:$16 sps:$4 sm:$0xff]   ;;  %v8420_v13 = vld [vmem:[%s8724_s3 + $0xc] ss:$16 sps:$4 sm:$0xff]  }
 0x547   : > { %6610 = vpow2.f32 %v5837_v61  ;;  %v5841_v38 = vld [vmem:[%s6775_s27 + $0x50] sm:$0xff] }
 0x548   : > { %6612 = vtanh.f32 %v3416_v6  ;;  %v3454_v16 = vunpack.c.l.bf16 %v5841_v38  ;;  %v3455_v43 = vunpack.c.h.bf16 %v5841_v38  ;;  %v5842_v6 = vld [vmem:[%s6775_s27 + $0x58] sm:$0xff] }
 0x549   : > { %6614 = vpow2.f32 %v5838_v11 }
 0x54d   : > { %v6607_v9 = vpop.eup %6606 }
 0x54e   : > { %v3128_v14 = vmul.f32 %v6607_v9, %v6605_v5 }
 0x550   : > { %v6609_v17 = vpop.eup %6608  ;;  %5839 = vst [vmem:[%s6785_s9 + $0x20] sm:$0xff] %v3128_v14  ;;  %v3458_v29 = vpack.c.bf16 %v3128_v14, %v3128_v14 }
 0x551   : > { %v3426_v18 = vadd.f32 1.0, %v6609_v17  ;;  %v6611_v27 = vpop.eup %6610 }
 0x552   : > { %v3427_v45 = vadd.f32 1.0, %v6611_v27  ;;  %3684 = vmatmul.mubr.bf16.vlgmr.msra.gmra.mrb[40].mxu0 %v3458_v29  ;;  %3725 = vmatmul.mubr.bf16.vlgmr.msra.gmra.mrb[40].mxu1 %v3458_v29 }
 0x553   : > { %6616 = vrcp.f32 %v3426_v18  ;;  %3964 = vmatpush1.bf16.msra.mxu0 %v7951_v37  ;;  %4005 = vmatpush1.bf16.msra.mxu1 %v7956_v40  ;;  %v6613_v37 = vpop.eup %6612 }
 0x554   : > { %6618 = vrcp.f32 %v3427_v45  ;;  %3965 = vmatprep.subr.bf16.mxu0 %v7962_v44  ;;  %4006 = vmatprep.subr.bf16.mxu1 %v7967_v15  ;;  %v6615_v55 = vpop.eup %6614  ;;  %v3456_v45 = vunpack.c.l.bf16 %v5842_v6 }
 0x555   : > { %3995 = vmatprep.mubr.bf16.mxu0 %v8744_v7  ;;  %4036 = vmatprep.mubr.bf16.mxu1 %v8744_v7 }
 0x557   : > { %3966 = vmatpush1.bf16.msra.mxu0 %v7974_v19  ;;  %4007 = vmatpush1.bf16.msra.mxu1 %v7979_v33  ;;  %v3428_v19 = vadd.f32 1.0, %v6615_v55 }
 0x558   : > { %3967 = vmatprep.subr.bf16.mxu0 %v7986_v20  ;;  %4008 = vmatprep.subr.bf16.mxu1 %v7991_v22  ;;  %v8757_v22 = vld [vmem:[#allocation6_spill] sm:$0xff] }
 0x559   : > { %6620 = vrcp.f32 %v3428_v19 }
 0x55b   : > { %3968 = vmatpush1.bf16.msra.mxu0 %v8000_v23  ;;  %4009 = vmatpush1.bf16.msra.mxu1 %v8005_v24  ;;  %v8758_v23 = vld [vmem:[#allocation7_spill] sm:$0xff]  ;;  %v8759_v24 = vld [vmem:[#allocation8_spill] sm:$0xff] }
 0x55c   : > { %3969 = vmatprep.subr.bf16.mxu0 %v8012_v25  ;;  %4010 = vmatprep.subr.bf16.mxu1 %v8017_v26 }
 0x55d   : > { %v6617_v40 = vpop.eup %6616 }
 0x55e   : > { %v3437_v44 = vmul.f32 %v6617_v40, %v6613_v37  ;;  %v6619_v15 = vpop.eup %6618  ;;  %v3457_v37 = vunpack.c.h.bf16 %v5842_v6 }
 0x55f   : > { %v3436_v33 = vmul.f32 %v6619_v15, %v8068_v36  ;;  %3970 = vmatpush1.bf16.msra.mxu0 %v8024_v46  ;;  %4011 = vmatpush1.bf16.msra.mxu1 %v8029_v52  ;;  %v8281_v36 = vld [vmem:[%s8723_s2 + $0x40] ss:$16 sps:$4 sm:$0xff]  }
 0x560   : > { %3971 = vmatprep.subr.bf16.mxu0 %v8036_v57  ;;  %4012 = vmatprep.subr.bf16.mxu1 %v8041_v35  ;;  %v8247_v57 = vld [vmem:[%s8723_s2 + $0x4] ss:$16 sps:$4 sm:$0xff]   ;;  %v8252_v35 = vld [vmem:[%s8723_s2] ss:$16 sps:$4 sm:$0xff]  }
 0x561   : > { %v8220_v20 = vadd.f32 %v3437_v44, %v3436_v33 }
 0x563   : > { %6622 = vtanh.f32 %v8220_v20  ;;  %3972 = vmatpush1.bf16.msra.mxu0 %v8049_v30  ;;  %4013 = vmatpush1.bf16.msra.mxu1 %v8054_v31  ;;  %v6621_v25 = vpop.eup %6620  ;;  %v8259_v30 = vld [vmem:[%s8723_s2 + $0x24] ss:$16 sps:$4 sm:$0xff]   ;;  %v8264_v31 = vld [vmem:[%s8723_s2 + $0x20] ss:$16 sps:$4 sm:$0xff]  }
 0x564   : > { %3973 = vmatprep.subr.bf16.mxu0 %v8061_v32  ;;  %4014 = vmatprep.subr.bf16.mxu1 %v8066_v34  ;;  %v8271_v32 = vld [vmem:[%s8723_s2 + $0x44] ss:$16 sps:$4 sm:$0xff]   ;;  %v8276_v34 = vld [vmem:[%s8723_s2 + $0x4c] ss:$16 sps:$4 sm:$0xff]  }
 0x567   : > { %3974 = vmatpush1.bf16.msra.mxu0 %v8076_v39  ;;  %4015 = vmatpush1.bf16.msra.mxu1 %v8081_v47  ;;  %v8286_v39 = vld [vmem:[%s8723_s2 + $0x48] ss:$16 sps:$4 sm:$0xff]   ;;  %v8295_v47 = vld [vmem:[%s8723_s2 + $0x64] ss:$16 sps:$4 sm:$0xff]  }
 0x568   : > { %3975 = vmatprep.subr.bf16.mxu0 %v8757_v22  ;;  %4016 = vmatprep.subr.bf16.mxu1 %v8758_v23 }
 0x56b   : > { %3976 = vmatpush1.bf16.msra.mxu0 %v8100_v28  ;;  %4017 = vmatpush1.bf16.msra.mxu1 %v8759_v24  ;;  %v8300_v28 = vld [vmem:[%s8723_s2 + $0x6c] ss:$16 sps:$4 sm:$0xff]   ;;  %v5878_v24 = vld [vmem:[%s6780_s6 + $0x20] sm:$0xff] }
 0x56c   : > { %3977 = vmatprep.subr.bf16.mxu0 %v8112_v10  ;;  %4018 = vmatprep.subr.bf16.mxu1 %v8117_v12  ;;  %v8305_v10 = vld [vmem:[%s8723_s2 + $0x60] ss:$16 sps:$4 sm:$0xff]   ;;  %v8310_v12 = vld [vmem:[%s8723_s2 + $0x68] ss:$16 sps:$4 sm:$0xff]  }
 0x56d   : > { %v6623_v26 = vpop.eup %6622 }
 0x56e   : > { %v3440_v46 = vmul.f32 %v6623_v26, %v6621_v25 }
 0x56f   : > { %3978 = vmatpush1.bf16.msra.mxu0 %v8124_v58  ;;  %4019 = vmatpush1.bf16.msra.mxu1 %v8129_v0  ;;  %v8319_v58 = vld [vmem:[%s8723_s2 + $0x84] ss:$16 sps:$4 sm:$0xff]   ;;  %v8324_v0 = vld [vmem:[%s8723_s2 + $0x8c] ss:$16 sps:$4 sm:$0xff]  }
 0x570   : > { %5840 = vst [vmem:[%s6790_s13 + $0x18] sm:$0xff] %v3440_v46  ;;  %v3770_v52 = vpack.c.bf16 %v3440_v46, %v3440_v46  ;;  %4324 = vmatprep.subr.bf16.mxu1 %v8158_v51  ;;  %4283 = vmatprep.subr.bf16.mxu0 %v8247_v57  ;;  %v8329_v51 = vld [vmem:[%s8723_s2 + $0x80] ss:$16 sps:$4 sm:$0xff]  }
 0x572   : > { %3996 = vmatmul.mubr.bf16.vlgmr.msra.gmra.mrb[44].mxu0 %v3770_v52  ;;  %4037 = vmatmul.mubr.bf16.vlgmr.msra.gmra.mrb[44].mxu1 %v3770_v52  ;;  %v3766_v52 = vunpack.c.l.bf16 %v5878_v24 }
 0x573   : > { %4325 = vmatpush1.bf16.msra.mxu1 %v8163_v4  ;;  %4315 = vmatprep.mubr.bf16.mxu0 %v8744_v7  ;;  %v8334_v4 = vld [vmem:[%s8723_s2 + $0x88] ss:$16 sps:$4 sm:$0xff]  }
 0x574   : > { %4326 = vmatprep.subr.bf16.mxu1 %v8170_v53  ;;  %4356 = vmatprep.mubr.bf16.mxu1 %v8744_v7  ;;  %v8343_v53 = vld [vmem:[%s8723_s2 + $0xa4] ss:$16 sps:$4 sm:$0xff]  }
 0x575   : > { %4284 = vmatpush1.bf16.msra.mxu0 %v8252_v35 }
 0x576   : > { %4285 = vmatprep.subr.bf16.mxu0 %v8259_v30 }
 0x577   : > { %4327 = vmatpush1.bf16.msra.mxu1 %v8175_v54  ;;  %v8348_v54 = vld [vmem:[%s8723_s2 + $0xac] ss:$16 sps:$4 sm:$0xff]  }
 0x578   : > { %4328 = vmatprep.subr.bf16.mxu1 %v8276_v34 }
 0x579   : > { %4286 = vmatpush1.bf16.msra.mxu0 %v8264_v31 }
 0x57a   : > { %4287 = vmatprep.subr.bf16.mxu0 %v8271_v32 }
 0x57b   : > { %4329 = vmatpush1.bf16.msra.mxu1 %v8286_v39 }
 0x57c   : > { %4330 = vmatprep.subr.bf16.mxu1 %v8300_v28 }
 0x57d   : > { %4288 = vmatpush1.bf16.msra.mxu0 %v8281_v36 }
 0x57e   : > { %4289 = vmatprep.subr.bf16.mxu0 %v8295_v47 }
 0x57f   : > { %4331 = vmatpush1.bf16.msra.mxu1 %v8310_v12 }
 0x580   : > { %4332 = vmatprep.subr.bf16.mxu1 %v8324_v0 }
 0x581   : > { %4290 = vmatpush1.bf16.msra.mxu0 %v8305_v10 }
 0x582   : > { %4291 = vmatprep.subr.bf16.mxu0 %v8319_v58 }
 0x583   : > { %4333 = vmatpush1.bf16.msra.mxu1 %v8334_v4 }
 0x584   : > { %4334 = vmatprep.subr.bf16.mxu1 %v8348_v54 }
 0x585   : > { %4292 = vmatpush1.bf16.msra.mxu0 %v8329_v51 }
 0x586   : > { %4293 = vmatprep.subr.bf16.mxu0 %v8343_v53 }
 0x587   : > { %4335 = vmatpush1.bf16.msra.mxu1 %v8358_v62 }
 0x588   : > { %4336 = vmatprep.subr.bf16.mxu1 %v8372_v41 }
 0x589   : > { %4294 = vmatpush1.bf16.msra.mxu0 %v8353_v3 }
 0x58a   : > { %4295 = vmatprep.subr.bf16.mxu0 %v8367_v63 }
 0x58b   : > { %4337 = vmatpush1.bf16.msra.mxu1 %v8382_v49 }
 0x58c   : > { %4338 = vmatprep.subr.bf16.mxu1 %v8396_v56 }
 0x58d   : > { %4296 = vmatpush1.bf16.msra.mxu0 %v8377_v42 }
 0x58e   : > { %4297 = vmatprep.subr.bf16.mxu0 %v8391_v50 }
 0x58f   : > { %4339 = vmatpush1.bf16.msra.mxu1 %v8406_v60 }
 0x590   : > { %4636 = vmatprep.subr.bf16.mxu1 %v8420_v13 }
 0x591   : > { %4298 = vmatpush1.bf16.msra.mxu0 %v8401_v59 }
 0x592   : > { %4595 = vmatprep.subr.bf16.mxu0 %v8415_v8 }
 0x625   : > { %v3685_v61 = vpop.f32.mrb[40].mxu0  ;;  %v3726_v21 = vpop.f32.mrb[40].mxu1 }
 0x626   : > { %v3733_v1 = vadd.f32 %v3685_v61, %v3454_v16  ;;  %v3687_v2 = vpop.f32.mrb[41].mxu0  ;;  %v3728_v5 = vpop.f32.mrb[41].mxu1  ;;  %v3735_v55 = vadd.f32 %v3726_v21, %v3456_v45 }
 0x627   : > { %v3734_v9 = vadd.f32 %v3687_v2, %v3455_v43  ;;  %v3689_v11 = vpop.f32.mrb[42].mxu0  ;;  %v3730_v14 = vpop.f32.mrb[42].mxu1  ;;  %v3736_v40 = vadd.f32 %v3728_v5, %v3457_v37  ;;  %v3767_v43 = vunpack.c.h.bf16 %v5878_v24  ;;  %v8435_v24 = vld [vmem:[%s8724_s3] ss:$16 sps:$4 sm:$0xff]  }
 0x628   : > { %v5875_v17 = vmul.f32 -1.442695, %v3733_v1  ;;  %v3690_v18 = vpop.f32.mrb[43].mxu0  ;;  %v3731_v29 = vpop.f32.mrb[43].mxu1  ;;  %v5877_v44 = vmul.f32 -1.442695, %v3735_v55 }
 0x629   : > { %v5876_v27 = vmul.f32 -1.442695, %v3734_v9  ;;  %v5879_v11 = vld [vmem:[%s6780_s6 + $0x28] sm:$0xff] }
 0x62a   : > { %6624 = vpow2.f32 %v5875_v17  ;;  %v3769_v55 = vunpack.c.h.bf16 %v5879_v11 }
 0x62b   : > { %6626 = vpow2.f32 %v5876_v27 }
 0x62c   : > { %6628 = vtanh.f32 %v3736_v40 }
 0x62d   : > { %6630 = vpow2.f32 %v5877_v44 }
 0x634   : > { %v6625_v15 = vpop.eup %6624 }
 0x635   : > { %v3746_v19 = vadd.f32 1.0, %v6625_v15  ;;  %v6627_v33 = vpop.eup %6626 }
 0x636   : > { %v3747_v22 = vadd.f32 1.0, %v6627_v33  ;;  %v6629_v23 = vpop.eup %6628 }
 0x637   : > { %6632 = vrcp.f32 %v3746_v19  ;;  %v6631_v25 = vpop.eup %6630 }
 0x638   : > { %6634 = vrcp.f32 %v3747_v22  ;;  %v3748_v16 = vadd.f32 1.0, %v6631_v25  ;;  %v8440_v25 = vld [vmem:[%s8724_s3 + $0x8] ss:$16 sps:$4 sm:$0xff]  }
 0x63a   : > { %6636 = vrcp.f32 %v3748_v16 }
 0x641   : > { %v6633_v26 = vpop.eup %6632 }
 0x642   : > { %v3757_v46 = vmul.f32 %v6633_v26, %v6629_v23  ;;  %v6635_v38 = vpop.eup %6634 }
 0x643   : > { %v3756_v61 = vmul.f32 %v6635_v38, %v8196_v48  ;;  %v3768_v48 = vunpack.c.l.bf16 %v5879_v11  ;;  %v8451_v38 = vld [vmem:[%s8724_s3 + $0x2c] ss:$16 sps:$4 sm:$0xff]   ;;  %v8496_v11 = vld [vmem:[%s8724_s3 + $0x64] ss:$16 sps:$4 sm:$0xff]  }
 0x644   : > { %v6637_v44 = vpop.eup %6636 }
 0x645   : > { %v3997_v21 = vpop.f32.mrb[44].mxu0  ;;  %v4038_v1 = vpop.f32.mrb[44].mxu1  ;;  %v8428_v2 = vadd.f32 %v3757_v46, %v3756_v61  ;;  %v8458_v61 = vld [vmem:[%s8724_s3 + $0x20] ss:$16 sps:$4 sm:$0xff]  }
 0x646   : > { %v4045_v5 = vadd.f32 %v3997_v21, %v3766_v52  ;;  %v3999_v6 = vpop.f32.mrb[45].mxu0  ;;  %v4040_v9 = vpop.f32.mrb[45].mxu1  ;;  %v4047_v40 = vadd.f32 %v4038_v1, %v3768_v48  ;;  %v8446_v52 = vld [vmem:[%s8724_s3 + $0x24] ss:$16 sps:$4 sm:$0xff]   ;;  %v8463_v21 = vld [vmem:[%s8724_s3 + $0x28] ss:$16 sps:$4 sm:$0xff]  }
 0x647   : > { %v4046_v14 = vadd.f32 %v3999_v6, %v3767_v43  ;;  %v4001_v17 = vpop.f32.mrb[46].mxu0  ;;  %v4042_v18 = vpop.f32.mrb[46].mxu1  ;;  %6638 = vtanh.f32 %v8428_v2  ;;  %v4048_v15 = vadd.f32 %v4040_v9, %v3769_v55  ;;  %v8470_v1 = vld [vmem:[%s8724_s3 + $0x44] ss:$16 sps:$4 sm:$0xff]   ;;  %v8484_v6 = vld [vmem:[%s8724_s3 + $0x40] ss:$16 sps:$4 sm:$0xff]  }
 0x648   : > { %v5912_v29 = vmul.f32 -1.442695, %v4045_v5  ;;  %v4002_v27 = vpop.f32.mrb[47].mxu0  ;;  %v4043_v45 = vpop.f32.mrb[47].mxu1  ;;  %v5914_v33 = vmul.f32 -1.442695, %v4047_v40 }
 0x649   : > { %v5913_v37 = vmul.f32 -1.442695, %v4046_v14  ;;  %v8475_v5 = vld [vmem:[%s8724_s3 + $0x4c] ss:$16 sps:$4 sm:$0xff]   ;;  %v8489_v9 = vld [vmem:[%s8724_s3 + $0x48] ss:$16 sps:$4 sm:$0xff]  }
 0x64a   : > { %6640 = vpow2.f32 %v5912_v29  ;;  %v8501_v14 = vld [vmem:[%s8724_s3 + $0x6c] ss:$16 sps:$4 sm:$0xff]   ;;  %v8508_v29 = vld [vmem:[%s8724_s3 + $0x60] ss:$16 sps:$4 sm:$0xff]   ;;  %v8513_v27 = vld [vmem:[%s8724_s3 + $0x68] ss:$16 sps:$4 sm:$0xff]  }
 0x64b   : > { %6642 = vpow2.f32 %v5913_v37  ;;  %v8520_v37 = vld [vmem:[%s8724_s3 + $0x84] ss:$16 sps:$4 sm:$0xff]   ;;  %v8525_v48 = vld [vmem:[%s8724_s3 + $0x8c] ss:$16 sps:$4 sm:$0xff]  }
 0x64c   : > { %6644 = vtanh.f32 %v4048_v15 }
 0x64d   : > { %6646 = vpow2.f32 %v5914_v33  ;;  %v8538_v33 = vld [vmem:[%s8724_s3 + $0x88] ss:$16 sps:$4 sm:$0xff]  }
 0x651   : > { %v6639_v19 = vpop.eup %6638 }
 0x652   : > { %v3760_v22 = vmul.f32 %v6639_v19, %v6637_v44  ;;  %v8533_v19 = vld [vmem:[%s8724_s3 + $0x80] ss:$16 sps:$4 sm:$0xff]  }
 0x654   : > { %v6641_v23 = vpop.eup %6640  ;;  %5915 = vst [vmem:[%s6785_s9 + $0x28] sm:$0xff] %v3760_v22  ;;  %v4090_v46 = vpack.c.bf16 %v3760_v22, %v3760_v22  ;;  %v8550_v22 = vld [vmem:[%s8724_s3 + $0xac] ss:$16 sps:$4 sm:$0xff]  }
 0x655   : > { %v4058_v26 = vadd.f32 1.0, %v6641_v23  ;;  %v6643_v16 = vpop.eup %6642 }
 0x656   : > { %v4059_v43 = vadd.f32 1.0, %v6643_v16  ;;  %4316 = vmatmul.mubr.bf16.vlgmr.msra.gmra.mrb[48].mxu0 %v4090_v46  ;;  %4357 = vmatmul.mubr.bf16.vlgmr.msra.gmra.mrb[48].mxu1 %v4090_v46  ;;  %v6645_v17 = vpop.eup %6644  ;;  %v8565_v46 = vld [vmem:[%s8724_s3 + $0xa8] ss:$16 sps:$4 sm:$0xff]   ;;  %v8572_v16 = vld [vmem:[%s8724_s3 + $0xc4] ss:$16 sps:$4 sm:$0xff]  }
 0x657   : > { %6648 = vrcp.f32 %v4058_v26  ;;  %4596 = vmatpush1.bf16.msra.mxu0 %v8435_v24  ;;  %4637 = vmatpush1.bf16.msra.mxu1 %v8440_v25  ;;  %v6647_v18 = vpop.eup %6646  ;;  %v8560_v26 = vld [vmem:[%s8724_s3 + $0xa0] ss:$16 sps:$4 sm:$0xff]   ;;  %8760 = vst [vmem:[#allocation6_spill] sm:$0xff] %v8572_v16 }
 0x658   : > { %6650 = vrcp.f32 %v4059_v43  ;;  %4597 = vmatprep.subr.bf16.mxu0 %v8446_v52  ;;  %4638 = vmatprep.subr.bf16.mxu1 %v8451_v38  ;;  %v4060_v44 = vadd.f32 1.0, %v6647_v18  ;;  %v8577_v43 = vld [vmem:[%s8724_s3 + $0xcc] ss:$16 sps:$4 sm:$0xff]   ;;  %v8589_v18 = vld [vmem:[%s8724_s3 + $0xc8] ss:$16 sps:$4 sm:$0xff]  }
 0x659   : > { %4627 = vmatprep.mubr.bf16.mxu0 %v8744_v7  ;;  %4668 = vmatprep.mubr.bf16.mxu1 %v8744_v7  ;;  %8761 = vst [vmem:[#allocation7_spill] sm:$0xff] %v8577_v43  ;;  %8762 = vst [vmem:[#allocation8_spill] sm:$0xff] %v8589_v18 }
 0x65a   : > { %6652 = vrcp.f32 %v4060_v44  ;;  %v8613_v44 = vld [vmem:[%s8724_s3 + $0xe8] ss:$16 sps:$4 sm:$0xff]  }
 0x65b   : > { %4598 = vmatpush1.bf16.msra.mxu0 %v8458_v61  ;;  %4639 = vmatpush1.bf16.msra.mxu1 %v8463_v21 }
 0x65c   : > { %4599 = vmatprep.subr.bf16.mxu0 %v8470_v1  ;;  %4640 = vmatprep.subr.bf16.mxu1 %v8475_v5 }
 0x65f   : > { %4600 = vmatpush1.bf16.msra.mxu0 %v8484_v6  ;;  %4641 = vmatpush1.bf16.msra.mxu1 %v8489_v9 }
 0x660   : > { %4601 = vmatprep.subr.bf16.mxu0 %v8496_v11  ;;  %4642 = vmatprep.subr.bf16.mxu1 %v8501_v14 }
 0x661   : > { %v6649_v45 = vpop.eup %6648 }
 0x662   : > { %v4069_v55 = vmul.f32 %v6649_v45, %v6645_v17  ;;  %v6651_v40 = vpop.eup %6650  ;;  %v8584_v17 = vld [vmem:[%s8724_s3 + $0xc0] ss:$16 sps:$4 sm:$0xff]   ;;  %v8596_v45 = vld [vmem:[%s8724_s3 + $0xe4] ss:$16 sps:$4 sm:$0xff]  }
 0x663   : > { %v4068_v15 = vmul.f32 %v6651_v40, %v8220_v20  ;;  %4602 = vmatpush1.bf16.msra.mxu0 %v8508_v29  ;;  %4643 = vmatpush1.bf16.msra.mxu1 %v8513_v27  ;;  %v8545_v20 = vld [vmem:[%s8724_s3 + $0xa4] ss:$16 sps:$4 sm:$0xff]   ;;  %v8608_v40 = vld [vmem:[%s8724_s3 + $0xe0] ss:$16 sps:$4 sm:$0xff]  }
 0x664   : > { %4603 = vmatprep.subr.bf16.mxu0 %v8520_v37  ;;  %4644 = vmatprep.subr.bf16.mxu1 %v8525_v48 }
 0x665   : > { %v8552_v23 = vadd.f32 %v4069_v55, %v4068_v15  ;;  %v8601_v55 = vld [vmem:[%s8724_s3 + $0xec] ss:$16 sps:$4 sm:$0xff]   ;;  %v6653_v15 = vpop.eup %6652 }
 0x667   : > { %6654 = vtanh.f32 %v8552_v23  ;;  %4604 = vmatpush1.bf16.msra.mxu0 %v8533_v19  ;;  %4645 = vmatpush1.bf16.msra.mxu1 %v8538_v33 }
 0x668   : > { %4605 = vmatprep.subr.bf16.mxu0 %v8545_v20  ;;  %4646 = vmatprep.subr.bf16.mxu1 %v8550_v22 }
 0x66b   : > { %4606 = vmatpush1.bf16.msra.mxu0 %v8560_v26  ;;  %4647 = vmatpush1.bf16.msra.mxu1 %v8565_v46 }
 0x66c   : > { %4607 = vmatprep.subr.bf16.mxu0 %v8572_v16  ;;  %4648 = vmatprep.subr.bf16.mxu1 %v8577_v43 }
 0x66f   : > { %4608 = vmatpush1.bf16.msra.mxu0 %v8584_v17  ;;  %4649 = vmatpush1.bf16.msra.mxu1 %v8589_v18 }
 0x670   : > { %4609 = vmatprep.subr.bf16.mxu0 %v8596_v45  ;;  %4650 = vmatprep.subr.bf16.mxu1 %v8601_v55 }
 0x671   : > { %v6655_v43 = vpop.eup %6654 }
 0x672   : > { %v4072_v16 = vmul.f32 %v6655_v43, %v6653_v15 }
 0x673   : > { %4610 = vmatpush1.bf16.msra.mxu0 %v8608_v40  ;;  %4651 = vmatpush1.bf16.msra.mxu1 %v8613_v44 }
 0x674   : > { %5916 = vst [vmem:[%s6790_s13 + $0x10] sm:$0xff] %v4072_v16  ;;  %v4402_v18 = vpack.c.bf16 %v4072_v16, %v4072_v16  ;;  %4915 = vmatprep.subr.bf16.mxu0 %v8247_v57  ;;  %v6460_v57 = vld [vmem:[%s8723_s2 + $0xc] ss:$16 sps:$4 sm:$0xff]   ;;  %v5954_v16 = vld [vmem:[%s6780_s6 + $0x10] sm:$0xff] }
 0x675   : > { %4956 = vmatprep.subr.bf16.mxu1 %v6460_v57  ;;  %v4398_v57 = vunpack.c.l.bf16 %v5954_v16 }
 0x676   : > { %4628 = vmatmul.mubr.bf16.vlgmr.msra.gmra.mrb[52].mxu0 %v4402_v18  ;;  %4669 = vmatmul.mubr.bf16.vlgmr.msra.gmra.mrb[52].mxu1 %v4402_v18 }
 0x677   : > { %4916 = vmatpush1.bf16.msra.mxu0 %v8252_v35  ;;  %4947 = vmatprep.mubr.bf16.mxu0 %v8744_v7  ;;  %v6458_v35 = vld [vmem:[%s8723_s2 + $0x8] ss:$16 sps:$4 sm:$0xff]  }
 0x678   : > { %4917 = vmatprep.subr.bf16.mxu0 %v8259_v30  ;;  %4988 = vmatprep.mubr.bf16.mxu1 %v8744_v7  ;;  %v6463_v30 = vld [vmem:[%s8723_s2 + $0x2c] ss:$16 sps:$4 sm:$0xff]  }
 0x679   : > { %4957 = vmatpush1.bf16.msra.mxu1 %v6458_v35 }
 0x67a   : > { %4958 = vmatprep.subr.bf16.mxu1 %v6463_v30 }
 0x67b   : > { %4918 = vmatpush1.bf16.msra.mxu0 %v8264_v31  ;;  %v6461_v31 = vld [vmem:[%s8723_s2 + $0x28] ss:$16 sps:$4 sm:$0xff]  }
 0x67c   : > { %4919 = vmatprep.subr.bf16.mxu0 %v8271_v32  ;;  %v5917_v32 = vld [vmem:[%s6775_s27 + $0x60] sm:$0xff] }
 0x67d   : > { %4959 = vmatpush1.bf16.msra.mxu1 %v6461_v31  ;;  %v4399_v31 = vunpack.c.h.bf16 %v5954_v16 }
 0x67e   : > { %4960 = vmatprep.subr.bf16.mxu1 %v8276_v34  ;;  %v4086_v34 = vunpack.c.l.bf16 %v5917_v32 }
 0x67f   : > { %4920 = vmatpush1.bf16.msra.mxu0 %v8281_v36  ;;  %v4087_v36 = vunpack.c.h.bf16 %v5917_v32 }
 0x680   : > { %4921 = vmatprep.subr.bf16.mxu0 %v8295_v47 }
 0x681   : > { %4961 = vmatpush1.bf16.msra.mxu1 %v8286_v39 }
 0x682   : > { %4962 = vmatprep.subr.bf16.mxu1 %v8300_v28 }
 0x683   : > { %4922 = vmatpush1.bf16.msra.mxu0 %v8305_v10 }
 0x684   : > { %4923 = vmatprep.subr.bf16.mxu0 %v8319_v58  ;;  %v5918_v58 = vld [vmem:[%s6775_s27 + $0x68] sm:$0xff] }
 0x685   : > { %4963 = vmatpush1.bf16.msra.mxu1 %v8310_v12 }
 0x686   : > { %4964 = vmatprep.subr.bf16.mxu1 %v8324_v0 }
 0x687   : > { %4924 = vmatpush1.bf16.msra.mxu0 %v8329_v51 }
 0x688   : > { %4925 = vmatprep.subr.bf16.mxu0 %v8343_v53 }
 0x689   : > { %4965 = vmatpush1.bf16.msra.mxu1 %v8334_v4 }
 0x68a   : > { %4966 = vmatprep.subr.bf16.mxu1 %v8348_v54 }
 0x68b   : > { %4926 = vmatpush1.bf16.msra.mxu0 %v8353_v3 }
 0x68c   : > { %4927 = vmatprep.subr.bf16.mxu0 %v8367_v63  ;;  %v4088_v63 = vunpack.c.l.bf16 %v5918_v58 }
 0x68d   : > { %4967 = vmatpush1.bf16.msra.mxu1 %v8358_v62 }
 0x68e   : > { %4968 = vmatprep.subr.bf16.mxu1 %v8372_v41  ;;  %v4089_v41 = vunpack.c.h.bf16 %v5918_v58 }
 0x68f   : > { %4928 = vmatpush1.bf16.msra.mxu0 %v8377_v42 }
 0x690   : > { %4929 = vmatprep.subr.bf16.mxu0 %v8391_v50 }
 0x691   : > { %4969 = vmatpush1.bf16.msra.mxu1 %v8382_v49 }
 0x692   : > { %4970 = vmatprep.subr.bf16.mxu1 %v8396_v56 }
 0x693   : > { %4930 = vmatpush1.bf16.msra.mxu0 %v8401_v59 }
 0x694   : > { %5226 = vmatprep.subr.bf16.mxu0 %v8415_v8 }
 0x695   : > { %4971 = vmatpush1.bf16.msra.mxu1 %v8406_v60 }
 0x696   : > { %5267 = vmatprep.subr.bf16.mxu1 %v8420_v13 }
 0x729   : > { %v4317_v39 = vpop.f32.mrb[48].mxu0  ;;  %v4358_v47 = vpop.f32.mrb[48].mxu1 }
 0x72a   : > { %v4365_v28 = vadd.f32 %v4317_v39, %v4086_v34  ;;  %v4319_v10 = vpop.f32.mrb[49].mxu0  ;;  %v4360_v12 = vpop.f32.mrb[49].mxu1  ;;  %v4367_v42 = vadd.f32 %v4358_v47, %v4088_v63 }
 0x72b   : > { %v4366_v0 = vadd.f32 %v4319_v10, %v4087_v36  ;;  %v4321_v51 = vpop.f32.mrb[50].mxu0  ;;  %v4362_v4 = vpop.f32.mrb[50].mxu1  ;;  %v4368_v49 = vadd.f32 %v4360_v12, %v4089_v41  ;;  %v5955_v12 = vld [vmem:[%s6780_s6 + $0x18] sm:$0xff] }
 0x72c   : > { %v5951_v53 = vmul.f32 -1.442695, %v4365_v28  ;;  %v4322_v54 = vpop.f32.mrb[51].mxu0  ;;  %v4363_v3 = vpop.f32.mrb[51].mxu1  ;;  %v5953_v50 = vmul.f32 -1.442695, %v4367_v42 }
 0x72d   : > { %v5952_v62 = vmul.f32 -1.442695, %v4366_v0 }
 0x72e   : > { %6656 = vpow2.f32 %v5951_v53 }
 0x72f   : > { %6658 = vpow2.f32 %v5952_v62  ;;  %v4401_v62 = vunpack.c.h.bf16 %v5955_v12 }
 0x730   : > { %6660 = vtanh.f32 %v4368_v49 }
 0x731   : > { %6662 = vpow2.f32 %v5953_v50 }
 0x738   : > { %v6657_v56 = vpop.eup %6656 }
 0x739   : > { %v4378_v59 = vadd.f32 1.0, %v6657_v56  ;;  %v6659_v60 = vpop.eup %6658 }
 0x73a   : > { %v4379_v8 = vadd.f32 1.0, %v6659_v60  ;;  %v6661_v13 = vpop.eup %6660 }
 0x73b   : > { %6664 = vrcp.f32 %v4378_v59  ;;  %v6663_v43 = vpop.eup %6662 }
 0x73c   : > { %6666 = vrcp.f32 %v4379_v8  ;;  %v4380_v30 = vadd.f32 1.0, %v6663_v43 }
 0x73e   : > { %6668 = vrcp.f32 %v4380_v30 }
 0x745   : > { %v6665_v18 = vpop.eup %6664 }
 0x746   : > { %v4389_v15 = vmul.f32 %v6665_v18, %v6661_v13  ;;  %v6667_v35 = vpop.eup %6666 }
 0x747   : > { %v4388_v32 = vmul.f32 %v6667_v35, %v8428_v2  ;;  %v4400_v2 = vunpack.c.l.bf16 %v5955_v12 }
 0x748   : > { %v6669_v41 = vpop.eup %6668 }
 0x749   : > { %v4629_v34 = vpop.f32.mrb[52].mxu0  ;;  %v4670_v36 = vpop.f32.mrb[52].mxu1  ;;  %v8668_v39 = vadd.f32 %v4389_v15, %v4388_v32 }
 0x74a   : > { %v4677_v47 = vadd.f32 %v4629_v34, %v4398_v57  ;;  %v4631_v28 = vpop.f32.mrb[53].mxu0  ;;  %v4672_v10 = vpop.f32.mrb[53].mxu1  ;;  %v4679_v63 = vadd.f32 %v4670_v36, %v4400_v2 }
 0x74b   : > { %v4678_v58 = vadd.f32 %v4631_v28, %v4399_v31  ;;  %v4633_v0 = vpop.f32.mrb[54].mxu0  ;;  %v4674_v51 = vpop.f32.mrb[54].mxu1  ;;  %6670 = vtanh.f32 %v8668_v39  ;;  %v4680_v42 = vadd.f32 %v4672_v10, %v4401_v62  ;;  %v5025_v10 = vld [vmem:[%s6780_s6] sm:$0xff] }
 0x74c   : > { %v5988_v4 = vmul.f32 -1.442695, %v4677_v47  ;;  %v4634_v53 = vpop.f32.mrb[55].mxu0  ;;  %v4675_v54 = vpop.f32.mrb[55].mxu1  ;;  %v5990_v50 = vmul.f32 -1.442695, %v4679_v63  ;;  %v5029_v51 = vunpack.c.l.bf16 %v5025_v10 }
 0x74d   : > { %v5989_v3 = vmul.f32 -1.442695, %v4678_v58  ;;  %v5030_v54 = vunpack.c.h.bf16 %v5025_v10 }
 0x74e   : > { %6672 = vpow2.f32 %v5988_v4 }
 0x74f   : > { %6674 = vpow2.f32 %v5989_v3 }
 0x750   : > { %6676 = vtanh.f32 %v4680_v42 }
 0x751   : > { %6678 = vpow2.f32 %v5990_v50  ;;  %v5026_v50 = vld [vmem:[%s6780_s6 + $0x8] sm:$0xff] }
 0x755   : > { %v6671_v49 = vpop.eup %6670 }
 0x756   : > { %v4392_v56 = vmul.f32 %v6671_v49, %v6669_v41 }
 0x758   : > { %v6673_v59 = vpop.eup %6672  ;;  %5991 = vst [vmem:[%s6785_s9 + $0x30] sm:$0xff] %v4392_v56  ;;  %v4722_v8 = vpack.c.bf16 %v4392_v56, %v4392_v56 }
 0x759   : > { %v4690_v60 = vadd.f32 1.0, %v6673_v59  ;;  %v6675_v13 = vpop.eup %6674 }
 0x75a   : > { %v4691_v16 = vadd.f32 1.0, %v6675_v13  ;;  %4948 = vmatmul.mubr.bf16.vlgmr.msra.gmra.mrb[56].mxu0 %v4722_v8  ;;  %4989 = vmatmul.mubr.bf16.vlgmr.msra.gmra.mrb[56].mxu1 %v4722_v8 }
 0x75b   : > { %6680 = vrcp.f32 %v4690_v60  ;;  %5227 = vmatpush1.bf16.msra.mxu0 %v8435_v24  ;;  %5268 = vmatpush1.bf16.msra.mxu1 %v8440_v25  ;;  %v6677_v24 = vpop.eup %6676 }
 0x75c   : > { %6682 = vrcp.f32 %v4691_v16  ;;  %5228 = vmatprep.subr.bf16.mxu0 %v8446_v52  ;;  %5269 = vmatprep.subr.bf16.mxu1 %v8451_v38  ;;  %v6679_v43 = vpop.eup %6678 }
 0x75d   : > { %5258 = vmatprep.mubr.bf16.mxu0 %v8744_v7  ;;  %5299 = vmatprep.mubr.bf16.mxu1 %v8744_v7  ;;  %v4692_v38 = vadd.f32 1.0, %v6679_v43  ;;  %v5032_v43 = vunpack.c.h.bf16 %v5026_v50 }
 0x75f   : > { %5229 = vmatpush1.bf16.msra.mxu0 %v8458_v61  ;;  %5270 = vmatpush1.bf16.msra.mxu1 %v8463_v21  ;;  %6684 = vrcp.f32 %v4692_v38 }
 0x760   : > { %5230 = vmatprep.subr.bf16.mxu0 %v8470_v1  ;;  %5271 = vmatprep.subr.bf16.mxu1 %v8475_v5  ;;  %v8763_v1 = vld [vmem:[#allocation6_spill] sm:$0xff]  ;;  %v8764_v5 = vld [vmem:[#allocation7_spill] sm:$0xff] }
 0x763   : > { %5231 = vmatpush1.bf16.msra.mxu0 %v8484_v6  ;;  %5272 = vmatpush1.bf16.msra.mxu1 %v8489_v9  ;;  %v8765_v6 = vld [vmem:[#allocation8_spill] sm:$0xff] }
 0x764   : > { %5232 = vmatprep.subr.bf16.mxu0 %v8496_v11  ;;  %5273 = vmatprep.subr.bf16.mxu1 %v8501_v14 }
 0x765   : > { %v6681_v25 = vpop.eup %6680 }
 0x766   : > { %v4701_v7 = vmul.f32 %v6681_v25, %v6677_v24  ;;  %v6683_v52 = vpop.eup %6682 }
 0x767   : > { %v4700_v61 = vmul.f32 %v6683_v52, %v8552_v23  ;;  %5233 = vmatpush1.bf16.msra.mxu0 %v8508_v29  ;;  %5274 = vmatpush1.bf16.msra.mxu1 %v8513_v27  ;;  %v5993_v27 = vld [vmem:[%s6775_s27 + $0x70] sm:$0xff] }
 0x768   : > { %5234 = vmatprep.subr.bf16.mxu0 %v8520_v37  ;;  %5275 = vmatprep.subr.bf16.mxu1 %v8525_v48  ;;  %v4718_v37 = vunpack.c.l.bf16 %v5993_v27  ;;  %v4719_v48 = vunpack.c.h.bf16 %v5993_v27 }
 0x769   : > { %v8692_v21 = vadd.f32 %v4701_v7, %v4700_v61  ;;  %v6685_v9 = vpop.eup %6684 }
 0x76b   : > { %6686 = vtanh.f32 %v8692_v21  ;;  %5235 = vmatpush1.bf16.msra.mxu0 %v8533_v19  ;;  %5276 = vmatpush1.bf16.msra.mxu1 %v8538_v33 }
 0x76c   : > { %5236 = vmatprep.subr.bf16.mxu0 %v8545_v20  ;;  %5277 = vmatprep.subr.bf16.mxu1 %v8550_v22 }
 0x76f   : > { %5237 = vmatpush1.bf16.msra.mxu0 %v8560_v26  ;;  %5278 = vmatpush1.bf16.msra.mxu1 %v8565_v46  ;;  %v5994_v26 = vld [vmem:[%s6775_s27 + $0x78] sm:$0xff] }
 0x770   : > { %5238 = vmatprep.subr.bf16.mxu0 %v8763_v1  ;;  %5279 = vmatprep.subr.bf16.mxu1 %v8764_v5  ;;  %v4720_v15 = vunpack.c.l.bf16 %v5994_v26  ;;  %v4721_v57 = vunpack.c.h.bf16 %v5994_v26 }
 0x773   : > { %5239 = vmatpush1.bf16.msra.mxu0 %v8584_v17  ;;  %5280 = vmatpush1.bf16.msra.mxu1 %v8765_v6 }
 0x774   : > { %5240 = vmatprep.subr.bf16.mxu0 %v8596_v45  ;;  %5281 = vmatprep.subr.bf16.mxu1 %v8601_v55 }
 0x775   : > { %v6687_v11 = vpop.eup %6686 }
 0x776   : > { %v4704_v14 = vmul.f32 %v6687_v11, %v6685_v9 }
 0x777   : > { %5241 = vmatpush1.bf16.msra.mxu0 %v8608_v40  ;;  %5282 = vmatpush1.bf16.msra.mxu1 %v8613_v44 }
 0x778   : > { %5992 = vst [vmem:[%s6790_s13 + $0x8] sm:$0xff] %v4704_v14  ;;  %v5033_v29 = vpack.c.bf16 %v4704_v14, %v4704_v14 }
 0x77a   : > { %5259 = vmatmul.mubr.bf16.vlgmr.msra.gmra.mrb[60].mxu0 %v5033_v29  ;;  %5300 = vmatmul.mubr.bf16.vlgmr.msra.gmra.mrb[60].mxu1 %v5033_v29 }
 0x82d   : > { %v4949_v19 = vpop.f32.mrb[56].mxu0  ;;  %v4990_v33 = vpop.f32.mrb[56].mxu1 }
 0x82e   : > { %v4997_v20 = vadd.f32 %v4949_v19, %v4718_v37  ;;  %v4951_v22 = vpop.f32.mrb[57].mxu0  ;;  %v4992_v23 = vpop.f32.mrb[57].mxu1  ;;  %v4999_v35 = vadd.f32 %v4990_v33, %v4720_v15 }
 0x82f   : > { %v4998_v46 = vadd.f32 %v4951_v22, %v4719_v48  ;;  %v4953_v17 = vpop.f32.mrb[58].mxu0  ;;  %v4994_v45 = vpop.f32.mrb[58].mxu1  ;;  %v5000_v30 = vadd.f32 %v4992_v23, %v4721_v57 }
 0x830   : > { %v6027_v55 = vmul.f32 -1.442695, %v4997_v20  ;;  %v4954_v40 = vpop.f32.mrb[59].mxu0  ;;  %v4995_v18 = vpop.f32.mrb[59].mxu1  ;;  %v6029_v31 = vmul.f32 -1.442695, %v4999_v35 }
 0x831   : > { %v6028_v44 = vmul.f32 -1.442695, %v4998_v46 }
 0x832   : > { %6688 = vpow2.f32 %v6027_v55 }
 0x833   : > { %6690 = vpow2.f32 %v6028_v44 }
 0x834   : > { %6692 = vtanh.f32 %v5000_v30 }
 0x835   : > { %6694 = vpow2.f32 %v6029_v31 }
 0x83c   : > { %v6689_v32 = vpop.eup %6688 }
 0x83d   : > { %v5010_v34 = vadd.f32 1.0, %v6689_v32  ;;  %v6691_v36 = vpop.eup %6690 }
 0x83e   : > { %v5011_v47 = vadd.f32 1.0, %v6691_v36  ;;  %v6693_v28 = vpop.eup %6692 }
 0x83f   : > { %6696 = vrcp.f32 %v5010_v34  ;;  %v6695_v12 = vpop.eup %6694 }
 0x840   : > { %6698 = vrcp.f32 %v5011_v47  ;;  %v5012_v53 = vadd.f32 1.0, %v6695_v12 }
 0x842   : > { %6700 = vrcp.f32 %v5012_v53 }
 0x849   : > { %v6697_v58 = vpop.eup %6696 }
 0x84a   : > { %v5021_v0 = vmul.f32 %v6697_v58, %v6693_v28  ;;  %v6699_v4 = vpop.eup %6698 }
 0x84b   : > { %v5020_v3 = vmul.f32 %v6699_v4, %v8668_v39  ;;  %v5031_v39 = vunpack.c.l.bf16 %v5026_v50 }
 0x84c   : > { %v6701_v7 = vpop.eup %6700 }
 0x84d   : > { %v5260_v2 = vpop.f32.mrb[60].mxu0  ;;  %v5301_v62 = vpop.f32.mrb[60].mxu1  ;;  %v5022_v63 = vadd.f32 %v5021_v0, %v5020_v3 }
 0x84e   : > { %v5308_v41 = vadd.f32 %v5260_v2, %v5029_v51  ;;  %v5262_v42 = vpop.f32.mrb[61].mxu0  ;;  %v5303_v49 = vpop.f32.mrb[61].mxu1  ;;  %v5310_v25 = vadd.f32 %v5301_v62, %v5031_v39 }
 0x84f   : > { %v5309_v56 = vadd.f32 %v5262_v42, %v5030_v54  ;;  %v5264_v59 = vpop.f32.mrb[62].mxu0  ;;  %v5305_v60 = vpop.f32.mrb[62].mxu1  ;;  %6702 = vtanh.f32 %v5022_v63  ;;  %5337 = vst [vmem:[#allocation3] sm:$0xff] %v5022_v63  ;;  %v5311_v52 = vadd.f32 %v5303_v49, %v5032_v43 }
 0x850   : > { %v6062_v8 = vmul.f32 -1.442695, %v5308_v41  ;;  %v5265_v13 = vpop.f32.mrb[63].mxu0  ;;  %v5306_v16 = vpop.f32.mrb[63].mxu1  ;;  %v6064_v61 = vmul.f32 -1.442695, %v5310_v25 }
 0x851   : > { %v6063_v24 = vmul.f32 -1.442695, %v5309_v56 }
 0x852   : > { %6704 = vpow2.f32 %v6062_v8 }
 0x853   : > { %6706 = vpow2.f32 %v6063_v24 }
 0x854   : > { %6708 = vtanh.f32 %v5311_v52 }
 0x855   : > { %6710 = vpow2.f32 %v6064_v61 }
 0x859   : > { %v6703_v38 = vpop.eup %6702 }
 0x85a   : > { %v5024_v1 = vmul.f32 %v6703_v38, %v6701_v7 }
 0x85c   : > { %v6705_v5 = vpop.eup %6704  ;;  %5336 = vst [vmem:[#allocation2] sm:$0xff] %v5024_v1  ;;  %6065 = vst [vmem:[%s6785_s9 + $0x38] sm:$0xff] %v5024_v1 }
 0x85d   : > { %v5321_v6 = vadd.f32 1.0, %v6705_v5  ;;  %v6707_v9 = vpop.eup %6706 }
 0x85e   : > { %v5322_v11 = vadd.f32 1.0, %v6707_v9  ;;  %v6709_v14 = vpop.eup %6708 }
 0x85f   : > { %6712 = vrcp.f32 %v5321_v6  ;;  %v6711_v29 = vpop.eup %6710 }
 0x860   : > { %6714 = vrcp.f32 %v5322_v11  ;;  %v5323_v19 = vadd.f32 1.0, %v6711_v29 }
 0x862   : > { %6716 = vrcp.f32 %v5323_v19 }
 0x869   : > { %v6713_v27 = vpop.eup %6712 }
 0x86a   : > { %v5332_v37 = vmul.f32 %v6713_v27, %v6709_v14  ;;  %v6715_v48 = vpop.eup %6714 }
 0x86b   : > { %v5331_v33 = vmul.f32 %v6715_v48, %v8692_v21 }
 0x86c   : > { %v6717_v22 = vpop.eup %6716 }
 0x86d   : > { %v5333_v20 = vadd.f32 %v5332_v37, %v5331_v33 }
 0x86f   : > { %6718 = vtanh.f32 %v5333_v20  ;;  %5339 = vst [vmem:[#allocation5] sm:$0xff] %v5333_v20 }
 0x879   : > { %v6719_v23 = vpop.eup %6718 }
 0x87a   : > { %v5335_v26 = vmul.f32 %v6719_v23, %v6717_v22 }
 0x87c   : > { %5338 = vst [vmem:[#allocation4] sm:$0xff] %v5335_v26  ;;  %5342 = vst [vmem:[%s6790_s13] sm:$0xff] %v5335_v26 }
 0x87d PF: > { %s16_s18 = sadd.s32 1, %s6730_s18  }
 0x87e   : > { %p13_p6 = scmp.ge.s32.totalorder %s16_s18, 4  }
 0x880   :  { %15 = sbr.rel (!%p13_p6) target bundleno = 1 (0x1), region = 113 }

</bundles_post_ra>
